<compile_context>
chip_gen: v5e
topology: v5e:2x2
jax: 0.10.0
libtpu: 0.0.40
codegen_flags: <defaults>
</compile_context>

<pallas_src>
import functools

import jax
import jax.numpy as jnp
from jax.experimental import pallas as pl
from jax.experimental.pallas import tpu as pltpu


# ---------------------------------------------------------------------------
# Pallas kernel: fused conv1 + BN1 + PReLU + conv2 + BN2 + residual add
# ---------------------------------------------------------------------------
def _residual_block_kernel(alpha_ref, x_ref, w1_ref, b1_ref, w2_ref, b2_ref,
                           mask_ref, o_ref, stage_ref, h_ref,
                           *, offsets, n_pos, x_start, h_start):
    # x_ref    : (C, Lx)   bf16, ring-padded + 2 extra zero rows each side
    # w*_ref   : (C, 9*C)  bf16, BN-folded, column = (kh*3+kw)*C + c_in
    # b*_ref   : (C, 1)    f32, BN-folded bias
    # mask_ref : (1, L)    f32, 1.0 on interior positions, 0.0 on the pad ring
    # o_ref    : (C, L)    f32 output in padded flattened coordinates
    # stage_ref: (9*C, L)  bf16 scratch: merged-K RHS for one conv
    # h_ref    : (C, Lh)   bf16 scratch: conv1 output (live columns [h_start, h_start+L))
    C = w1_ref.shape[0]
    L = n_pos
    alpha = alpha_ref[0]

    def stage_taps(src_ref, start):
        # Row block k of the merged-K RHS <- src shifted by offsets[k].
        # Every store is a full lane-width store at column 0; every read is an
        # in-bounds (possibly lane-unaligned) slice because src keeps a
        # >= Wp+1 halo around its L live columns.  Halo contents only ever
        # land in pad-ring output columns, which are discarded downstream, so
        # the halo of h_ref is never zeroed (no wasted vector stores).
        for k, off in enumerate(offsets):
            stage_ref[k * C:(k + 1) * C, :] = src_ref[:, start + off:start + off + L]

    # ---- conv1 + BN1 (folded into w1/b1) + PReLU ---------------------------
    stage_taps(x_ref, x_start)
    h = jnp.dot(w1_ref[...], stage_ref[...],
                preferred_element_type=jnp.float32) + b1_ref[...]
    h = jnp.where(h > 0.0, h, alpha * h)                         # PReLU
    # Force the pad ring to an exact 0.0 so it acts as conv2's implicit zero
    # padding.  A select (not a multiply) guarantees ring-column garbage from
    # the staging halo can never leak into conv2's interior outputs.
    h = jnp.where(mask_ref[...] > 0.0, h, 0.0)
    h_ref[:, h_start:h_start + L] = h.astype(jnp.bfloat16)

    # ---- conv2 + BN2 (folded into w2/b2) + residual add --------------------
    stage_taps(h_ref, h_start)
    out = jnp.dot(w2_ref[...], stage_ref[...],
                  preferred_element_type=jnp.float32) + b2_ref[...]
    out = out + x_ref[:, x_start:x_start + L].astype(jnp.float32)
    o_ref[...] = out.astype(o_ref.dtype)


# ---------------------------------------------------------------------------
# Wrapper
# ---------------------------------------------------------------------------
def _fold_bn(w, b, gamma, beta, mean, var, eps):
    """Fold eval-mode BatchNorm into the preceding conv's weight/bias."""
    s = gamma / jnp.sqrt(var + eps)                      # (C,)
    return w * s[:, None, None, None], (b - mean) * s + beta


@jax.jit
def residual_block(x, w1, b1, g1, be1, m1, v1, alpha, w2, b2, g2, be2, m2, v2):
    """ResidualBlock forward.  x: (N, C, H, W) float32 NCHW.  Returns same shape."""
    eps = 1e-5
    N, C, H, W = x.shape
    Hp, Wp = H + 2, W + 2
    L = Hp * Wp                                          # padded spatial, flattened

    # Fold BatchNorm (inference mode) into the convs, merge the 9 taps along K,
    # and cast the matmul operands to bf16 (f32 accumulation in the kernel).
    w1e, b1e = _fold_bn(w1, b1, g1, be1, m1, v1, eps)
    w2e, b2e = _fold_bn(w2, b2, g2, be2, m2, v2, eps)
    # [c_out, (kh*3 + kw)*C + c_in]  -- matches the staging row order below.
    w1m = w1e.transpose(0, 2, 3, 1).reshape(C, 9 * C).astype(jnp.bfloat16)
    w2m = w2e.transpose(0, 2, 3, 1).reshape(C, 9 * C).astype(jnp.bfloat16)
    b1c = b1e.reshape(C, 1).astype(jnp.float32)
    b2c = b2e.reshape(C, 1).astype(jnp.float32)

    # SINGLE pad: conv ring (1 row/col) plus 2 extra zero rows on each side so
    # every shifted tap read stays in-bounds.  Channel-major, flattened, bf16.
    x_start = 2 * Wp
    Lx = (H + 6) * Wp
    xp = jnp.pad(x, ((0, 0), (0, 0), (3, 3), (1, 1))).reshape(N, C, Lx)
    xp = xp.astype(jnp.bfloat16)

    # Interior mask over padded flattened coordinates.
    mask = jnp.zeros((Hp, Wp), jnp.float32).at[1:-1, 1:-1].set(1.0).reshape(1, L)

    alpha_arr = jnp.asarray(alpha, jnp.float32).reshape(1)

    # Flattened tap offsets for a 3x3 / pad-1 conv in padded coordinates.
    offsets = tuple((kh - 1) * Wp + (kw - 1) for kh in range(3) for kw in range(3))

    # Intermediate scratch geometry: lane-aligned start for the h store, and
    # enough room for the +/-(Wp+1) tap halo on both sides.
    h_start = ((Wp + 1 + 127) // 128) * 128
    Lh = ((h_start + L + Wp + 1 + 127) // 128) * 128

    kernel = functools.partial(_residual_block_kernel, offsets=offsets,
                               n_pos=L, x_start=x_start, h_start=h_start)

    out_flat = pl.pallas_call(
        kernel,
        out_shape=jax.ShapeDtypeStruct((N, C, L), jnp.float32),
        grid_spec=pltpu.PrefetchScalarGridSpec(
            num_scalar_prefetch=0,
            grid=(N,),                                   # one image per step; both
            in_specs=[                                   # v7x cores get work at N>=2
                pl.BlockSpec(memory_space=pltpu.MemorySpace.SMEM),   # alpha
                pl.BlockSpec((None, C, Lx), lambda n: (n, 0, 0)),    # x (bf16)
                pl.BlockSpec((C, 9 * C), lambda n: (0, 0)),          # w1 merged
                pl.BlockSpec((C, 1), lambda n: (0, 0)),              # b1
                pl.BlockSpec((C, 9 * C), lambda n: (0, 0)),          # w2 merged
                pl.BlockSpec((C, 1), lambda n: (0, 0)),              # b2
                pl.BlockSpec((1, L), lambda n: (0, 0)),              # ring mask
            ],
            out_specs=pl.BlockSpec((None, C, L), lambda n: (n, 0, 0)),
            scratch_shapes=[
                pltpu.VMEM((9 * C, L), jnp.bfloat16),    # merged-K RHS staging
                pltpu.VMEM((C, Lh), jnp.bfloat16),       # conv1 output (+halo)
            ],
        ),
        compiler_params=pltpu.CompilerParams(
            dimension_semantics=("parallel",),
            vmem_limit_bytes=32 * 1024 * 1024,           # ~1 MiB/step actual use
        ),
    )(alpha_arr, xp, w1m, b1c, w2m, b2c, mask)

    # Drop the padding ring; already NCHW (no layout round trips).
    return out_flat.reshape(N, C, Hp, Wp)[:, :, 1:-1, 1:-1]


# ---------------------------------------------------------------------------
# Pure-JAX f32 reference (for correctness check)
# ---------------------------------------------------------------------------
def residual_block_ref(x, w1, b1, g1, be1, m1, v1, alpha, w2, b2, g2, be2, m2, v2):
    eps = 1e-5

    def conv(z, w, b):
        y = jax.lax.conv_general_dilated(
            z, w, window_strides=(1, 1), padding=((1, 1), (1, 1)),
            dimension_numbers=("NCHW", "OIHW", "NCHW"),
            precision=jax.lax.Precision.HIGHEST)
        return y + b.reshape(1, -1, 1, 1)

    def bn(y, g, be, m, v):
        s = (g / jnp.sqrt(v + eps)).reshape(1, -1, 1, 1)
        return (y - m.reshape(1, -1, 1, 1)) * s + be.reshape(1, -1, 1, 1)

    r = bn(conv(x, w1, b1), g1, be1, m1, v1)
    r = jnp.where(r > 0, r, alpha * r)
    r = bn(conv(r, w2, b2), g2, be2, m2, v2)
    return x + r


if __name__ == "__main__":
    key = jax.random.PRNGKey(0)
    ks = jax.random.split(key, 13)

    # Module config: channels=64 (the nn.Module default), small batch / spatial.
    N, C, H, W = 2, 64, 16, 16

    x = jax.random.normal(ks[0], (N, C, H, W), jnp.float32)
    w1 = 0.05 * jax.random.normal(ks[1], (C, C, 3, 3), jnp.float32)
    b1 = 0.05 * jax.random.normal(ks[2], (C,), jnp.float32)
    g1 = 1.0 + 0.1 * jax.random.normal(ks[3], (C,), jnp.float32)
    be1 = 0.1 * jax.random.normal(ks[4], (C,), jnp.float32)
    m1 = 0.1 * jax.random.normal(ks[5], (C,), jnp.float32)
    v1 = jax.random.uniform(ks[6], (C,), jnp.float32, 0.5, 1.5)
    w2 = 0.05 * jax.random.normal(ks[7], (C, C, 3, 3), jnp.float32)
    b2 = 0.05 * jax.random.normal(ks[8], (C,), jnp.float32)
    g2 = 1.0 + 0.1 * jax.random.normal(ks[9], (C,), jnp.float32)
    be2 = 0.1 * jax.random.normal(ks[10], (C,), jnp.float32)
    m2 = 0.1 * jax.random.normal(ks[11], (C,), jnp.float32)
    v2 = jax.random.uniform(ks[12], (C,), jnp.float32, 0.5, 1.5)
    alpha = jnp.float32(0.25)   # PyTorch PReLU default init

    out = residual_block(x, w1, b1, g1, be1, m1, v1, alpha,
                         w2, b2, g2, be2, m2, v2)
    out = jax.block_until_ready(out)

    ref = residual_block_ref(x, w1, b1, g1, be1, m1, v1, alpha,
                             w2, b2, g2, be2, m2, v2)
    assert out.shape == (N, C, H, W), out.shape
    max_err = float(jnp.max(jnp.abs(out - ref)))
    # bf16 matmul operands (two chained K=576 convs) vs. an f32 reference:
    # loosened tolerance per the performance review's bf16 guidance.
    assert jnp.allclose(out, ref, atol=5e-2, rtol=5e-2), max_err

    print("KERNEL_OK")
</pallas_src>

<mosaic_0001>
module attributes {stable_mosaic.version = 11 : i64} {
  func.func @_residual_block_kernel(%arg0: i32, %arg1: memref<1xf32, #tpu.memory_space<smem>>, %arg2: memref<1x64x396xbf16, #tpu.memory_space<vmem>>, %arg3: memref<64x576xbf16, #tpu.memory_space<vmem>>, %arg4: memref<64x1xf32, #tpu.memory_space<vmem>>, %arg5: memref<64x576xbf16, #tpu.memory_space<vmem>>, %arg6: memref<64x1xf32, #tpu.memory_space<vmem>>, %arg7: memref<1x324xf32, #tpu.memory_space<vmem>>, %arg8: memref<1x64x324xf32, #tpu.memory_space<vmem>>, %arg9: memref<576x324xbf16, #tpu.memory_space<vmem>>, %arg10: memref<64x512xbf16, #tpu.memory_space<vmem>>) attributes {dimension_semantics = [#tpu.dimension_semantics<parallel>], iteration_bounds = array<i64: 2>, scalar_prefetch = 0 : i64, scratch_operands = 2 : i64, tpu.core_type = #tpu.core_type<tc>, window_params = [{transform_indices = @transform_0, window_bounds = array<i64: 1>}, {transform_indices = @transform_1, window_bounds = array<i64: 1, 64, 396>}, {pipeline_mode = #tpu.pipeline_mode<synchronous>, transform_indices = @transform_2, window_bounds = array<i64: 64, 576>}, {pipeline_mode = #tpu.pipeline_mode<synchronous>, transform_indices = @transform_3, window_bounds = array<i64: 64, 1>}, {pipeline_mode = #tpu.pipeline_mode<synchronous>, transform_indices = @transform_4, window_bounds = array<i64: 64, 576>}, {pipeline_mode = #tpu.pipeline_mode<synchronous>, transform_indices = @transform_5, window_bounds = array<i64: 64, 1>}, {pipeline_mode = #tpu.pipeline_mode<synchronous>, transform_indices = @transform_6, window_bounds = array<i64: 1, 324>}, {transform_indices = @transform_7, window_bounds = array<i64: 1, 64, 324>}]} {
    %c0 = arith.constant 0 : index
    %0 = memref.load %arg1[%c0] : memref<1xf32, #tpu.memory_space<smem>>
    %c0_0 = arith.constant 0 : index
    %c0_1 = arith.constant 0 : index
    %c17 = arith.constant 17 : index
    %1 = vector.load %arg2[%c0_0, %c0_1, %c17] : memref<1x64x396xbf16, #tpu.memory_space<vmem>>, vector<1x64x324xbf16>
    %2 = vector.shape_cast %1 : vector<1x64x324xbf16> to vector<64x324xbf16>
    %c0_2 = arith.constant 0 : index
    %c0_3 = arith.constant 0 : index
    %3 = vector.load %arg9[%c0_2, %c0_3] : memref<576x324xbf16, #tpu.memory_space<vmem>>, vector<64x324xbf16>
    tpu.vector_store %arg9[%c0_2, %c0_3], %2 {strides = array<i32>} : memref<576x324xbf16, #tpu.memory_space<vmem>>, vector<64x324xbf16>,
    %c0_4 = arith.constant 0 : index
    %c0_5 = arith.constant 0 : index
    %c18 = arith.constant 18 : index
    %4 = vector.load %arg2[%c0_4, %c0_5, %c18] : memref<1x64x396xbf16, #tpu.memory_space<vmem>>, vector<1x64x324xbf16>
    %5 = vector.shape_cast %4 : vector<1x64x324xbf16> to vector<64x324xbf16>
    %c64 = arith.constant 64 : index
    %c0_6 = arith.constant 0 : index
    %6 = vector.load %arg9[%c64, %c0_6] : memref<576x324xbf16, #tpu.memory_space<vmem>>, vector<64x324xbf16>
    tpu.vector_store %arg9[%c64, %c0_6], %5 {strides = array<i32>} : memref<576x324xbf16, #tpu.memory_space<vmem>>, vector<64x324xbf16>,
    %c0_7 = arith.constant 0 : index
    %c0_8 = arith.constant 0 : index
    %c19 = arith.constant 19 : index
    %7 = vector.load %arg2[%c0_7, %c0_8, %c19] : memref<1x64x396xbf16, #tpu.memory_space<vmem>>, vector<1x64x324xbf16>
    %8 = vector.shape_cast %7 : vector<1x64x324xbf16> to vector<64x324xbf16>
    %c128 = arith.constant 128 : index
    %c0_9 = arith.constant 0 : index
    %9 = vector.load %arg9[%c128, %c0_9] : memref<576x324xbf16, #tpu.memory_space<vmem>>, vector<64x324xbf16>
    tpu.vector_store %arg9[%c128, %c0_9], %8 {strides = array<i32>} : memref<576x324xbf16, #tpu.memory_space<vmem>>, vector<64x324xbf16>,
    %c0_10 = arith.constant 0 : index
    %c0_11 = arith.constant 0 : index
    %c35 = arith.constant 35 : index
    %10 = vector.load %arg2[%c0_10, %c0_11, %c35] : memref<1x64x396xbf16, #tpu.memory_space<vmem>>, vector<1x64x324xbf16>
    %11 = vector.shape_cast %10 : vector<1x64x324xbf16> to vector<64x324xbf16>
    %c192 = arith.constant 192 : index
    %c0_12 = arith.constant 0 : index
    %12 = vector.load %arg9[%c192, %c0_12] : memref<576x324xbf16, #tpu.memory_space<vmem>>, vector<64x324xbf16>
    tpu.vector_store %arg9[%c192, %c0_12], %11 {strides = array<i32>} : memref<576x324xbf16, #tpu.memory_space<vmem>>, vector<64x324xbf16>,
    %c0_13 = arith.constant 0 : index
    %c0_14 = arith.constant 0 : index
    %c36 = arith.constant 36 : index
    %13 = vector.load %arg2[%c0_13, %c0_14, %c36] : memref<1x64x396xbf16, #tpu.memory_space<vmem>>, vector<1x64x324xbf16>
    %14 = vector.shape_cast %13 : vector<1x64x324xbf16> to vector<64x324xbf16>
    %c256 = arith.constant 256 : index
    %c0_15 = arith.constant 0 : index
    %15 = vector.load %arg9[%c256, %c0_15] : memref<576x324xbf16, #tpu.memory_space<vmem>>, vector<64x324xbf16>
    tpu.vector_store %arg9[%c256, %c0_15], %14 {strides = array<i32>} : memref<576x324xbf16, #tpu.memory_space<vmem>>, vector<64x324xbf16>,
    %c0_16 = arith.constant 0 : index
    %c0_17 = arith.constant 0 : index
    %c37 = arith.constant 37 : index
    %16 = vector.load %arg2[%c0_16, %c0_17, %c37] : memref<1x64x396xbf16, #tpu.memory_space<vmem>>, vector<1x64x324xbf16>
    %17 = vector.shape_cast %16 : vector<1x64x324xbf16> to vector<64x324xbf16>
    %c320 = arith.constant 320 : index
    %c0_18 = arith.constant 0 : index
    %18 = vector.load %arg9[%c320, %c0_18] : memref<576x324xbf16, #tpu.memory_space<vmem>>, vector<64x324xbf16>
    tpu.vector_store %arg9[%c320, %c0_18], %17 {strides = array<i32>} : memref<576x324xbf16, #tpu.memory_space<vmem>>, vector<64x324xbf16>,
    %c0_19 = arith.constant 0 : index
    %c0_20 = arith.constant 0 : index
    %c53 = arith.constant 53 : index
    %19 = vector.load %arg2[%c0_19, %c0_20, %c53] : memref<1x64x396xbf16, #tpu.memory_space<vmem>>, vector<1x64x324xbf16>
    %20 = vector.shape_cast %19 : vector<1x64x324xbf16> to vector<64x324xbf16>
    %c384 = arith.constant 384 : index
    %c0_21 = arith.constant 0 : index
    %21 = vector.load %arg9[%c384, %c0_21] : memref<576x324xbf16, #tpu.memory_space<vmem>>, vector<64x324xbf16>
    tpu.vector_store %arg9[%c384, %c0_21], %20 {strides = array<i32>} : memref<576x324xbf16, #tpu.memory_space<vmem>>, vector<64x324xbf16>,
    %c0_22 = arith.constant 0 : index
    %c0_23 = arith.constant 0 : index
    %c54 = arith.constant 54 : index
    %22 = vector.load %arg2[%c0_22, %c0_23, %c54] : memref<1x64x396xbf16, #tpu.memory_space<vmem>>, vector<1x64x324xbf16>
    %23 = vector.shape_cast %22 : vector<1x64x324xbf16> to vector<64x324xbf16>
    %c448 = arith.constant 448 : index
    %c0_24 = arith.constant 0 : index
    %24 = vector.load %arg9[%c448, %c0_24] : memref<576x324xbf16, #tpu.memory_space<vmem>>, vector<64x324xbf16>
    tpu.vector_store %arg9[%c448, %c0_24], %23 {strides = array<i32>} : memref<576x324xbf16, #tpu.memory_space<vmem>>, vector<64x324xbf16>,
    %c0_25 = arith.constant 0 : index
    %c0_26 = arith.constant 0 : index
    %c55 = arith.constant 55 : index
    %25 = vector.load %arg2[%c0_25, %c0_26, %c55] : memref<1x64x396xbf16, #tpu.memory_space<vmem>>, vector<1x64x324xbf16>
    %26 = vector.shape_cast %25 : vector<1x64x324xbf16> to vector<64x324xbf16>
    %c512 = arith.constant 512 : index
    %c0_27 = arith.constant 0 : index
    %27 = vector.load %arg9[%c512, %c0_27] : memref<576x324xbf16, #tpu.memory_space<vmem>>, vector<64x324xbf16>
    tpu.vector_store %arg9[%c512, %c0_27], %26 {strides = array<i32>} : memref<576x324xbf16, #tpu.memory_space<vmem>>, vector<64x324xbf16>,
    %c0_28 = arith.constant 0 : index
    %c0_29 = arith.constant 0 : index
    %28 = vector.load %arg3[%c0_28, %c0_29] : memref<64x576xbf16, #tpu.memory_space<vmem>>, vector<64x576xbf16>
    %c0_30 = arith.constant 0 : index
    %c0_31 = arith.constant 0 : index
    %29 = vector.load %arg9[%c0_30, %c0_31] : memref<576x324xbf16, #tpu.memory_space<vmem>>, vector<576x324xbf16>
    %cst = arith.constant dense<0.000000e+00> : vector<64x324xf32>
    %30 = tpu.matmul %28, %29, %cst {dimension_numbers = #tpu.dot_dimension_numbers<[1], [0], [0], [1], [0, 0, 1, 1], [], []>} : vector<64x576xbf16>, vector<576x324xbf16>, vector<64x324xf32> -> vector<64x324xf32>
    %c0_32 = arith.constant 0 : index
    %c0_33 = arith.constant 0 : index
    %31 = vector.load %arg4[%c0_32, %c0_33] : memref<64x1xf32, #tpu.memory_space<vmem>>, vector<64x1xf32>
    %32 = vector.broadcast %31 : vector<64x1xf32> to vector<64x324xf32>
    %33 = arith.addf %30, %32 : vector<64x324xf32>
    %cst_34 = arith.constant 0.000000e+00 : f32
    %34 = vector.broadcast %cst_34 : f32 to vector<64x324xf32>
    %35 = arith.cmpf ogt, %33, %34 : vector<64x324xf32>
    %36 = vector.broadcast %0 : f32 to vector<64x324xf32>
    %37 = arith.mulf %36, %33 : vector<64x324xf32>
    %38 = arith.select %35, %33, %37 : vector<64x324xi1>, vector<64x324xf32>
    %c0_35 = arith.constant 0 : index
    %c0_36 = arith.constant 0 : index
    %39 = vector.load %arg7[%c0_35, %c0_36] : memref<1x324xf32, #tpu.memory_space<vmem>>, vector<1x324xf32>
    %cst_37 = arith.constant 0.000000e+00 : f32
    %40 = vector.broadcast %cst_37 : f32 to vector<1x324xf32>
    %41 = arith.cmpf ogt, %39, %40 : vector<1x324xf32>
    %cst_38 = arith.constant 0.000000e+00 : f32
    %42 = vector.shape_cast %41 : vector<1x324xi1> to vector<1x324xi1>
    %43 = vector.broadcast %42 : vector<1x324xi1> to vector<64x324xi1>
    %44 = vector.broadcast %cst_38 : f32 to vector<64x324xf32>
    %45 = arith.select %43, %38, %44 : vector<64x324xi1>, vector<64x324xf32>
    %46 = arith.truncf %45 : vector<64x324xf32> to vector<64x324xbf16>
    %c0_39 = arith.constant 0 : index
    %c128_40 = arith.constant 128 : index
    %47 = vector.load %arg10[%c0_39, %c128_40] : memref<64x512xbf16, #tpu.memory_space<vmem>>, vector<64x324xbf16>
    tpu.vector_store %arg10[%c0_39, %c128_40], %46 {strides = array<i32>} : memref<64x512xbf16, #tpu.memory_space<vmem>>, vector<64x324xbf16>,
    %c0_41 = arith.constant 0 : index
    %c109 = arith.constant 109 : index
    %48 = vector.load %arg10[%c0_41, %c109] : memref<64x512xbf16, #tpu.memory_space<vmem>>, vector<64x324xbf16>
    %c0_42 = arith.constant 0 : index
    %c0_43 = arith.constant 0 : index
    %49 = vector.load %arg9[%c0_42, %c0_43] : memref<576x324xbf16, #tpu.memory_space<vmem>>, vector<64x324xbf16>
    tpu.vector_store %arg9[%c0_42, %c0_43], %48 {strides = array<i32>} : memref<576x324xbf16, #tpu.memory_space<vmem>>, vector<64x324xbf16>,
    %c0_44 = arith.constant 0 : index
    %c110 = arith.constant 110 : index
    %50 = vector.load %arg10[%c0_44, %c110] : memref<64x512xbf16, #tpu.memory_space<vmem>>, vector<64x324xbf16>
    %c64_45 = arith.constant 64 : index
    %c0_46 = arith.constant 0 : index
    %51 = vector.load %arg9[%c64_45, %c0_46] : memref<576x324xbf16, #tpu.memory_space<vmem>>, vector<64x324xbf16>
    tpu.vector_store %arg9[%c64_45, %c0_46], %50 {strides = array<i32>} : memref<576x324xbf16, #tpu.memory_space<vmem>>, vector<64x324xbf16>,
    %c0_47 = arith.constant 0 : index
    %c111 = arith.constant 111 : index
    %52 = vector.load %arg10[%c0_47, %c111] : memref<64x512xbf16, #tpu.memory_space<vmem>>, vector<64x324xbf16>
    %c128_48 = arith.constant 128 : index
    %c0_49 = arith.constant 0 : index
    %53 = vector.load %arg9[%c128_48, %c0_49] : memref<576x324xbf16, #tpu.memory_space<vmem>>, vector<64x324xbf16>
    tpu.vector_store %arg9[%c128_48, %c0_49], %52 {strides = array<i32>} : memref<576x324xbf16, #tpu.memory_space<vmem>>, vector<64x324xbf16>,
    %c0_50 = arith.constant 0 : index
    %c127 = arith.constant 127 : index
    %54 = vector.load %arg10[%c0_50, %c127] : memref<64x512xbf16, #tpu.memory_space<vmem>>, vector<64x324xbf16>
    %c192_51 = arith.constant 192 : index
    %c0_52 = arith.constant 0 : index
    %55 = vector.load %arg9[%c192_51, %c0_52] : memref<576x324xbf16, #tpu.memory_space<vmem>>, vector<64x324xbf16>
    tpu.vector_store %arg9[%c192_51, %c0_52], %54 {strides = array<i32>} : memref<576x324xbf16, #tpu.memory_space<vmem>>, vector<64x324xbf16>,
    %c0_53 = arith.constant 0 : index
    %c128_54 = arith.constant 128 : index
    %56 = vector.load %arg10[%c0_53, %c128_54] : memref<64x512xbf16, #tpu.memory_space<vmem>>, vector<64x324xbf16>
    %c256_55 = arith.constant 256 : index
    %c0_56 = arith.constant 0 : index
    %57 = vector.load %arg9[%c256_55, %c0_56] : memref<576x324xbf16, #tpu.memory_space<vmem>>, vector<64x324xbf16>
    tpu.vector_store %arg9[%c256_55, %c0_56], %56 {strides = array<i32>} : memref<576x324xbf16, #tpu.memory_space<vmem>>, vector<64x324xbf16>,
    %c0_57 = arith.constant 0 : index
    %c129 = arith.constant 129 : index
    %58 = vector.load %arg10[%c0_57, %c129] : memref<64x512xbf16, #tpu.memory_space<vmem>>, vector<64x324xbf16>
    %c320_58 = arith.constant 320 : index
    %c0_59 = arith.constant 0 : index
    %59 = vector.load %arg9[%c320_58, %c0_59] : memref<576x324xbf16, #tpu.memory_space<vmem>>, vector<64x324xbf16>
    tpu.vector_store %arg9[%c320_58, %c0_59], %58 {strides = array<i32>} : memref<576x324xbf16, #tpu.memory_space<vmem>>, vector<64x324xbf16>,
    %c0_60 = arith.constant 0 : index
    %c145 = arith.constant 145 : index
    %60 = vector.load %arg10[%c0_60, %c145] : memref<64x512xbf16, #tpu.memory_space<vmem>>, vector<64x324xbf16>
    %c384_61 = arith.constant 384 : index
    %c0_62 = arith.constant 0 : index
    %61 = vector.load %arg9[%c384_61, %c0_62] : memref<576x324xbf16, #tpu.memory_space<vmem>>, vector<64x324xbf16>
    tpu.vector_store %arg9[%c384_61, %c0_62], %60 {strides = array<i32>} : memref<576x324xbf16, #tpu.memory_space<vmem>>, vector<64x324xbf16>,
    %c0_63 = arith.constant 0 : index
    %c146 = arith.constant 146 : index
    %62 = vector.load %arg10[%c0_63, %c146] : memref<64x512xbf16, #tpu.memory_space<vmem>>, vector<64x324xbf16>
    %c448_64 = arith.constant 448 : index
    %c0_65 = arith.constant 0 : index
    %63 = vector.load %arg9[%c448_64, %c0_65] : memref<576x324xbf16, #tpu.memory_space<vmem>>, vector<64x324xbf16>
    tpu.vector_store %arg9[%c448_64, %c0_65], %62 {strides = array<i32>} : memref<576x324xbf16, #tpu.memory_space<vmem>>, vector<64x324xbf16>,
    %c0_66 = arith.constant 0 : index
    %c147 = arith.constant 147 : index
    %64 = vector.load %arg10[%c0_66, %c147] : memref<64x512xbf16, #tpu.memory_space<vmem>>, vector<64x324xbf16>
    %c512_67 = arith.constant 512 : index
    %c0_68 = arith.constant 0 : index
    %65 = vector.load %arg9[%c512_67, %c0_68] : memref<576x324xbf16, #tpu.memory_space<vmem>>, vector<64x324xbf16>
    tpu.vector_store %arg9[%c512_67, %c0_68], %64 {strides = array<i32>} : memref<576x324xbf16, #tpu.memory_space<vmem>>, vector<64x324xbf16>,
    %c0_69 = arith.constant 0 : index
    %c0_70 = arith.constant 0 : index
    %66 = vector.load %arg5[%c0_69, %c0_70] : memref<64x576xbf16, #tpu.memory_space<vmem>>, vector<64x576xbf16>
    %c0_71 = arith.constant 0 : index
    %c0_72 = arith.constant 0 : index
    %67 = vector.load %arg9[%c0_71, %c0_72] : memref<576x324xbf16, #tpu.memory_space<vmem>>, vector<576x324xbf16>
    %cst_73 = arith.constant dense<0.000000e+00> : vector<64x324xf32>
    %68 = tpu.matmul %66, %67, %cst_73 {dimension_numbers = #tpu.dot_dimension_numbers<[1], [0], [0], [1], [0, 0, 1, 1], [], []>} : vector<64x576xbf16>, vector<576x324xbf16>, vector<64x324xf32> -> vector<64x324xf32>
    %c0_74 = arith.constant 0 : index
    %c0_75 = arith.constant 0 : index
    %69 = vector.load %arg6[%c0_74, %c0_75] : memref<64x1xf32, #tpu.memory_space<vmem>>, vector<64x1xf32>
    %70 = vector.broadcast %69 : vector<64x1xf32> to vector<64x324xf32>
    %71 = arith.addf %68, %70 : vector<64x324xf32>
    %c0_76 = arith.constant 0 : index
    %c0_77 = arith.constant 0 : index
    %c36_78 = arith.constant 36 : index
    %72 = vector.load %arg2[%c0_76, %c0_77, %c36_78] : memref<1x64x396xbf16, #tpu.memory_space<vmem>>, vector<1x64x324xbf16>
    %73 = vector.shape_cast %72 : vector<1x64x324xbf16> to vector<64x324xbf16>
    %74 = arith.extf %73 : vector<64x324xbf16> to vector<64x324xf32>
    %75 = arith.addf %71, %74 : vector<64x324xf32>
    %c0_79 = arith.constant 0 : index
    %c0_80 = arith.constant 0 : index
    %c0_81 = arith.constant 0 : index
    %76 = vector.load %arg8[%c0_79, %c0_80, %c0_81] : memref<1x64x324xf32, #tpu.memory_space<vmem>>, vector<1x64x324xf32>
    %77 = vector.shape_cast %76 : vector<1x64x324xf32> to vector<64x324xf32>
    %78 = vector.shape_cast %75 : vector<64x324xf32> to vector<1x64x324xf32>
    tpu.vector_store %arg8[%c0_79, %c0_80, %c0_81], %78 {strides = array<i32>} : memref<1x64x324xf32, #tpu.memory_space<vmem>>, vector<1x64x324xf32>,
    return
  }
  func.func @transform_0(%arg0: i32) -> i32 {
    %c0_i32 = arith.constant 0 : i32
    %c0_i32_0 = arith.constant 0 : i32
    return %c0_i32 : i32
  }
  func.func @transform_1(%arg0: i32) -> (i32, i32, i32) {
    %c0_i32 = arith.constant 0 : i32
    %c0_i32_0 = arith.constant 0 : i32
    %c0_i32_1 = arith.constant 0 : i32
    return %arg0, %c0_i32, %c0_i32_0 : i32, i32, i32
  }
  func.func @transform_2(%arg0: i32) -> (i32, i32) {
    %c0_i32 = arith.constant 0 : i32
    %c0_i32_0 = arith.constant 0 : i32
    %c0_i32_1 = arith.constant 0 : i32
    return %c0_i32, %c0_i32_0 : i32, i32
  }
  func.func @transform_3(%arg0: i32) -> (i32, i32) {
    %c0_i32 = arith.constant 0 : i32
    %c0_i32_0 = arith.constant 0 : i32
    %c0_i32_1 = arith.constant 0 : i32
    return %c0_i32, %c0_i32_0 : i32, i32
  }
  func.func @transform_4(%arg0: i32) -> (i32, i32) {
    %c0_i32 = arith.constant 0 : i32
    %c0_i32_0 = arith.constant 0 : i32
    %c0_i32_1 = arith.constant 0 : i32
    return %c0_i32, %c0_i32_0 : i32, i32
  }
  func.func @transform_5(%arg0: i32) -> (i32, i32) {
    %c0_i32 = arith.constant 0 : i32
    %c0_i32_0 = arith.constant 0 : i32
    %c0_i32_1 = arith.constant 0 : i32
    return %c0_i32, %c0_i32_0 : i32, i32
  }
  func.func @transform_6(%arg0: i32) -> (i32, i32) {
    %c0_i32 = arith.constant 0 : i32
    %c0_i32_0 = arith.constant 0 : i32
    %c0_i32_1 = arith.constant 0 : i32
    return %c0_i32, %c0_i32_0 : i32, i32
  }
  func.func @transform_7(%arg0: i32) -> (i32, i32, i32) {
    %c0_i32 = arith.constant 0 : i32
    %c0_i32_0 = arith.constant 0 : i32
    %c0_i32_1 = arith.constant 0 : i32
    return %arg0, %c0_i32, %c0_i32_0 : i32, i32, i32
  }
}

</mosaic_0001>

<bundles_post_ra>
// kernel: residual_block.1
= control target key start
LH: loop header
LB: loop body
LE: loop exit
PB: predicated region body
PF: predicated region fallthrough
CT: control target
= control target key end

     0   :  { %s7102_s26 = smov 0   ;;  %s9683_s0 = inlined_call_operand.<no memory space> [shape: f32[1], index: 0, kind: input, shape index: {}]   ;;  %s9684_s1 = inlined_call_operand.vmem [shape: bf16[2,64,396], index: 1, kind: input, shape index: {}]   ;;  %s9685_s2 = inlined_call_operand.vmem [shape: bf16[64,576], index: 2, kind: input, shape index: {}]   ;;  %s9686_s3 = inlined_call_operand.vmem [shape: f32[64,1], index: 3, kind: input, shape index: {}]   ;;  %s9687_s4 = inlined_call_operand.vmem [shape: bf16[64,576], index: 4, kind: input, shape index: {}]   ;;  %s9688_s5 = inlined_call_operand.vmem [shape: f32[64,1], index: 5, kind: input, shape index: {}]   ;;  %s9689_s6 = inlined_call_operand.vmem [shape: f32[1,324], index: 6, kind: input, shape index: {}]   ;;  %s9690_s7 = inlined_call_operand.vmem [shape: f32[2,64,324], index: 7, kind: output, shape index: {}]  }
   0x1   :  { %12 = sst [smem:[#allocation4]] %s9683_s0 }
   0x2 LB: > { %s5612_s27 = sadd.s32 4294967295, %s7042_s26   ;;  %p5616_p0 = scmp.ge.s32.totalorder %s7042_s26, 1  ;;  %s7042_s26 = sphi %s7102_s26, %s18_s26  }
   0x3   : > { %p238_p1 = scmp.lt.s32.totalorder %s7042_s26, 3 }
   0x5   : > { %p239_p2 = pnand %p5616_p0, %p238_p1 }
   0x6   : > { %p270_p3 = scmp.lt.s32.totalorder (!%p239_p2), %s5612_s27, 1  ;;  %s7044_s8 = smov (!%p239_p2), 110  }
   0x7   : > { %242 = sbr.rel (%p239_p2) target bundleno = 1534 (0x5fe), region = 48  ;;  %s7045_s9 = smov (!%p239_p2), 111  }
   0x8   : > { %s7046_s10 = smov (!%p239_p2), 91   ;;  %s7047_s11 = smov (!%p239_p2), 92  }
   0x9   : > { %s7048_s12 = smov (!%p239_p2), 93   ;;  %s7049_s13 = smov (!%p239_p2), 109  }
   0xa   : > { %s7050_s14 = smov (!%p239_p2), 74   ;;  %s7051_s19 = smov (!%p239_p2), 75  }
   0xb   : > { %s7052_s20 = smov (!%p239_p2), 73   ;;  %s7055_s15 = smov (!%p239_p2), 19  }
   0xc   : > { %s9700_s27 = smov (!%p270_p3, %s5612_s27), 1  ;;  %vm397_vm0 = vcmask 551936   ;;  %vm362_vm1 = vcmask 1043456   ;;  %vm494_vm2 = vcmask 900096   ;;  %vm364_vm3 = vcmask 908288   ;;  %s7056_s16 = smov 1  }
   0xd   : > { %s6670_s0 = sshll.u32 %s9700_s27, 7  ;;  %vm1010_vm4 = vcmask 744448   ;;  %vm881_vm5 = vcmask 752640   ;;  %vm752_vm6 = vcmask 760832   ;;  %vm623_vm7 = vcmask 891904   ;;  %s7057_s17 = smov 127  }
   0xe   : > { %s7116_s30 = scalar_lea.vmem %s9684_s1, %s6670_s0  ;;  %vm1268_vm8 = vcmask 605184   ;;  %vm1139_vm9 = vcmask 613376   ;;  %vm1397_vm10 = vcmask 596992   ;;  %vm2337_vm11 = vcmask 523264   ;;  %s7058_s18 = smov 17  }
   0xf   : > { %v7119_v0 = vld [vmem:[%s7116_s30 + $0x70] sm:$0xff]  ;;  %v7122_v1 = vld [vmem:[%s7116_s30 + $0x60] sm:$0xff]  ;;  %v428_v3 = vld [vmem:[%s7116_s30 + $0x78] sm:$0xf] }
  0x10   : > { %473 = vrot.lane.b32.xlu1 %v7119_v0, %s7044_s8  ;;  %469 = vrot.lane.b32.xlu0 %v7122_v1, %s7044_s8  ;;  %v7129_v2 = vld [vmem:[%s7116_s30 + $0x40] sm:$0xff]  ;;  %v426_v4 = vld [vmem:[%s7116_s30 + $0x68] sm:$0xf] }
  0x11   : > { %461 = vrot.lane.b32.xlu2 %v7129_v2, %s7044_s8  ;;  %v422_v5 = vld [vmem:[%s7116_s30 + $0x48] sm:$0xf]  ;;  %v424_v6 = vld [vmem:[%s7116_s30 + $0x58] sm:$0xf]  ;;  %v7141_v7 = vld [vmem:[%s7116_s30 + $0x50] sm:$0xff] }
  0x12   : > { %v7144_v8 = vld [vmem:[%s7116_s30 + $0x20] sm:$0xff]  ;;  %v7152_v9 = vld [vmem:[%s7116_s30 + $0x30] sm:$0xff]  ;;  %v418_v10 = vld [vmem:[%s7116_s30 + $0x28] sm:$0xf] }
  0x13   : > { %v420_v11 = vld [vmem:[%s7116_s30 + $0x38] sm:$0xf]  ;;  %v414_v12 = vld [vmem:[%s7116_s30 + $0x8] sm:$0xf]  ;;  %v7162_v13 = vld [vmem:[%s7116_s30] sm:$0xff] }
  0x14   : > { %v7165_v14 = vld [vmem:[%s7116_s30 + $0x10] sm:$0xff]  ;;  %v416_v15 = vld [vmem:[%s7116_s30 + $0x18] sm:$0xf]  ;;  %v295_v16 = vld [vmem:[%s7116_s30 + $0x68] sm:$0xf] }
  0x15   : > { %v297_v17 = vld [vmem:[%s7116_s30 + $0x78] sm:$0xf]  ;;  %v291_v18 = vld [vmem:[%s7116_s30 + $0x48] sm:$0xf] }
  0x16   : > { %v293_v19 = vld [vmem:[%s7116_s30 + $0x58] sm:$0xf]  ;;  %v287_v20 = vld [vmem:[%s7116_s30 + $0x28] sm:$0xf] }
  0x17   : > { %v289_v21 = vld [vmem:[%s7116_s30 + $0x38] sm:$0xf]  ;;  %v283_v22 = vld [vmem:[%s7116_s30 + $0x8] sm:$0xf] }
  0x18   : > { %475 = vrot.lane.b32.xlu1 %v428_v3, %s7044_s8  ;;  %471 = vrot.lane.b32.xlu0 %v426_v4, %s7044_s8  ;;  %v285_v23 = vld [vmem:[%s7116_s30 + $0x18] sm:$0xf]  ;;  %v942_v24 = vld [vmem:[%s7116_s30 + $0x68] sm:$0xf] }
  0x19   : > { %463 = vrot.lane.b32.xlu2 %v422_v5, %s7044_s8  ;;  %v944_v25 = vld [vmem:[%s7116_s30 + $0x78] sm:$0xf]  ;;  %v938_v27 = vld [vmem:[%s7116_s30 + $0x48] sm:$0xf] }
  0x1a   : > { %v940_v31 = vld [vmem:[%s7116_s30 + $0x58] sm:$0xf]  ;;  %v934_v33 = vld [vmem:[%s7116_s30 + $0x28] sm:$0xf] }
  0x1b   : > { %v936_v36 = vld [vmem:[%s7116_s30 + $0x38] sm:$0xf]  ;;  %v930_v40 = vld [vmem:[%s7116_s30 + $0x8] sm:$0xf] }
  0x1c   : > { %v932_v41 = vld [vmem:[%s7116_s30 + $0x18] sm:$0xf]  ;;  %v813_v51 = vld [vmem:[%s7116_s30 + $0x68] sm:$0xf] }
  0x1d   : > { %v815_v60 = vld [vmem:[%s7116_s30 + $0x78] sm:$0xf]  ;;  %v809_v63 = vld [vmem:[%s7116_s30 + $0x48] sm:$0xf] }
  0x20   : > { %467 = vrot.lane.b32.xlu1 %v424_v6, %s7044_s8  ;;  %465 = vrot.lane.b32.xlu0 %v7141_v7, %s7044_s8 }
  0x21   : > { %453 = vrot.lane.b32.xlu2 %v7144_v8, %s7044_s8 }
  0x28   : > { %457 = vrot.lane.b32.xlu1 %v7152_v9, %s7044_s8  ;;  %455 = vrot.lane.b32.xlu0 %v418_v10, %s7044_s8 }
  0x29   : > { %459 = vrot.lane.b32.xlu2 %v420_v11, %s7044_s8 }
  0x30   : > { %447 = vrot.lane.b32.xlu1 %v414_v12, %s7044_s8  ;;  %445 = vrot.lane.b32.xlu0 %v7162_v13, %s7044_s8 }
  0x31   : > { %449 = vrot.lane.b32.xlu2 %v7165_v14, %s7044_s8 }
  0x38   : > { %451 = vrot.lane.b32.xlu0 %v416_v15, %s7044_s8  ;;  %338 = vrot.lane.b32.xlu1 %v7122_v1, %s7045_s9 }
  0x39   : > { %340 = vrot.lane.b32.xlu2 %v295_v16, %s7045_s9 }
  0x40   : > { %342 = vrot.lane.b32.xlu0 %v7119_v0, %s7045_s9  ;;  %344 = vrot.lane.b32.xlu1 %v297_v17, %s7045_s9 }
  0x41   : > { %330 = vrot.lane.b32.xlu2 %v7129_v2, %s7045_s9 }
  0x48   : > { %334 = vrot.lane.b32.xlu1 %v7141_v7, %s7045_s9  ;;  %332 = vrot.lane.b32.xlu0 %v291_v18, %s7045_s9 }
  0x49   : > { %336 = vrot.lane.b32.xlu2 %v293_v19, %s7045_s9  ;;  %v811_v19 = vld [vmem:[%s7116_s30 + $0x58] sm:$0xf] }
  0x50   : > { %324 = vrot.lane.b32.xlu1 %v287_v20, %s7045_s9  ;;  %322 = vrot.lane.b32.xlu0 %v7144_v8, %s7045_s9 }
  0x51   : > { %326 = vrot.lane.b32.xlu2 %v7152_v9, %s7045_s9 }
  0x58   : > { %328 = vrot.lane.b32.xlu0 %v289_v21, %s7045_s9  ;;  %314 = vrot.lane.b32.xlu1 %v7162_v13, %s7045_s9 }
  0x59   : > { %316 = vrot.lane.b32.xlu2 %v283_v22, %s7045_s9 }
  0x60   : > { %318 = vrot.lane.b32.xlu0 %v7165_v14, %s7045_s9  ;;  %320 = vrot.lane.b32.xlu1 %v285_v23, %s7045_s9 }
  0x61   : > { %985 = vrot.lane.b32.xlu2 %v7122_v1, %s7046_s10 }
  0x68   : > { %987 = vrot.lane.b32.xlu0 %v942_v24, %s7046_s10  ;;  %989 = vrot.lane.b32.xlu1 %v7119_v0, %s7046_s10 }
  0x69   : > { %991 = vrot.lane.b32.xlu2 %v944_v25, %s7046_s10 }
  0x6b   : > { %v462_v26 = vpop.permute.xlu2 %461 }
  0x6c   : > { %v485_v28 = vrot.slane %v462_v26, 4 }
  0x70   : > { %977 = vrot.lane.b32.xlu0 %v7129_v2, %s7046_s10  ;;  %979 = vrot.lane.b32.xlu1 %v938_v27, %s7046_s10 }
  0x71   : > { %981 = vrot.lane.b32.xlu2 %v7141_v7, %s7046_s10 }
  0x73   : > { %v464_v29 = vpop.permute.xlu2 %463 }
  0x74   : > { %v486_v30 = vrot.slane %v464_v29, 4  ;;  %535 = vst.msk [vmem:[#allocation2 + $0x98] sm:$0xf] %vm397_vm0, %v464_v29 }
  0x76   : > { %v502_v32 = vsel %vm362_vm1, %v485_v28, %v486_v30 }
  0x77   : > { %v503_v34 = vsel %vm494_vm2, %v462_v26, %v502_v32 }
  0x78   : > { %983 = vrot.lane.b32.xlu0 %v940_v31, %s7046_s10  ;;  %969 = vrot.lane.b32.xlu1 %v7144_v8, %s7046_s10  ;;  %534 = vst [vmem:[#allocation2 + $0x90] sm:$0xff] %v503_v34  ;;  %v805_v31 = vld [vmem:[%s7116_s30 + $0x28] sm:$0xf] }
  0x79   : > { %971 = vrot.lane.b32.xlu2 %v934_v33, %s7046_s10 }
  0x7b   : > { %v7229_v35 = vpop.permute.xlu2 %453 }
  0x7c   : > { %v481_v11 = vrot.slane %v7229_v35, 4 }
  0x7f   : > { %v5774_v22 = vld [vmem:[#allocation2 + $0x90] sm:$0xf] }
  0x80   : > { %973 = vrot.lane.b32.xlu0 %v7152_v9, %s7046_s10  ;;  %975 = vrot.lane.b32.xlu1 %v936_v36, %s7046_s10  ;;  %v807_v36 = vld [vmem:[%s7116_s30 + $0x38] sm:$0xf] }
  0x81   : > { %961 = vrot.lane.b32.xlu2 %v7162_v13, %s7046_s10 }
  0x82   : > { %v474_v37 = vpop.permute.xlu1 %473  ;;  %v470_v38 = vpop.permute.xlu0 %469 }
  0x83   : > { %v460_v39 = vpop.permute.xlu2 %459  ;;  %v491_v44 = vrot.slane %v474_v37, 4  ;;  %v489_v45 = vrot.slane %v470_v38, 4 }
  0x84   : > { %533 = vst.msk [vmem:[#allocation2 + $0x8c] sm:$0xf] %vm397_vm0, %v460_v39  ;;  %v484_v5 = vrot.slane %v460_v39, 4 }
  0x88   : > { %963 = vrot.lane.b32.xlu0 %v930_v40, %s7046_s10  ;;  %965 = vrot.lane.b32.xlu1 %v7165_v14, %s7046_s10 }
  0x89   : > { %967 = vrot.lane.b32.xlu2 %v932_v41, %s7046_s10 }
  0x8a   : > { %v476_v42 = vpop.permute.xlu1 %475  ;;  %v472_v43 = vpop.permute.xlu0 %471 }
  0x8b   : > { %v492_v46 = vrot.slane %v476_v42, 4  ;;  %541 = vst.msk [vmem:[#allocation2 + $0xbc] sm:$0xf] %vm397_vm0, %v476_v42  ;;  %v490_v47 = vrot.slane %v472_v43, 4  ;;  %v7245_v48 = vpop.permute.xlu2 %449 }
  0x8c   : > { %539 = vst.msk [vmem:[#allocation2 + $0xb0] sm:$0xf] %vm397_vm0, %v472_v43  ;;  %v479_v40 = vrot.slane %v7245_v48, 4 }
  0x8d   : > { %v508_v49 = vsel %vm362_vm1, %v491_v44, %v492_v46  ;;  %v506_v50 = vsel %vm362_vm1, %v489_v45, %v490_v47  ;;  %v684_v46 = vld [vmem:[%s7116_s30 + $0x68] sm:$0xf] }
  0x8e   : > { %v509_v52 = vsel %vm494_vm2, %v474_v37, %v508_v49  ;;  %v507_v53 = vsel %vm494_vm2, %v470_v38, %v506_v50 }
  0x8f   : > { %540 = vst [vmem:[#allocation2 + $0xb4] sm:$0xff] %v509_v52 }
  0x90   : > { %538 = vst [vmem:[#allocation2 + $0xa8] sm:$0xff] %v507_v53  ;;  %856 = vrot.lane.b32.xlu0 %v7122_v1, %s7047_s11  ;;  %858 = vrot.lane.b32.xlu1 %v813_v51, %s7047_s11 }
  0x91   : > { %860 = vrot.lane.b32.xlu2 %v7119_v0, %s7047_s11 }
  0x92   : > { %v468_v54 = vpop.permute.xlu1 %467  ;;  %v466_v55 = vpop.permute.xlu0 %465 }
  0x93   : > { %v488_v56 = vrot.slane %v468_v54, 4  ;;  %537 = vst.msk [vmem:[#allocation2 + $0xa4] sm:$0xf] %vm397_vm0, %v468_v54  ;;  %v487_v57 = vrot.slane %v466_v55, 4  ;;  %v7259_v58 = vpop.permute.xlu2 %340 }
  0x94   : > { %410 = vst.msk [vmem:[#allocation2 + $0x50] sm:$0xf] %vm397_vm0, %v7259_v58  ;;  %v359_v37 = vrot.slane %v7259_v58, 4 }
  0x95   : > { %v504_v59 = vsel %vm362_vm1, %v487_v57, %v488_v56 }
  0x96   : > { %v505_v61 = vsel %vm494_vm2, %v466_v55, %v504_v59  ;;  %v6713_v62 = vld [vmem:[#allocation2 + $0xb0] sm:$0xf0]  ;;  %v686_v55 = vld [vmem:[%s7116_s30 + $0x78] sm:$0xf] }
  0x97   : > { %536 = vst [vmem:[#allocation2 + $0x9c] sm:$0xff] %v505_v61  ;;  %v5786_v3 = vld [vmem:[#allocation2 + $0xa8] sm:$0xf] }
  0x98   : > { %862 = vrot.lane.b32.xlu0 %v815_v60, %s7047_s11  ;;  %848 = vrot.lane.b32.xlu1 %v7129_v2, %s7047_s11  ;;  %v5787_v4 = vor.u32 %v6713_v62, %v5786_v3  ;;  %v801_v60 = vld [vmem:[%s7116_s30 + $0x8] sm:$0xf] }
  0x99   : > { %850 = vrot.lane.b32.xlu2 %v809_v63, %s7047_s11 }
  0x9a   : > { %2350 = vmatpush.bf16.msra.mxu0 %v5787_v4  ;;  %6927 = vmatpush.bf16.msra.mxu2 %v5787_v4  ;;  %v458_v6 = vpop.permute.xlu1 %457  ;;  %v456_v10 = vpop.permute.xlu0 %455 }
  0x9b   : > { %v483_v12 = vrot.slane %v458_v6, 4  ;;  %v482_v15 = vrot.slane %v456_v10, 4  ;;  %531 = vst.msk [vmem:[#allocation2 + $0x80] sm:$0xf] %vm397_vm0, %v456_v10  ;;  %v7273_v16 = vpop.permute.xlu2 %330 }
  0x9c   : > { %v354_v3 = vrot.slane %v7273_v16, 4 }
  0x9d   : > { %v498_v17 = vsel %vm362_vm1, %v481_v11, %v482_v15  ;;  %v500_v18 = vsel %vm362_vm1, %v483_v12, %v484_v5  ;;  %v803_v12 = vld [vmem:[%s7116_s30 + $0x18] sm:$0xf] }
  0x9e   : > { %v499_v20 = vsel %vm494_vm2, %v7229_v35, %v498_v17  ;;  %v501_v21 = vsel %vm494_vm2, %v458_v6, %v500_v18  ;;  %v6710_v23 = vld [vmem:[#allocation2 + $0x98] sm:$0xf0] }
  0x9f   : > { %530 = vst [vmem:[#allocation2 + $0x78] sm:$0xff] %v499_v20  ;;  %v5775_v24 = vor.u32 %v6710_v23, %v5774_v22 }
  0xa0   : > { %532 = vst [vmem:[#allocation2 + $0x84] sm:$0xff] %v501_v21  ;;  %852 = vrot.lane.b32.xlu0 %v7141_v7, %s7047_s11  ;;  %854 = vrot.lane.b32.xlu1 %v811_v19, %s7047_s11 }
  0xa1   : > { %2351 = vmatpush.bf16.msra.mxu0 %v5775_v24  ;;  %6928 = vmatpush.bf16.msra.mxu2 %v5775_v24 }
  0xa2   : > { %v448_v25 = vpop.permute.xlu1 %447  ;;  %v446_v26 = vpop.permute.xlu0 %445  ;;  %840 = vrot.lane.b32.xlu2 %v7144_v8, %s7047_s11 }
  0xa3   : > { %v478_v27 = vrot.slane %v448_v25, 4  ;;  %527 = vst.msk [vmem:[#allocation2 + $0x68] sm:$0xf] %vm397_vm0, %v448_v25  ;;  %v477_v28 = vrot.slane %v446_v26, 4  ;;  %v7287_v29 = vpop.permute.xlu2 %336 }
  0xa4   : > { %408 = vst.msk [vmem:[#allocation2 + $0x44] sm:$0xf] %vm397_vm0, %v7287_v29  ;;  %v357_v61 = vrot.slane %v7287_v29, 4 }
  0xa5   : > { %v493_v30 = vsel %vm362_vm1, %v477_v28, %v478_v27 }
  0xa6   : > { %v495_v32 = vsel %vm494_vm2, %v446_v26, %v493_v30  ;;  %v5762_v33 = vld [vmem:[#allocation2 + $0x78] sm:$0xf]  ;;  %v680_v26 = vld [vmem:[%s7116_s30 + $0x48] sm:$0xf] }
  0xa7   : > { %526 = vst [vmem:[#allocation2 + $0x60] sm:$0xff] %v495_v32  ;;  %v6707_v34 = vld [vmem:[#allocation2 + $0x80] sm:$0xf0] }
  0xa8   : > { %842 = vrot.lane.b32.xlu0 %v805_v31, %s7047_s11  ;;  %844 = vrot.lane.b32.xlu1 %v7152_v9, %s7047_s11  ;;  %v5763_v35 = vor.u32 %v6707_v34, %v5762_v33  ;;  %v682_v31 = vld [vmem:[%s7116_s30 + $0x58] sm:$0xf] }
  0xaa   : > { %2352 = vmatpush.bf16.msra.mxu0 %v5763_v35  ;;  %6929 = vmatpush.bf16.msra.mxu2 %v5763_v35  ;;  %v452_v38 = vpop.permute.xlu0 %451  ;;  %v339_v39 = vpop.permute.xlu1 %338 }
  0xab   : > { %v480_v41 = vrot.slane %v452_v38, 4  ;;  %529 = vst.msk [vmem:[#allocation2 + $0x74] sm:$0xf] %vm397_vm0, %v452_v38  ;;  %v358_v42 = vrot.slane %v339_v39, 4  ;;  %846 = vrot.lane.b32.xlu2 %v807_v36, %s7047_s11  ;;  %v7302_v43 = vpop.permute.xlu2 %326 }
  0xac   : > { %v352_v35 = vrot.slane %v7302_v43, 4 }
  0xad   : > { %v496_v44 = vsel %vm362_vm1, %v479_v40, %v480_v41  ;;  %v376_v45 = vsel %vm362_vm1, %v358_v42, %v359_v37  ;;  %v676_v41 = vld [vmem:[%s7116_s30 + $0x28] sm:$0xf] }
  0xae   : > { %v497_v47 = vsel %vm494_vm2, %v7245_v48, %v496_v44  ;;  %v377_v49 = vsel %vm364_vm3, %v339_v39, %v376_v45  ;;  %v5750_v57 = vld [vmem:[#allocation2 + $0x60] sm:$0xf] }
  0xaf   : > { %528 = vst [vmem:[#allocation2 + $0x6c] sm:$0xff] %v497_v47 }
  0xb0   : > { %409 = vst [vmem:[#allocation2 + $0x48] sm:$0xff] %v377_v49  ;;  %727 = vrot.lane.b32.xlu0 %v7122_v1, %s7048_s12  ;;  %729 = vrot.lane.b32.xlu1 %v684_v46, %s7048_s12 }
  0xb2   : > { %v343_v50 = vpop.permute.xlu0 %342  ;;  %v345_v51 = vpop.permute.xlu1 %344 }
  0xb3   : > { %v360_v52 = vrot.slane %v343_v50, 4  ;;  %v361_v53 = vrot.slane %v345_v51, 4  ;;  %412 = vst.msk [vmem:[#allocation2 + $0x5c] sm:$0xf] %vm397_vm0, %v345_v51  ;;  %731 = vrot.lane.b32.xlu2 %v7119_v0, %s7048_s12  ;;  %v7316_v48 = vpop.permute.xlu2 %316  ;;  %v678_v51 = vld [vmem:[%s7116_s30 + $0x38] sm:$0xf] }
  0xb4   : > { %398 = vst.msk [vmem:[#allocation2 + $0x8] sm:$0xf] %vm397_vm0, %v7316_v48  ;;  %v347_v32 = vrot.slane %v7316_v48, 4 }
  0xb5   : > { %v378_v54 = vsel %vm362_vm1, %v360_v52, %v361_v53 }
  0xb6   : > { %v379_v56 = vsel %vm364_vm3, %v343_v50, %v378_v54  ;;  %v6704_v58 = vld [vmem:[#allocation2 + $0x68] sm:$0xf0] }
  0xb7   : > { %411 = vst [vmem:[#allocation2 + $0x54] sm:$0xff] %v379_v56  ;;  %v5751_v59 = vor.u32 %v6704_v58, %v5750_v57  ;;  %v5738_v18 = vld [vmem:[#allocation2 + $0x48] sm:$0xf] }
  0xb8   : > { %733 = vrot.lane.b32.xlu0 %v686_v55, %s7048_s12  ;;  %832 = vrot.lane.b32.xlu1 %v7162_v13, %s7047_s11  ;;  %v672_v55 = vld [vmem:[%s7116_s30 + $0x8] sm:$0xf] }
  0xb9   : > { %2353 = vmatpush.bf16.msra.mxu0 %v5751_v59  ;;  %6930 = vmatpush.bf16.msra.mxu2 %v5751_v59 }
  0xba   : > { %v335_v62 = vpop.permute.xlu1 %334  ;;  %v333_v63 = vpop.permute.xlu0 %332 }
  0xbb   : > { %v356_v4 = vrot.slane %v335_v62, 4  ;;  %v355_v5 = vrot.slane %v333_v63, 4  ;;  %406 = vst.msk [vmem:[#allocation2 + $0x38] sm:$0xf] %vm397_vm0, %v333_v63  ;;  %834 = vrot.lane.b32.xlu2 %v801_v60, %s7047_s11  ;;  %v7331_v6 = vpop.permute.xlu2 %985 }
  0xbc   : > { %v1005_v59 = vrot.slane %v7331_v6, 4 }
  0xbd   : > { %v372_v10 = vsel %vm362_vm1, %v354_v3, %v355_v5  ;;  %v374_v11 = vsel %vm362_vm1, %v356_v4, %v357_v61  ;;  %v674_v4 = vld [vmem:[%s7116_s30 + $0x18] sm:$0xf] }
  0xbe   : > { %v373_v15 = vsel %vm364_vm3, %v7273_v16, %v372_v10  ;;  %v375_v17 = vsel %vm364_vm3, %v335_v62, %v374_v11  ;;  %v6701_v19 = vld [vmem:[#allocation2 + $0x50] sm:$0xf0] }
  0xbf   : > { %405 = vst [vmem:[#allocation2 + $0x30] sm:$0xff] %v373_v15  ;;  %v5739_v20 = vor.u32 %v6701_v19, %v5738_v18 }
  0xc0   : > { %407 = vst [vmem:[#allocation2 + $0x3c] sm:$0xff] %v375_v17  ;;  %836 = vrot.lane.b32.xlu0 %v7165_v14, %s7047_s11  ;;  %838 = vrot.lane.b32.xlu1 %v803_v12, %s7047_s11 }
  0xc1   : > { %2354 = vmatpush.bf16.msra.mxu0 %v5739_v20  ;;  %6931 = vmatpush.bf16.msra.mxu2 %v5739_v20 }
  0xc2   : > { %v325_v21 = vpop.permute.xlu1 %324  ;;  %v323_v22 = vpop.permute.xlu0 %322 }
  0xc3   : > { %v351_v23 = vrot.slane %v325_v21, 4  ;;  %402 = vst.msk [vmem:[#allocation2 + $0x20] sm:$0xf] %vm397_vm0, %v325_v21  ;;  %v350_v16 = vrot.slane %v323_v22, 4  ;;  %719 = vrot.lane.b32.xlu2 %v7129_v2, %s7048_s12  ;;  %v7345_v24 = vpop.permute.xlu2 %991 }
  0xc4   : > { %1057 = vst.msk [vmem:[#allocation2 + $0x23c] sm:$0xf] %vm397_vm0, %v7345_v24  ;;  %v1008_v56 = vrot.slane %v7345_v24, 4 }
  0xc5   : > { %v368_v25 = vsel %vm362_vm1, %v350_v16, %v351_v23 }
  0xc6   : > { %v369_v27 = vsel %vm364_vm3, %v323_v22, %v368_v25  ;;  %v5726_v28 = vld [vmem:[#allocation2 + $0x30] sm:$0xf]  ;;  %v555_v22 = vld [vmem:[%s7116_s30 + $0x68] sm:$0xf] }
  0xc7   : > { %401 = vst [vmem:[#allocation2 + $0x18] sm:$0xff] %v369_v27  ;;  %v6698_v29 = vld [vmem:[#allocation2 + $0x38] sm:$0xf0] }
  0xc8   : > { %721 = vrot.lane.b32.xlu0 %v680_v26, %s7048_s12  ;;  %723 = vrot.lane.b32.xlu1 %v7141_v7, %s7048_s12  ;;  %v5727_v30 = vor.u32 %v6698_v29, %v5726_v28  ;;  %v557_v26 = vld [vmem:[%s7116_s30 + $0x78] sm:$0xf] }
  0xca   : > { %2355 = vmatpush.bf16.msra.mxu0 %v5727_v30  ;;  %6932 = vmatpush.bf16.msra.mxu2 %v5727_v30  ;;  %v329_v33 = vpop.permute.xlu0 %328  ;;  %v315_v34 = vpop.permute.xlu1 %314 }
  0xcb   : > { %v353_v36 = vrot.slane %v329_v33, 4  ;;  %404 = vst.msk [vmem:[#allocation2 + $0x2c] sm:$0xf] %vm397_vm0, %v329_v33  ;;  %v346_v37 = vrot.slane %v315_v34, 4  ;;  %725 = vrot.lane.b32.xlu2 %v682_v31, %s7048_s12  ;;  %v7360_v38 = vpop.permute.xlu2 %981 }
  0xcc   : > { %v1003_v30 = vrot.slane %v7360_v38, 4 }
  0xcd   : > { %v370_v39 = vsel %vm362_vm1, %v352_v35, %v353_v36  ;;  %v363_v40 = vsel %vm362_vm1, %v346_v37, %v347_v32  ;;  %v551_v35 = vld [vmem:[%s7116_s30 + $0x48] sm:$0xf] }
  0xce   : > { %v371_v42 = vsel %vm364_vm3, %v7302_v43, %v370_v39  ;;  %v365_v44 = vsel %vm364_vm3, %v315_v34, %v363_v40  ;;  %v5714_v53 = vld [vmem:[#allocation2 + $0x18] sm:$0xf] }
  0xcf   : > { %403 = vst [vmem:[#allocation2 + $0x24] sm:$0xff] %v371_v42 }
  0xd0   : > { %396 = vst [vmem:[#allocation2] sm:$0xff] %v365_v44  ;;  %711 = vrot.lane.b32.xlu0 %v7144_v8, %s7048_s12  ;;  %713 = vrot.lane.b32.xlu1 %v676_v41, %s7048_s12 }
  0xd2   : > { %v319_v45 = vpop.permute.xlu0 %318  ;;  %v321_v46 = vpop.permute.xlu1 %320 }
  0xd3   : > { %v348_v47 = vrot.slane %v319_v45, 4  ;;  %v349_v49 = vrot.slane %v321_v46, 4  ;;  %400 = vst.msk [vmem:[#allocation2 + $0x14] sm:$0xf] %vm397_vm0, %v321_v46  ;;  %715 = vrot.lane.b32.xlu2 %v7152_v9, %s7048_s12  ;;  %v7374_v43 = vpop.permute.xlu2 %971 }
  0xd4   : > { %1047 = vst.msk [vmem:[#allocation2 + $0x200] sm:$0xf] %vm397_vm0, %v7374_v43  ;;  %v998_v27 = vrot.slane %v7374_v43, 4 }
  0xd5   : > { %v366_v50 = vsel %vm362_vm1, %v348_v47, %v349_v49 }
  0xd6   : > { %v367_v52 = vsel %vm364_vm3, %v319_v45, %v366_v50  ;;  %v6695_v48 = vld [vmem:[#allocation2 + $0x20] sm:$0xf0]  ;;  %v553_v45 = vld [vmem:[%s7116_s30 + $0x58] sm:$0xf]  ;;  %v547_v50 = vld [vmem:[%s7116_s30 + $0x28] sm:$0xf] }
  0xd7   : > { %399 = vst [vmem:[#allocation2 + $0xc] sm:$0xff] %v367_v52  ;;  %v5715_v54 = vor.u32 %v6695_v48, %v5714_v53  ;;  %v5702_v11 = vld [vmem:[#allocation2] sm:$0xf] }
  0xd8   : > { %717 = vrot.lane.b32.xlu0 %v678_v51, %s7048_s12  ;;  %703 = vrot.lane.b32.xlu1 %v7162_v13, %s7048_s12 }
  0xd9   : > { %2356 = vmatpush.bf16.msra.mxu0 %v5715_v54  ;;  %6933 = vmatpush.bf16.msra.mxu2 %v5715_v54 }
  0xda   : > { %v988_v57 = vpop.permute.xlu0 %987  ;;  %v990_v58 = vpop.permute.xlu1 %989 }
  0xdb   : > { %v1006_v60 = vrot.slane %v988_v57, 4  ;;  %1055 = vst.msk [vmem:[#allocation2 + $0x230] sm:$0xf] %vm397_vm0, %v988_v57  ;;  %v1007_v61 = vrot.slane %v990_v58, 4  ;;  %705 = vrot.lane.b32.xlu2 %v672_v55, %s7048_s12  ;;  %v7389_v62 = vpop.permute.xlu2 %961 }
  0xdc   : > { %v993_v48 = vrot.slane %v7389_v62, 4 }
  0xdd   : > { %v1022_v63 = vsel %vm362_vm1, %v1005_v59, %v1006_v60  ;;  %v1024_v3 = vsel %vm362_vm1, %v1007_v61, %v1008_v56 }
  0xde   : > { %v1023_v5 = vsel %vm1010_vm4, %v7331_v6, %v1022_v63  ;;  %v1025_v10 = vsel %vm1010_vm4, %v990_v58, %v1024_v3  ;;  %v6692_v12 = vld [vmem:[#allocation2 + $0x8] sm:$0xf0] }
  0xdf   : > { %1054 = vst [vmem:[#allocation2 + $0x228] sm:$0xff] %v1023_v5  ;;  %v5703_v15 = vor.u32 %v6692_v12, %v5702_v11  ;;  %v543_v12 = vld [vmem:[%s7116_s30 + $0x8] sm:$0xf] }
  0xe0   : > { %1056 = vst [vmem:[#allocation2 + $0x234] sm:$0xff] %v1025_v10  ;;  %707 = vrot.lane.b32.xlu0 %v7165_v14, %s7048_s12  ;;  %709 = vrot.lane.b32.xlu1 %v674_v4, %s7048_s12  ;;  %s281_s12 = sld [smem:[#allocation4]] }
  0xe1   : > { %2357 = vmatpush.bf16.msra.mxu0 %v5703_v15  ;;  %6934 = vmatpush.bf16.msra.mxu2 %v5703_v15 }
  0xe2   : > { %v978_v17 = vpop.permute.xlu0 %977  ;;  %v980_v18 = vpop.permute.xlu1 %979 }
  0xe3   : > { %v1001_v19 = vrot.slane %v978_v17, 4  ;;  %v1002_v6 = vrot.slane %v980_v18, 4  ;;  %1051 = vst.msk [vmem:[#allocation2 + $0x218] sm:$0xf] %vm397_vm0, %v980_v18  ;;  %598 = vrot.lane.b32.xlu2 %v7122_v1, %s7049_s13  ;;  %v968_v20 = vpop.permute.xlu2 %967 }
  0xe4   : > { %1045 = vst.msk [vmem:[#allocation2 + $0x1f4] sm:$0xf] %vm397_vm0, %v968_v20  ;;  %v996_v51 = vrot.slane %v968_v20, 4 }
  0xe5   : > { %v1018_v21 = vsel %vm362_vm1, %v1001_v19, %v1002_v6  ;;  %v545_v6 = vld [vmem:[%s7116_s30 + $0x18] sm:$0xf] }
  0xe6   : > { %v1019_v23 = vsel %vm1010_vm4, %v978_v17, %v1018_v21  ;;  %v5978_v16 = vld [vmem:[#allocation2 + $0x228] sm:$0xf] }
  0xe7   : > { %1050 = vst [vmem:[#allocation2 + $0x210] sm:$0xff] %v1019_v23  ;;  %v6761_v24 = vld [vmem:[#allocation2 + $0x230] sm:$0xf0] }
  0xe8   : > { %600 = vrot.lane.b32.xlu0 %v555_v22, %s7049_s13  ;;  %602 = vrot.lane.b32.xlu1 %v7119_v0, %s7049_s13  ;;  %v5979_v25 = vor.u32 %v6761_v24, %v5978_v16 }
  0xea   : > { %2408 = vmatpush.bf16.msrb.mxu2 %v5979_v25  ;;  %v984_v28 = vpop.permute.xlu0 %983  ;;  %v970_v29 = vpop.permute.xlu1 %969  ;;  %v1200_v25 = vld [vmem:[%s7116_s30 + $0x68] sm:$0xf] }
  0xeb   : > { %v1004_v31 = vrot.slane %v984_v28, 4  ;;  %1053 = vst.msk [vmem:[#allocation2 + $0x224] sm:$0xf] %vm397_vm0, %v984_v28  ;;  %v997_v32 = vrot.slane %v970_v29, 4  ;;  %604 = vrot.lane.b32.xlu2 %v557_v26, %s7049_s13  ;;  %v7415_v33 = vpop.permute.xlu2 %860 }
  0xec   : > { %v878_v22 = vrot.slane %v7415_v33, 4 }
  0xed   : > { %v1020_v34 = vsel %vm362_vm1, %v1003_v30, %v1004_v31  ;;  %v1014_v0 = vsel %vm362_vm1, %v997_v32, %v998_v27 }
  0xee   : > { %v1021_v36 = vsel %vm1010_vm4, %v7360_v38, %v1020_v34  ;;  %v1015_v37 = vsel %vm1010_vm4, %v970_v29, %v1014_v0  ;;  %v5966_v47 = vld [vmem:[#allocation2 + $0x210] sm:$0xf]  ;;  %v1202_v0 = vld [vmem:[%s7116_s30 + $0x78] sm:$0xf] }
  0xef   : > { %1052 = vst [vmem:[#allocation2 + $0x21c] sm:$0xff] %v1021_v36  ;;  %v7481_v29 = vld [vmem:[%s7116_s30 + $0x70] sm:$0xff] }
  0xf0   : > { %1046 = vst [vmem:[#allocation2 + $0x1f8] sm:$0xff] %v1015_v37  ;;  %590 = vrot.lane.b32.xlu0 %v7129_v2, %s7049_s13  ;;  %592 = vrot.lane.b32.xlu1 %v551_v35, %s7049_s13 }
  0xf2   : > { %v974_v39 = vpop.permute.xlu0 %973  ;;  %v976_v40 = vpop.permute.xlu1 %975 }
  0xf3   : > { %v999_v41 = vrot.slane %v974_v39, 4  ;;  %v1000_v42 = vrot.slane %v976_v40, 4  ;;  %1049 = vst.msk [vmem:[#allocation2 + $0x20c] sm:$0xf] %vm397_vm0, %v976_v40  ;;  %594 = vrot.lane.b32.xlu2 %v7141_v7, %s7049_s13  ;;  %v7429_v38 = vpop.permute.xlu2 %850  ;;  %v1196_v40 = vld [vmem:[%s7116_s30 + $0x48] sm:$0xf] }
  0xf4   : > { %922 = vst.msk [vmem:[#allocation2 + $0x1b8] sm:$0xf] %vm397_vm0, %v7429_v38 }
  0xf5   : > { %v1016_v44 = vsel %vm362_vm1, %v999_v41, %v1000_v42 }
  0xf6   : > { %v1017_v46 = vsel %vm1010_vm4, %v974_v39, %v1016_v44  ;;  %v6758_v49 = vld [vmem:[#allocation2 + $0x218] sm:$0xf0] }
  0xf7   : > { %1048 = vst [vmem:[#allocation2 + $0x204] sm:$0xff] %v1017_v46  ;;  %v5967_v43 = vor.u32 %v6758_v49, %v5966_v47  ;;  %v5954_v61 = vld [vmem:[#allocation2 + $0x1f8] sm:$0xf] }
  0xf8   : > { %596 = vrot.lane.b32.xlu0 %v553_v45, %s7049_s13  ;;  %582 = vrot.lane.b32.xlu1 %v7144_v8, %s7049_s13  ;;  %v549_v8 = vld [vmem:[%s7116_s30 + $0x38] sm:$0xf] }
  0xf9   : > { %2409 = vmatpush.bf16.msrb.mxu2 %v5967_v43  ;;  %v1198_v43 = vld [vmem:[%s7116_s30 + $0x58] sm:$0xf] }
  0xfa   : > { %v964_v52 = vpop.permute.xlu0 %963  ;;  %v966_v53 = vpop.permute.xlu1 %965 }
  0xfb   : > { %v994_v54 = vrot.slane %v964_v52, 4  ;;  %1043 = vst.msk [vmem:[#allocation2 + $0x1e8] sm:$0xf] %vm397_vm0, %v964_v52  ;;  %v995_v55 = vrot.slane %v966_v53, 4  ;;  %584 = vrot.lane.b32.xlu2 %v547_v50, %s7049_s13 }
  0xfc   : > { %v7443_v56 = vpop.permute.xlu2 %840 }
  0xfd   : > { %v1009_v57 = vsel %vm362_vm1, %v993_v48, %v994_v54  ;;  %v1012_v58 = vsel %vm362_vm1, %v995_v55, %v996_v51  ;;  %v868_v44 = vrot.slane %v7443_v56, 4  ;;  %v7512_v54 = vld [vmem:[%s7116_s30 + $0x20] sm:$0xff]  ;;  %v5662_v55 = vld [vmem:[%s9685_s2 + $0x50] sm:$0xf] }
  0xfe   : > { %v1011_v59 = vsel %vm1010_vm4, %v7389_v62, %v1009_v57  ;;  %v1013_v60 = vsel %vm1010_vm4, %v966_v53, %v1012_v58  ;;  %v6755_v63 = vld [vmem:[#allocation2 + $0x200] sm:$0xf0] }
  0xff   : > { %1042 = vst [vmem:[#allocation2 + $0x1e0] sm:$0xff] %v1011_v59  ;;  %v5955_v3 = vor.u32 %v6755_v63, %v5954_v61  ;;  %v1192_v61 = vld [vmem:[%s7116_s30 + $0x28] sm:$0xf]  ;;  %v7529_v63 = vld [vmem:[%s7116_s30 + $0x30] sm:$0xff] }
 0x100   : > { %1044 = vst [vmem:[#allocation2 + $0x1ec] sm:$0xff] %v1013_v60  ;;  %586 = vrot.lane.b32.xlu0 %v7152_v9, %s7049_s13  ;;  %588 = vrot.lane.b32.xlu1 %v549_v8, %s7049_s13 }
 0x101   : > { %2410 = vmatpush.bf16.msrb.mxu2 %v5955_v3 }
 0x102   : > { %v857_v4 = vpop.permute.xlu0 %856  ;;  %v859_v5 = vpop.permute.xlu1 %858 }
 0x103   : > { %v876_v10 = vrot.slane %v857_v4, 4  ;;  %v877_v62 = vrot.slane %v859_v5, 4  ;;  %926 = vst.msk [vmem:[#allocation2 + $0x1d0] sm:$0xf] %vm397_vm0, %v859_v5  ;;  %574 = vrot.lane.b32.xlu2 %v7162_v13, %s7049_s13  ;;  %v873_v13 = vrot.slane %v7429_v38, 4 }
 0x105   : > { %v893_v11 = vsel %vm362_vm1, %v876_v10, %v877_v62  ;;  %v847_v15 = vpop.permute.xlu2 %846 }
 0x106   : > { %v894_v9 = vsel %vm881_vm5, %v857_v4, %v893_v11  ;;  %v5942_v17 = vld [vmem:[#allocation2 + $0x1e0] sm:$0xf]  ;;  %920 = vst.msk [vmem:[#allocation2 + $0x1ac] sm:$0xf] %vm397_vm0, %v847_v15  ;;  %v871_v41 = vrot.slane %v847_v15, 4 }
 0x107   : > { %925 = vst [vmem:[#allocation2 + $0x1c8] sm:$0xff] %v894_v9  ;;  %v6752_v18 = vld [vmem:[#allocation2 + $0x1e8] sm:$0xf0]  ;;  %v1194_v11 = vld [vmem:[%s7116_s30 + $0x38] sm:$0xf] }
 0x108   : > { %576 = vrot.lane.b32.xlu0 %v543_v12, %s7049_s13  ;;  %578 = vrot.lane.b32.xlu1 %v7165_v14, %s7049_s13  ;;  %v5943_v19 = vor.u32 %v6752_v18, %v5942_v17 }
 0x10a   : > { %2411 = vmatpush.bf16.msrb.mxu2 %v5943_v19  ;;  %v863_v20 = vpop.permute.xlu0 %862  ;;  %v849_v21 = vpop.permute.xlu1 %848 }
 0x10b   : > { %v879_v23 = vrot.slane %v863_v20, 4  ;;  %928 = vst.msk [vmem:[#allocation2 + $0x1dc] sm:$0xf] %vm397_vm0, %v863_v20  ;;  %v872_v16 = vrot.slane %v849_v21, 4  ;;  %580 = vrot.lane.b32.xlu2 %v545_v6, %s7049_s13  ;;  %v7547_v20 = vld [vmem:[%s7116_s30] sm:$0xff] }
 0x10d   : > { %v895_v24 = vsel %vm362_vm1, %v878_v22, %v879_v23  ;;  %v889_v14 = vsel %vm362_vm1, %v872_v16, %v873_v13  ;;  %v7472_v26 = vpop.permute.xlu2 %731 }
 0x10e   : > { %v896_v27 = vsel %vm881_vm5, %v7415_v33, %v895_v24  ;;  %v890_v28 = vsel %vm881_vm5, %v849_v21, %v889_v14  ;;  %v5930_v36 = vld [vmem:[#allocation2 + $0x1c8] sm:$0xf]  ;;  %v749_v17 = vrot.slane %v7472_v26, 4  ;;  %v7559_v24 = vld [vmem:[%s7116_s30 + $0x10] sm:$0xff] }
 0x10f   : > { %927 = vst [vmem:[#allocation2 + $0x1d4] sm:$0xff] %v896_v27  ;;  %v1188_v21 = vld [vmem:[%s7116_s30 + $0x8] sm:$0xf] }
 0x110   : > { %921 = vst [vmem:[#allocation2 + $0x1b0] sm:$0xff] %v890_v28  ;;  %1243 = vrot.lane.b32.xlu0 %v7122_v1, %s7050_s14  ;;  %1245 = vrot.lane.b32.xlu1 %v1200_v25, %s7050_s14 }
 0x112   : > { %v853_v30 = vpop.permute.xlu0 %852  ;;  %v855_v31 = vpop.permute.xlu1 %854 }
 0x113   : > { %v874_v32 = vrot.slane %v853_v30, 4  ;;  %v875_v34 = vrot.slane %v855_v31, 4  ;;  %924 = vst.msk [vmem:[#allocation2 + $0x1c4] sm:$0xf] %vm397_vm0, %v855_v31  ;;  %1247 = vrot.lane.b32.xlu2 %v7481_v29, %s7050_s14  ;;  %v7567_v31 = vld [vmem:[%s7116_s30 + $0x60] sm:$0xff] }
 0x115   : > { %v891_v33 = vsel %vm362_vm1, %v874_v32, %v875_v34  ;;  %v7488_v35 = vpop.permute.xlu2 %834 }
 0x116   : > { %v892_v1 = vsel %vm881_vm5, %v853_v30, %v891_v33  ;;  %v6749_v37 = vld [vmem:[#allocation2 + $0x1d0] sm:$0xf0]  ;;  %914 = vst.msk [vmem:[#allocation2 + $0x188] sm:$0xf] %vm397_vm0, %v7488_v35  ;;  %v865_v12 = vrot.slane %v7488_v35, 4 }
 0x117   : > { %923 = vst [vmem:[#allocation2 + $0x1bc] sm:$0xff] %v892_v1  ;;  %v5931_v39 = vor.u32 %v6749_v37, %v5930_v36  ;;  %v5918_v52 = vld [vmem:[#allocation2 + $0x1b0] sm:$0xf]  ;;  %v1190_v30 = vld [vmem:[%s7116_s30 + $0x18] sm:$0xf] }
 0x118   : > { %1249 = vrot.lane.b32.xlu0 %v1202_v0, %s7050_s14  ;;  %1235 = vrot.lane.b32.xlu1 %v7129_v2, %s7050_s14  ;;  %v1071_v1 = vld [vmem:[%s7116_s30 + $0x68] sm:$0xf] }
 0x119   : > { %2412 = vmatpush.bf16.msrb.mxu2 %v5931_v39 }
 0x11a   : > { %v843_v42 = vpop.permute.xlu0 %842  ;;  %v845_v38 = vpop.permute.xlu1 %844 }
 0x11b   : > { %v869_v45 = vrot.slane %v843_v42, 4  ;;  %918 = vst.msk [vmem:[#allocation2 + $0x1a0] sm:$0xf] %vm397_vm0, %v843_v42  ;;  %v870_v46 = vrot.slane %v845_v38, 4  ;;  %1237 = vrot.lane.b32.xlu2 %v1196_v40, %s7050_s14 }
 0x11d   : > { %v885_v47 = vsel %vm362_vm1, %v868_v44, %v869_v45  ;;  %v887_v49 = vsel %vm362_vm1, %v870_v46, %v871_v41  ;;  %v7503_v2 = vpop.permute.xlu2 %719  ;;  %v1073_v45 = vld [vmem:[%s7116_s30 + $0x78] sm:$0xf] }
 0x11e   : > { %v886_v50 = vsel %vm881_vm5, %v7443_v56, %v885_v47  ;;  %v888_v51 = vsel %vm881_vm5, %v845_v38, %v887_v49  ;;  %v6746_v53 = vld [vmem:[#allocation2 + $0x1b8] sm:$0xf0]  ;;  %v6683_v56 = vld [vmem:[%s9685_s2 + $0x60] sm:$0xf0]  ;;  %v743_v40 = vrot.slane %v7503_v2, 4 }
 0x11f   : > { %917 = vst [vmem:[#allocation2 + $0x198] sm:$0xff] %v886_v50  ;;  %v5919_v48 = vor.u32 %v6746_v53, %v5918_v52  ;;  %v7520_v8 = vor.u32 %v6683_v56, %v5662_v55  ;;  %v7594_v55 = vld [vmem:[%s7116_s30 + $0x40] sm:$0xff] }
 0x120   : > { %919 = vst [vmem:[#allocation2 + $0x1a4] sm:$0xff] %v888_v51  ;;  %1239 = vrot.lane.b32.xlu0 %v7141_v7, %s7050_s14  ;;  %1241 = vrot.lane.b32.xlu1 %v1198_v43, %s7050_s14 }
 0x121   : > { %2413 = vmatpush.bf16.msrb.mxu2 %v5919_v48 }
 0x122   : > { %v728_v57 = vpop.permute.xlu0 %727  ;;  %v730_v58 = vpop.permute.xlu1 %729  ;;  %2368 = vmatmul.bf16.vlgmr.msra.gmra.mxu2 %v7520_v8 }
 0x123   : > { %v747_v7 = vrot.slane %v728_v57, 4  ;;  %v748_v59 = vrot.slane %v730_v58, 4  ;;  %797 = vst.msk [vmem:[#allocation2 + $0x170] sm:$0xf] %vm397_vm0, %v730_v58  ;;  %1227 = vrot.lane.b32.xlu2 %v7512_v54, %s7050_s14 }
 0x125   : > { %v764_v60 = vsel %vm362_vm1, %v747_v7, %v748_v59  ;;  %v7531_v3 = vpop.permute.xlu2 %725  ;;  %v1067_v59 = vld [vmem:[%s7116_s30 + $0x48] sm:$0xf] }
 0x126   : > { %v765_v4 = vsel %vm752_vm6, %v728_v57, %v764_v60  ;;  %v5906_v5 = vld [vmem:[#allocation2 + $0x198] sm:$0xf]  ;;  %795 = vst.msk [vmem:[#allocation2 + $0x164] sm:$0xf] %vm397_vm0, %v7531_v3  ;;  %v746_v36 = vrot.slane %v7531_v3, 4  ;;  %v7602_v60 = vld [vmem:[%s7116_s30 + $0x50] sm:$0xff] }
 0x127   : > { %796 = vst [vmem:[#allocation2 + $0x168] sm:$0xff] %v765_v4  ;;  %v6743_v10 = vld [vmem:[#allocation2 + $0x1a0] sm:$0xf0] }
 0x128   : > { %1229 = vrot.lane.b32.xlu0 %v1192_v61, %s7050_s14  ;;  %1231 = vrot.lane.b32.xlu1 %v7529_v63, %s7050_s14  ;;  %v5907_v62 = vor.u32 %v6743_v10, %v5906_v5 }
 0x12a   : > { %2414 = vmatpush.bf16.msrb.mxu2 %v5907_v62  ;;  %v734_v15 = vpop.permute.xlu0 %733  ;;  %v833_v9 = vpop.permute.xlu1 %832 }
 0x12b   : > { %v750_v18 = vrot.slane %v734_v15, 4  ;;  %799 = vst.msk [vmem:[#allocation2 + $0x17c] sm:$0xf] %vm397_vm0, %v734_v15  ;;  %v864_v19 = vrot.slane %v833_v9, 4  ;;  %1233 = vrot.lane.b32.xlu2 %v1194_v11, %s7050_s14  ;;  %v1069_v15 = vld [vmem:[%s7116_s30 + $0x58] sm:$0xf] }
 0x12d   : > { %v766_v6 = vsel %vm362_vm1, %v749_v17, %v750_v18  ;;  %v880_v13 = vsel %vm362_vm1, %v864_v19, %v865_v12  ;;  %v7550_v22 = vpop.permute.xlu2 %715 }
 0x12e   : > { %v767_v23 = vsel %vm752_vm6, %v7472_v26, %v766_v6  ;;  %v882_v16 = vsel %vm881_vm5, %v833_v9, %v880_v13  ;;  %v5882_v33 = vld [vmem:[#allocation2 + $0x168] sm:$0xf]  ;;  %v6736_v53 = vld [vmem:[#allocation2 + $0x16c] sm:$0xf]  ;;  %v741_v19 = vrot.slane %v7550_v22, 4 }
 0x12f   : > { %798 = vst [vmem:[#allocation2 + $0x174] sm:$0xff] %v767_v23 }
 0x130   : > { %913 = vst [vmem:[#allocation2 + $0x180] sm:$0xff] %v882_v16  ;;  %1219 = vrot.lane.b32.xlu0 %v7547_v20, %s7050_s14  ;;  %1221 = vrot.lane.b32.xlu1 %v1188_v21, %s7050_s14  ;;  %v1063_v16 = vld [vmem:[%s7116_s30 + $0x28] sm:$0xf] }
 0x132   : > { %v837_v14 = vpop.permute.xlu0 %836  ;;  %v839_v25 = vpop.permute.xlu1 %838 }
 0x133   : > { %v866_v27 = vrot.slane %v837_v14, 4  ;;  %v867_v28 = vrot.slane %v839_v25, 4  ;;  %916 = vst.msk [vmem:[#allocation2 + $0x194] sm:$0xf] %vm397_vm0, %v839_v25  ;;  %1223 = vrot.lane.b32.xlu2 %v7559_v24, %s7050_s14 }
 0x135   : > { %v883_v26 = vsel %vm362_vm1, %v866_v27, %v867_v28  ;;  %v7569_v32 = vpop.permute.xlu2 %705 }
 0x136   : > { %v884_v34 = vsel %vm881_vm5, %v837_v14, %v883_v26  ;;  %v6737_v0 = vld [vmem:[#allocation2 + $0x170] sm:$0xf0]  ;;  %785 = vst.msk [vmem:[#allocation2 + $0x128] sm:$0xf] %vm397_vm0, %v7569_v32  ;;  %v5884_v46 = vld [vmem:[#allocation2 + $0x174] sm:$0xf0] }
 0x137   : > { %915 = vst [vmem:[#allocation2 + $0x18c] sm:$0xff] %v884_v34  ;;  %v5883_v35 = vor.u32 %v6737_v0, %v5882_v33  ;;  %v5894_v50 = vld [vmem:[#allocation2 + $0x180] sm:$0xf]  ;;  %v5887_v48 = vor.u32 %v6736_v53, %v5884_v46  ;;  %v736_v9 = vrot.slane %v7569_v32, 4  ;;  %v1065_v34 = vld [vmem:[%s7116_s30 + $0x38] sm:$0xf] }
 0x138   : > { %1225 = vrot.lane.b32.xlu0 %v1190_v30, %s7050_s14  ;;  %1114 = vrot.lane.b32.xlu1 %v7567_v31, %s7051_s19  ;;  %v1331_v53 = vld [vmem:[%s7116_s30 + $0x78] sm:$0xf]  ;;  %s7054_s14 = smov 18  }
 0x139   : > { %2379 = vmatpush.bf16.msra.mxu1 %v5883_v35  ;;  %6935 = vmatpush.bf16.msra.mxu3 %v5883_v35 }
 0x13a   : > { %v722_v37 = vpop.permute.xlu0 %721  ;;  %v724_v39 = vpop.permute.xlu1 %723 }
 0x13b   : > { %v744_v41 = vrot.slane %v722_v37, 4  ;;  %793 = vst.msk [vmem:[#allocation2 + $0x158] sm:$0xf] %vm397_vm0, %v722_v37  ;;  %v745_v42 = vrot.slane %v724_v39, 4  ;;  %1116 = vrot.lane.b32.xlu2 %v1071_v1, %s7051_s19 }
 0x13d   : > { %v760_v38 = vsel %vm362_vm1, %v743_v40, %v744_v41  ;;  %v762_v44 = vsel %vm362_vm1, %v745_v42, %v746_v36  ;;  %v7585_v47 = vpop.permute.xlu2 %598  ;;  %v1329_v41 = vld [vmem:[%s7116_s30 + $0x68] sm:$0xf] }
 0x13e   : > { %v761_v49 = vsel %vm752_vm6, %v7503_v2, %v760_v38  ;;  %v763_v43 = vsel %vm752_vm6, %v724_v39, %v762_v44  ;;  %v6740_v51 = vld [vmem:[#allocation2 + $0x188] sm:$0xf0]  ;;  %v5682_v38 = vld [vmem:[%s9685_s2 + $0x78] sm:$0xf] }
 0x13f   : > { %792 = vst [vmem:[#allocation2 + $0x150] sm:$0xff] %v761_v49  ;;  %v5895_v52 = vor.u32 %v6740_v51, %v5894_v50  ;;  %v6688_v44 = vld [vmem:[%s9685_s2 + $0x88] sm:$0xf0]  ;;  %v618_v49 = vrot.slane %v7585_v47, 4 }
 0x140   : > { %794 = vst [vmem:[#allocation2 + $0x15c] sm:$0xff] %v763_v43  ;;  %1118 = vrot.lane.b32.xlu0 %v7481_v29, %s7051_s19  ;;  %1120 = vrot.lane.b32.xlu1 %v1073_v45, %s7051_s19  ;;  %v7649_v46 = vor.u32 %v6688_v44, %v5682_v38 }
 0x141   : > { %2415 = vmatpush.bf16.msrb.mxu2 %v5895_v52 }
 0x142   : > { %v712_v2 = vpop.permute.xlu0 %711  ;;  %v714_v56 = vpop.permute.xlu1 %713  ;;  %2373 = vmatmul.bf16.gmra.mxu2 %v7649_v46 }
 0x143   : > { %v739_v57 = vrot.slane %v712_v2, 4  ;;  %v740_v58 = vrot.slane %v714_v56, 4  ;;  %789 = vst.msk [vmem:[#allocation2 + $0x140] sm:$0xf] %vm397_vm0, %v714_v56  ;;  %1106 = vrot.lane.b32.xlu2 %v7594_v55, %s7051_s19 }
 0x145   : > { %2524 = vmatpush.bf16.msra.mxu2 %v5887_v48  ;;  %v756_v7 = vsel %vm362_vm1, %v739_v57, %v740_v58  ;;  %v7604_v61 = vpop.permute.xlu2 %604 }
 0x146   : > { %v757_v3 = vsel %vm752_vm6, %v712_v2, %v756_v7  ;;  %v5870_v4 = vld [vmem:[#allocation2 + $0x150] sm:$0xf]  ;;  %v6733_v5 = vld [vmem:[#allocation2 + $0x154] sm:$0xf]  ;;  %670 = vst.msk [vmem:[#allocation2 + $0x11c] sm:$0xf] %vm397_vm0, %v7604_v61 }
 0x147   : > { %788 = vst [vmem:[#allocation2 + $0x138] sm:$0xff] %v757_v3  ;;  %v6734_v10 = vld [vmem:[#allocation2 + $0x158] sm:$0xf0]  ;;  %v5872_v62 = vld [vmem:[#allocation2 + $0x15c] sm:$0xf0]  ;;  %v621_v42 = vrot.slane %v7604_v61, 4 }
 0x148   : > { %1108 = vrot.lane.b32.xlu0 %v1067_v59, %s7051_s19  ;;  %1110 = vrot.lane.b32.xlu1 %v7602_v60, %s7051_s19  ;;  %v5871_v11 = vor.u32 %v6734_v10, %v5870_v4  ;;  %v5875_v12 = vor.u32 %v6733_v5, %v5872_v62 }
 0x14a   : > { %2380 = vmatpush.bf16.msra.mxu1 %v5871_v11  ;;  %6936 = vmatpush.bf16.msra.mxu3 %v5871_v11  ;;  %v718_v17 = vpop.permute.xlu0 %717  ;;  %v704_v18 = vpop.permute.xlu1 %703  ;;  %v1059_v11 = vld [vmem:[%s7116_s30 + $0x8] sm:$0xf] }
 0x14b   : > { %2525 = vmatpush.bf16.msra.mxu2 %v5875_v12  ;;  %v742_v6 = vrot.slane %v718_v17, 4  ;;  %791 = vst.msk [vmem:[#allocation2 + $0x14c] sm:$0xf] %vm397_vm0, %v718_v17  ;;  %v735_v13 = vrot.slane %v704_v18, 4  ;;  %1112 = vrot.lane.b32.xlu2 %v1069_v15, %s7051_s19 }
 0x14d   : > { %v758_v21 = vsel %vm362_vm1, %v741_v19, %v742_v6  ;;  %v751_v23 = vsel %vm362_vm1, %v735_v13, %v736_v9  ;;  %v7620_v14 = vpop.permute.xlu2 %594  ;;  %v1061_v13 = vld [vmem:[%s7116_s30 + $0x18] sm:$0xf] }
 0x14e   : > { %v759_v25 = vsel %vm752_vm6, %v7550_v22, %v758_v21  ;;  %v753_v27 = vsel %vm752_vm6, %v704_v18, %v751_v23  ;;  %v5858_v33 = vld [vmem:[#allocation2 + $0x138] sm:$0xf]  ;;  %v6730_v36 = vld [vmem:[#allocation2 + $0x13c] sm:$0xf]  ;;  %v5630_v23 = vld [vmem:[%s9685_s2 + $0x8] sm:$0xf] }
 0x14f   : > { %790 = vst [vmem:[#allocation2 + $0x144] sm:$0xff] %v759_v25 }
 0x150   : > { %784 = vst [vmem:[#allocation2 + $0x120] sm:$0xff] %v753_v27  ;;  %1098 = vrot.lane.b32.xlu0 %v7512_v54, %s7051_s19  ;;  %1100 = vrot.lane.b32.xlu1 %v1063_v16, %s7051_s19  ;;  %v6674_v16 = vld [vmem:[%s9685_s2 + $0x18] sm:$0xf0] }
 0x152   : > { %v708_v28 = vpop.permute.xlu0 %707  ;;  %v710_v26 = vpop.permute.xlu1 %709 }
 0x153   : > { %v737_v30 = vrot.slane %v708_v28, 4  ;;  %v738_v32 = vrot.slane %v710_v26, 4  ;;  %787 = vst.msk [vmem:[#allocation2 + $0x134] sm:$0xf] %vm397_vm0, %v710_v26  ;;  %1102 = vrot.lane.b32.xlu2 %v7529_v63, %s7051_s19  ;;  %v616_v26 = vrot.slane %v7620_v14, 4 }
 0x155   : > { %v754_v22 = vsel %vm362_vm1, %v737_v30, %v738_v32  ;;  %v7633_v0 = vpop.permute.xlu2 %584 }
 0x156   : > { %v755_v35 = vsel %vm752_vm6, %v708_v28, %v754_v22  ;;  %v6731_v1 = vld [vmem:[#allocation2 + $0x140] sm:$0xf0]  ;;  %v5860_v37 = vld [vmem:[#allocation2 + $0x144] sm:$0xf0]  ;;  %660 = vst.msk [vmem:[#allocation2 + $0xe0] sm:$0xf] %vm397_vm0, %v7633_v0  ;;  %v7687_v28 = vor.u32 %v6674_v16, %v5630_v23 }
 0x157   : > { %786 = vst [vmem:[#allocation2 + $0x12c] sm:$0xff] %v755_v35  ;;  %v5859_v39 = vor.u32 %v6731_v1, %v5858_v33  ;;  %v5863_v40 = vor.u32 %v6730_v36, %v5860_v37  ;;  %v5846_v48 = vld [vmem:[#allocation2 + $0x120] sm:$0xf]  ;;  %v6727_v7 = vld [vmem:[#allocation2 + $0x124] sm:$0xf]  ;;  %v611_v21 = vrot.slane %v7633_v0, 4 }
 0x158   : > { %1104 = vrot.lane.b32.xlu0 %v1065_v34, %s7051_s19  ;;  %1372 = vrot.lane.b32.xlu1 %v7567_v31, %s7052_s20  ;;  %v1325_v33 = vld [vmem:[%s7116_s30 + $0x48] sm:$0xf] }
 0x159   : > { %2381 = vmatpush.bf16.msra.mxu1 %v5859_v39  ;;  %6937 = vmatpush.bf16.msra.mxu3 %v5859_v39 }
 0x15a   : > { %2526 = vmatpush.bf16.msra.mxu2 %v5863_v40  ;;  %v601_v45 = vpop.permute.xlu0 %600  ;;  %v603_v31 = vpop.permute.xlu1 %602 }
 0x15b   : > { %v619_v43 = vrot.slane %v601_v45, 4  ;;  %668 = vst.msk [vmem:[#allocation2 + $0x110] sm:$0xf] %vm397_vm0, %v601_v45  ;;  %v620_v50 = vrot.slane %v603_v31, 4  ;;  %1374 = vrot.lane.b32.xlu2 %v1329_v41, %s7052_s20  ;;  %2416 = vmatmul.bf16.vlgmr.msrb.gmra.mxu2 %v7687_v28  ;;  %v1327_v41 = vld [vmem:[%s7116_s30 + $0x58] sm:$0xf] }
 0x15d   : > { %v635_v51 = vsel %vm362_vm1, %v618_v49, %v619_v43  ;;  %v637_v52 = vsel %vm362_vm1, %v620_v50, %v621_v42  ;;  %v7658_v2 = vpop.permute.xlu2 %574 }
 0x15e   : > { %v636_v56 = vsel %vm623_vm7, %v7585_v47, %v635_v51  ;;  %v638_v57 = vsel %vm623_vm7, %v603_v31, %v637_v52  ;;  %v6728_v58 = vld [vmem:[#allocation2 + $0x128] sm:$0xf0]  ;;  %v5848_v59 = vld [vmem:[#allocation2 + $0x12c] sm:$0xf0] }
 0x15f   : > { %667 = vst [vmem:[#allocation2 + $0x108] sm:$0xff] %v636_v56  ;;  %v5847_v61 = vor.u32 %v6728_v58, %v5846_v48  ;;  %v5851_v3 = vor.u32 %v6727_v7, %v5848_v59  ;;  %v1323_v58 = vld [vmem:[%s7116_s30 + $0x38] sm:$0xf] }
 0x160   : > { %669 = vst [vmem:[#allocation2 + $0x114] sm:$0xff] %v638_v57  ;;  %1376 = vrot.lane.b32.xlu0 %v7481_v29, %s7052_s20  ;;  %1378 = vrot.lane.b32.xlu1 %v1331_v53, %s7052_s20  ;;  %v606_v53 = vrot.slane %v7658_v2, 4 }
 0x161   : > { %2382 = vmatpush.bf16.msra.mxu1 %v5847_v61  ;;  %6938 = vmatpush.bf16.msra.mxu3 %v5847_v61 }
 0x162   : > { %2527 = vmatpush.bf16.msra.mxu2 %v5851_v3  ;;  %v591_v4 = vpop.permute.xlu0 %590  ;;  %v593_v47 = vpop.permute.xlu1 %592 }
 0x163   : > { %v614_v5 = vrot.slane %v591_v4, 4  ;;  %v615_v10 = vrot.slane %v593_v47, 4  ;;  %664 = vst.msk [vmem:[#allocation2 + $0xf8] sm:$0xf] %vm397_vm0, %v593_v47  ;;  %1090 = vrot.lane.b32.xlu2 %v7547_v20, %s7051_s19 }
 0x165   : > { %v631_v62 = vsel %vm362_vm1, %v614_v5, %v615_v10  ;;  %v7671_v12 = vpop.permute.xlu2 %580 }
 0x166   : > { %v632_v29 = vsel %vm623_vm7, %v591_v4, %v631_v62  ;;  %v5834_v15 = vld [vmem:[#allocation2 + $0x108] sm:$0xf]  ;;  %v6724_v9 = vld [vmem:[#allocation2 + $0x10c] sm:$0xf]  ;;  %658 = vst.msk [vmem:[#allocation2 + $0xd4] sm:$0xf] %vm397_vm0, %v7671_v12 }
 0x167   : > { %663 = vst [vmem:[#allocation2 + $0xf0] sm:$0xff] %v632_v29  ;;  %v6725_v17 = vld [vmem:[#allocation2 + $0x110] sm:$0xf0]  ;;  %v5836_v18 = vld [vmem:[#allocation2 + $0x114] sm:$0xf0]  ;;  %v609_v50 = vrot.slane %v7671_v12, 4 }
 0x168   : > { %1092 = vrot.lane.b32.xlu0 %v1059_v11, %s7051_s19  ;;  %1094 = vrot.lane.b32.xlu1 %v7559_v24, %s7051_s19  ;;  %v5835_v19 = vor.u32 %v6725_v17, %v5834_v15  ;;  %v5839_v6 = vor.u32 %v6724_v9, %v5836_v18  ;;  %v5650_v11 = vld [vmem:[%s9685_s2 + $0x30] sm:$0xf]  ;;  %v6679_v12 = vld [vmem:[%s9685_s2 + $0x40] sm:$0xf0] }
 0x169   : > { %v1317_v18 = vld [vmem:[%s7116_s30 + $0x8] sm:$0xf] }
 0x16a   : > { %2383 = vmatpush.bf16.msra.mxu1 %v5835_v19  ;;  %6939 = vmatpush.bf16.msra.mxu3 %v5835_v19  ;;  %v597_v25 = vpop.permute.xlu0 %596  ;;  %v583_v27 = vpop.permute.xlu1 %582  ;;  %v5788_v19 = vld [vmem:[#allocation2 + $0xb4] sm:$0xf0] }
 0x16b   : > { %2528 = vmatpush.bf16.msra.mxu2 %v5839_v6  ;;  %v617_v30 = vrot.slane %v597_v25, 4  ;;  %666 = vst.msk [vmem:[#allocation2 + $0x104] sm:$0xf] %vm397_vm0, %v597_v25  ;;  %v610_v32 = vrot.slane %v583_v27, 4  ;;  %1096 = vrot.lane.b32.xlu2 %v1061_v13, %s7051_s19  ;;  %v5794_v6 = vld [vmem:[#allocation2 + $0xb0] sm:$0xf] }
 0x16c   : > { %v6714_v13 = vld [vmem:[#allocation2 + $0xb8] sm:$0xf0] }
 0x16d   : > { %v633_v22 = vsel %vm362_vm1, %v616_v26, %v617_v30  ;;  %v627_v34 = vsel %vm362_vm1, %v610_v32, %v611_v21  ;;  %v7696_v0 = vpop.permute.xlu2 %1247 }
 0x16e   : > { %v634_v35 = vsel %vm623_vm7, %v7620_v14, %v633_v22  ;;  %v628_v1 = vsel %vm623_vm7, %v583_v27, %v627_v34  ;;  %v5822_v42 = vld [vmem:[#allocation2 + $0xf0] sm:$0xf]  ;;  %v6721_v45 = vld [vmem:[#allocation2 + $0xf4] sm:$0xf]  ;;  %v6712_v27 = vld [vmem:[#allocation2 + $0xac] sm:$0xf] }
 0x16f   : > { %665 = vst [vmem:[#allocation2 + $0xfc] sm:$0xff] %v634_v35  ;;  %v5791_v34 = vor.u32 %v6712_v27, %v5788_v19  ;;  %v6700_v19 = vld [vmem:[#allocation2 + $0x4c] sm:$0xf] }
 0x170   : > { %659 = vst [vmem:[#allocation2 + $0xd8] sm:$0xff] %v628_v1  ;;  %1364 = vrot.lane.b32.xlu0 %v7594_v55, %s7052_s20  ;;  %1366 = vrot.lane.b32.xlu1 %v1325_v33, %s7052_s20  ;;  %v1319_v33 = vld [vmem:[%s7116_s30 + $0x18] sm:$0xf]  ;;  %v5795_v1 = vor.u32 %v6714_v13, %v5794_v6 }
 0x172   : > { %v587_v36 = vpop.permute.xlu0 %586  ;;  %v589_v37 = vpop.permute.xlu1 %588 }
 0x173   : > { %v612_v39 = vrot.slane %v587_v36, 4  ;;  %v613_v40 = vrot.slane %v589_v37, 4  ;;  %662 = vst.msk [vmem:[#allocation2 + $0xec] sm:$0xf] %vm397_vm0, %v589_v37  ;;  %1368 = vrot.lane.b32.xlu2 %v7602_v60, %s7052_s20  ;;  %v1321_v60 = vld [vmem:[%s7116_s30 + $0x28] sm:$0xf] }
 0x174   : > { %v5776_v37 = vld [vmem:[#allocation2 + $0x9c] sm:$0xf0] }
 0x175   : > { %v629_v14 = vsel %vm362_vm1, %v612_v39, %v613_v40  ;;  %v7709_v38 = vpop.permute.xlu2 %1237  ;;  %v6711_v39 = vld [vmem:[#allocation2 + $0xa0] sm:$0xf0]  ;;  %v1265_v40 = vrot.slane %v7696_v0, 4 }
 0x176   : > { %v630_v55 = vsel %vm623_vm7, %v587_v36, %v629_v14  ;;  %v6722_v44 = vld [vmem:[#allocation2 + $0xf8] sm:$0xf0]  ;;  %v5824_v31 = vld [vmem:[#allocation2 + $0xfc] sm:$0xf0]  ;;  %1309 = vst.msk [vmem:[#allocation2 + $0x2d8] sm:$0xf] %vm397_vm0, %v7709_v38 }
 0x177   : > { %661 = vst [vmem:[#allocation2 + $0xe4] sm:$0xff] %v630_v55  ;;  %v5823_v49 = vor.u32 %v6722_v44, %v5822_v42  ;;  %v5827_v43 = vor.u32 %v6721_v45, %v5824_v31  ;;  %v5810_v7 = vld [vmem:[#allocation2 + $0xd8] sm:$0xf]  ;;  %v6718_v47 = vld [vmem:[#allocation2 + $0xdc] sm:$0xf]  ;;  %v1260_v22 = vrot.slane %v7709_v38, 4 }
 0x178   : > { %1370 = vrot.lane.b32.xlu0 %v1327_v41, %s7052_s20  ;;  %1356 = vrot.lane.b32.xlu1 %v7512_v54, %s7052_s20  ;;  %v6709_v41 = vld [vmem:[#allocation2 + $0x94] sm:$0xf]  ;;  %v5782_v44 = vld [vmem:[#allocation2 + $0x98] sm:$0xf]  ;;  %v6708_v45 = vld [vmem:[#allocation2 + $0x88] sm:$0xf0] }
 0x179   : > { %2384 = vmatpush.bf16.msra.mxu1 %v5823_v49  ;;  %6940 = vmatpush.bf16.msra.mxu3 %v5823_v49  ;;  %v5779_v55 = vor.u32 %v6709_v41, %v5776_v37 }
 0x17a   : > { %2529 = vmatpush.bf16.msra.mxu2 %v5827_v43  ;;  %v577_v51 = vpop.permute.xlu0 %576  ;;  %v579_v52 = vpop.permute.xlu1 %578 }
 0x17b   : > { %v607_v48 = vrot.slane %v577_v51, 4  ;;  %656 = vst.msk [vmem:[#allocation2 + $0xc8] sm:$0xf] %vm397_vm0, %v577_v51  ;;  %v608_v56 = vrot.slane %v579_v52, 4  ;;  %1358 = vrot.lane.b32.xlu2 %v1321_v60, %s7052_s20  ;;  %v5783_v60 = vor.u32 %v6711_v39, %v5782_v44  ;;  %v5764_v51 = vld [vmem:[#allocation2 + $0x84] sm:$0xf0] }
 0x17c   : > { %v6689_v44 = vld [vmem:[%s9685_s2 + $0x90] sm:$0xf0] }
 0x17d   : > { %v622_v54 = vsel %vm362_vm1, %v606_v53, %v607_v48  ;;  %v625_v57 = vsel %vm362_vm1, %v608_v56, %v609_v50  ;;  %v7725_v59 = vpop.permute.xlu2 %1227  ;;  %v6706_v50 = vld [vmem:[#allocation2 + $0x7c] sm:$0xf]  ;;  %v5670_v53 = vld [vmem:[%s9685_s2 + $0x58] sm:$0xf]  ;;  %v6684_v48 = vld [vmem:[%s9685_s2 + $0x68] sm:$0xf0] }
 0x17e   : > { %v624_v61 = vsel %vm623_vm7, %v7658_v2, %v622_v54  ;;  %v626_v3 = vsel %vm623_vm7, %v579_v52, %v625_v57  ;;  %v6719_v4 = vld [vmem:[#allocation2 + $0xe0] sm:$0xf0]  ;;  %v5812_v5 = vld [vmem:[#allocation2 + $0xe4] sm:$0xf0]  ;;  %v7739_v2 = vor.u32 %v6679_v12, %v5650_v11  ;;  %v5770_v52 = vld [vmem:[#allocation2 + $0x80] sm:$0xf]  ;;  %v7773_v56 = vor.u32 %v6684_v48, %v5670_v53 }
 0x17f   : > { %655 = vst [vmem:[#allocation2 + $0xc0] sm:$0xff] %v624_v61  ;;  %v5811_v10 = vor.u32 %v6719_v4, %v5810_v7  ;;  %v5815_v62 = vor.u32 %v6718_v47, %v5812_v5  ;;  %v5771_v57 = vor.u32 %v6708_v45, %v5770_v52  ;;  %v5752_v7 = vld [vmem:[#allocation2 + $0x6c] sm:$0xf0]  ;;  %v6705_v4 = vld [vmem:[#allocation2 + $0x70] sm:$0xf0] }
 0x180   : > { %657 = vst [vmem:[#allocation2 + $0xcc] sm:$0xff] %v626_v3  ;;  %1360 = vrot.lane.b32.xlu0 %v7529_v63, %s7052_s20  ;;  %1362 = vrot.lane.b32.xlu1 %v1323_v58, %s7052_s20  ;;  %v6703_v47 = vld [vmem:[#allocation2 + $0x64] sm:$0xf]  ;;  %v5740_v11 = vld [vmem:[#allocation2 + $0x54] sm:$0xf0] }
 0x181   : > { %2385 = vmatpush.bf16.msra.mxu1 %v5811_v10  ;;  %6941 = vmatpush.bf16.msra.mxu3 %v5811_v10  ;;  %v5755_v10 = vor.u32 %v6703_v47, %v5752_v7  ;;  %v5743_v13 = vor.u32 %v6700_v19, %v5740_v11  ;;  %v5704_v48 = vld [vmem:[#allocation2 + $0xc] sm:$0xf0]  ;;  %v6691_v7 = vld [vmem:[#allocation2 + $0x4] sm:$0xf] }
 0x182   : > { %2530 = vmatpush.bf16.msra.mxu2 %v5815_v62  ;;  %v1244_v29 = vpop.permute.xlu0 %1243  ;;  %v1246_v15 = vpop.permute.xlu1 %1245  ;;  %v5758_v62 = vld [vmem:[#allocation2 + $0x68] sm:$0xf] }
 0x183   : > { %v1263_v9 = vrot.slane %v1244_v29, 4  ;;  %v1264_v17 = vrot.slane %v1246_v15, 4  ;;  %1313 = vst.msk [vmem:[#allocation2 + $0x2f0] sm:$0xf] %vm397_vm0, %v1246_v15  ;;  %1348 = vrot.lane.b32.xlu2 %v7547_v20, %s7052_s20  ;;  %2421 = vmatmul.bf16.gmra.mxu2 %v7739_v2  ;;  %v5759_v15 = vor.u32 %v6705_v4, %v5758_v62  ;;  %v5710_v4 = vld [vmem:[#allocation2 + $0x8] sm:$0xf] }
 0x185   : > { %v1280_v63 = vsel %vm362_vm1, %v1263_v9, %v1264_v17  ;;  %v7747_v21 = vpop.permute.xlu2 %1233 }
 0x186   : > { %v1281_v23 = vsel %vm1268_vm8, %v1244_v29, %v1280_v63  ;;  %v5798_v16 = vld [vmem:[#allocation2 + $0xc0] sm:$0xf]  ;;  %v6715_v25 = vld [vmem:[#allocation2 + $0xc4] sm:$0xf]  ;;  %1307 = vst.msk [vmem:[#allocation2 + $0x2cc] sm:$0xf] %vm397_vm0, %v7747_v21 }
 0x187   : > { %1312 = vst [vmem:[#allocation2 + $0x2e8] sm:$0xff] %v1281_v23  ;;  %v6716_v26 = vld [vmem:[#allocation2 + $0xc8] sm:$0xf0]  ;;  %v5800_v30 = vld [vmem:[#allocation2 + $0xcc] sm:$0xf0]  ;;  %v1258_v6 = vrot.slane %v7747_v21, 4 }
 0x188   : > { %1350 = vrot.lane.b32.xlu0 %v1317_v18, %s7052_s20  ;;  %1352 = vrot.lane.b32.xlu1 %v7559_v24, %s7052_s20  ;;  %v5799_v20 = vor.u32 %v6716_v26, %v5798_v16  ;;  %v5803_v32 = vor.u32 %v6715_v25, %v5800_v30  ;;  %v6702_v18 = vld [vmem:[#allocation2 + $0x58] sm:$0xf0]  ;;  %v5746_v23 = vld [vmem:[#allocation2 + $0x50] sm:$0xf]  ;;  %v6699_v16 = vld [vmem:[#allocation2 + $0x40] sm:$0xf0] }
 0x189   : > { %v5747_v27 = vor.u32 %v6702_v18, %v5746_v23  ;;  %v6697_v30 = vld [vmem:[#allocation2 + $0x34] sm:$0xf] }
 0x18a   : > { %2386 = vmatpush.bf16.msra.mxu1 %v5799_v20  ;;  %6942 = vmatpush.bf16.msra.mxu3 %v5799_v20  ;;  %v1250_v35 = vpop.permute.xlu0 %1249  ;;  %v1236_v36 = vpop.permute.xlu1 %1235  ;;  %v5728_v20 = vld [vmem:[#allocation2 + $0x3c] sm:$0xf0] }
 0x18b   : > { %2531 = vmatpush.bf16.msra.mxu2 %v5803_v32  ;;  %v1266_v24 = vrot.slane %v1250_v35, 4  ;;  %1315 = vst.msk [vmem:[#allocation2 + $0x2fc] sm:$0xf] %vm397_vm0, %v1250_v35  ;;  %v1259_v14 = vrot.slane %v1236_v36, 4  ;;  %1354 = vrot.lane.b32.xlu2 %v1319_v33, %s7052_s20  ;;  %v5734_v32 = vld [vmem:[#allocation2 + $0x38] sm:$0xf] }
 0x18d   : > { %v1282_v42 = vsel %vm362_vm1, %v1265_v40, %v1266_v24  ;;  %v1276_v38 = vsel %vm362_vm1, %v1259_v14, %v1260_v22  ;;  %v7762_v31 = vpop.permute.xlu2 %1223  ;;  %v1255_v22 = vrot.slane %v7725_v59, 4  ;;  %v5735_v24 = vor.u32 %v6699_v16, %v5734_v32  ;;  %v1613_v32 = vld [vmem:[%s9686_s3] sm:$0xff] }
 0x18e   : > { %2495 = vmatpush.bf16.msrb.mxu1 %v5791_v34  ;;  %v1283_v49 = vsel %vm1268_vm8, %v7696_v0, %v1282_v42  ;;  %v1277_v43 = vsel %vm1268_vm8, %v1236_v36, %v1276_v38  ;;  %v5767_v0 = vor.u32 %v6706_v50, %v5764_v51  ;;  %v6074_v9 = vld [vmem:[#allocation2 + $0x2e8] sm:$0xf]  ;;  %v6696_v36 = vld [vmem:[#allocation2 + $0x28] sm:$0xf0]  ;;  %v1253_v19 = vrot.slane %v7762_v31, 4 }
 0x18f   : > { %2640 = vmatpush.bf16.msrb.mxu2 %v5795_v1  ;;  %1314 = vst [vmem:[#allocation2 + $0x2f4] sm:$0xff] %v1283_v49  ;;  %v5731_v1 = vor.u32 %v6697_v30, %v5728_v20  ;;  %v5716_v42 = vld [vmem:[#allocation2 + $0x24] sm:$0xf0]  ;;  %v5624_v30 = vld [vmem:[%s9685_s2 + $0x14] sm:$0xf0] }
 0x190   : > { %1308 = vst [vmem:[#allocation2 + $0x2d0] sm:$0xff] %v1277_v43  ;;  %v5722_v43 = vld [vmem:[#allocation2 + $0x20] sm:$0xf]  ;;  %v5664_v50 = vld [vmem:[%s9685_s2 + $0x64] sm:$0xf0] }
 0x191   : > { %v5723_v52 = vor.u32 %v6696_v36, %v5722_v43 }
 0x192   : > { %2496 = vmatpush.bf16.msrb.mxu1 %v5779_v55  ;;  %v1240_v54 = vpop.permute.xlu0 %1239  ;;  %v1242_v58 = vpop.permute.xlu1 %1241  ;;  %v5690_v55 = vld [vmem:[%s9685_s2 + $0x80] sm:$0xf] }
 0x193   : > { %2641 = vmatpush.bf16.msrb.mxu2 %v5783_v60  ;;  %v1261_v61 = vrot.slane %v1240_v54, 4  ;;  %v1262_v3 = vrot.slane %v1242_v58, 4  ;;  %1311 = vst.msk [vmem:[#allocation2 + $0x2e4] sm:$0xf] %vm397_vm0, %v1242_v58  ;;  %v7799_v45 = vor.u32 %v6689_v44, %v5690_v55  ;;  %v6681_v60 = vld [vmem:[%s9685_s2 + $0x54] sm:$0xf] }
 0x194   : > { %2426 = vmatmul.bf16.gmra.mxu2 %v7773_v56  ;;  %v6693_v58 = vld [vmem:[#allocation2 + $0x10] sm:$0xf0]  ;;  %v1618_v55 = vld [vmem:[%s9686_s3 + $0x28] sm:$0xff] }
 0x195   : > { %v1278_v5 = vsel %vm362_vm1, %v1261_v61, %v1262_v3  ;;  %v7778_v12 = vpop.permute.xlu2 %1116  ;;  %v5707_v3 = vor.u32 %v6691_v7, %v5704_v48 }
 0x196   : > { %2497 = vmatpush.bf16.msrb.mxu1 %v5767_v0  ;;  %v1279_v29 = vsel %vm1268_vm8, %v1240_v54, %v1278_v5  ;;  %v6785_v17 = vld [vmem:[#allocation2 + $0x2f0] sm:$0xf0]  ;;  %1184 = vst.msk [vmem:[#allocation2 + $0x290] sm:$0xf] %vm397_vm0, %v7778_v12  ;;  %v7807_v0 = vor.u32 %v6681_v60, %v5664_v50 }
 0x197   : > { %2642 = vmatpush.bf16.msrb.mxu2 %v5771_v57  ;;  %1310 = vst [vmem:[#allocation2 + $0x2dc] sm:$0xff] %v1279_v29  ;;  %v6075_v63 = vor.u32 %v6785_v17, %v6074_v9  ;;  %v6062_v14 = vld [vmem:[#allocation2 + $0x2d0] sm:$0xf]  ;;  %v1614_v9 = vld [vmem:[%s9686_s3 + $0x8] sm:$0xff]  ;;  %v1135_v17 = vrot.slane %v7778_v12, 4 }
 0x198   : > { %2397 = vmatmul.bf16.vlgmr.msra.gmra.mxu3 %v7807_v0 }
 0x199   : > { %2437 = vmatpush.bf16.msrb.mxu3 %v6075_v63 }
 0x19a   : > { %2498 = vmatpush.bf16.msrb.mxu1 %v5755_v10  ;;  %v1230_v25 = vpop.permute.xlu0 %1229  ;;  %v1232_v26 = vpop.permute.xlu1 %1231  ;;  %v5711_v10 = vor.u32 %v6693_v58, %v5710_v4 }
 0x19b   : > { %2643 = vmatpush.bf16.msrb.mxu2 %v5759_v15  ;;  %v1256_v34 = vrot.slane %v1230_v25, 4  ;;  %1305 = vst.msk [vmem:[#allocation2 + $0x2c0] sm:$0xf] %vm397_vm0, %v1230_v25  ;;  %v1257_v33 = vrot.slane %v1232_v26, 4  ;;  %v7053_v15 = vmov 0  }
 0x19c   : > { %6968 = vset.pattern.permute.xlu1 %v7053_v15  ;;  %6967 = vset.pattern.permute.xlu0 %v7053_v15 }
 0x19d   : > { %v1272_v35 = vsel %vm362_vm1, %v1255_v22, %v1256_v34  ;;  %v1274_v21 = vsel %vm362_vm1, %v1257_v33, %v1258_v6  ;;  %v7788_v37 = vpop.permute.xlu2 %1106  ;;  %1628 = vperm.xlu1 %6968, %v1614_v9   ;;  %6969 = vset.pattern.permute.xlu2 %v7053_v15  ;;  %v6686_v22 = vld [vmem:[%s9685_s2 + $0x7c] sm:$0xf]  ;;  %v5684_v34 = vld [vmem:[%s9685_s2 + $0x8c] sm:$0xf0] }
 0x19e   : > { %2499 = vmatpush.bf16.msrb.mxu1 %v5743_v13  ;;  %v1273_v39 = vsel %vm1268_vm8, %v7725_v59, %v1272_v35  ;;  %v1275_v40 = vsel %vm1268_vm8, %v1232_v26, %v1274_v21  ;;  %v6782_v41 = vld [vmem:[#allocation2 + $0x2d8] sm:$0xf0]  ;;  %v6671_v26 = vld [vmem:[%s9685_s2 + $0x4] sm:$0xf]  ;;  %1623 = vperm.xlu0 %6967, %v1613_v32   ;;  %v7854_v21 = vor.u32 %v6686_v22, %v5684_v34  ;;  %v1130_v43 = vrot.slane %v7788_v37, 4 }
 0x19f   : > { %2644 = vmatpush.bf16.msrb.mxu2 %v5747_v27  ;;  %1304 = vst [vmem:[#allocation2 + $0x2b8] sm:$0xff] %v1273_v39  ;;  %v6063_v38 = vor.u32 %v6782_v41, %v6062_v14  ;;  %v6694_v59 = vld [vmem:[#allocation2 + $0x1c] sm:$0xf]  ;;  %v7840_v20 = vor.u32 %v6671_v26, %v5624_v30 }
 0x1a0   : > { %1306 = vst [vmem:[#allocation2 + $0x2c4] sm:$0xff] %v1275_v40  ;;  %v5719_v49 = vor.u32 %v6694_v59, %v5716_v42 }
 0x1a1   : > { %2438 = vmatpush.bf16.msrb.mxu3 %v6063_v38  ;;  %2387 = vmatmul.bf16.vlgmr.msra.gmra.mxu1 %v7840_v20  ;;  %v1617_v38 = vld [vmem:[%s9686_s3 + $0x20] sm:$0xff] }
 0x1a2   : > { %2500 = vmatpush.bf16.msrb.mxu1 %v5731_v1  ;;  %v1220_v51 = vpop.permute.xlu0 %1219  ;;  %v1222_v53 = vpop.permute.xlu1 %1221 }
 0x1a3   : > { %2645 = vmatpush.bf16.msrb.mxu2 %v5735_v24  ;;  %v1251_v54 = vrot.slane %v1220_v51, 4  ;;  %v1252_v57 = vrot.slane %v1222_v53, 4  ;;  %1301 = vst.msk [vmem:[#allocation2 + $0x2a8] sm:$0xf] %vm397_vm0, %v1222_v53 }
 0x1a4   : > { %2431 = vmatmul.bf16.gmra.mxu2 %v7799_v45 }
 0x1a5   : > { %v1267_v61 = vsel %vm362_vm1, %v1251_v54, %v1252_v57  ;;  %v7813_v47 = vpop.permute.xlu2 %1112 }
 0x1a6   : > { %2501 = vmatpush.bf16.msrb.mxu1 %v5719_v49  ;;  %v1269_v5 = vsel %vm1268_vm8, %v1220_v51, %v1267_v61  ;;  %v6050_v62 = vld [vmem:[#allocation2 + $0x2b8] sm:$0xf]  ;;  %1182 = vst.msk [vmem:[#allocation2 + $0x284] sm:$0xf] %vm397_vm0, %v7813_v47  ;;  %v1133_v44 = vrot.slane %v7813_v47, 4  ;;  %1643 = vperm.xlu0 %6967, %v1617_v38  }
 0x1a7   : > { %2646 = vmatpush.bf16.msrb.mxu2 %v5723_v52  ;;  %1300 = vst [vmem:[#allocation2 + $0x2a0] sm:$0xff] %v1269_v5  ;;  %v6779_v11 = vld [vmem:[#allocation2 + $0x2c0] sm:$0xf0]  ;;  %v6676_v61 = vld [vmem:[%s9685_s2 + $0x2c] sm:$0xf] }
 0x1a8   : > { %v6051_v29 = vor.u32 %v6779_v11, %v6050_v62  ;;  %2402 = vmatmul.bf16.gmra.mxu3 %v7854_v21  ;;  %v6673_v47 = vld [vmem:[%s9685_s2 + $0x10] sm:$0xf0] }
 0x1aa   : > { %2502 = vmatpush.bf16.msrb.mxu1 %v5707_v3  ;;  %2439 = vmatpush.bf16.msrb.mxu3 %v6051_v29  ;;  %v1226_v63 = vpop.permute.xlu0 %1225  ;;  %v1115_v18 = vpop.permute.xlu1 %1114  ;;  %v5644_v3 = vld [vmem:[%s9685_s2 + $0x3c] sm:$0xf0] }
 0x1ab   : > { %2647 = vmatpush.bf16.msrb.mxu2 %v5711_v10  ;;  %v1254_v6 = vrot.slane %v1226_v63, 4  ;;  %1303 = vst.msk [vmem:[#allocation2 + $0x2b4] sm:$0xf] %vm397_vm0, %v1226_v63  ;;  %v1134_v13 = vrot.slane %v1115_v18, 4  ;;  %v7888_v4 = vor.u32 %v6676_v61, %v5644_v3  ;;  %v7942_v3 = vpop.f32.mrf.mxu2 }
 0x1ad   : > { %v1270_v23 = vsel %vm362_vm1, %v1253_v19, %v1254_v6  ;;  %v1151_v16 = vsel %vm362_vm1, %v1134_v13, %v1135_v17  ;;  %v7829_v12 = vpop.permute.xlu2 %1102 }
 0x1ae   : > { %v1271_v25 = vsel %vm1268_vm8, %v7762_v31, %v1270_v23  ;;  %v1152_v27 = vsel %vm1139_vm9, %v1115_v18, %v1151_v16  ;;  %v1619_v31 = vld [vmem:[%s9686_s3 + $0x30] sm:$0xff]  ;;  %v6038_v14 = vld [vmem:[#allocation2 + $0x2a0] sm:$0xf] }
 0x1af   : > { %1302 = vst [vmem:[#allocation2 + $0x2ac] sm:$0xff] %v1271_v25  ;;  %1653 = vperm.xlu1 %6968, %v1619_v31   ;;  %v1128_v25 = vrot.slane %v7829_v12, 4 }
 0x1b0   : > { %1183 = vst [vmem:[#allocation2 + $0x288] sm:$0xff] %v1152_v27 }
 0x1b1   : > { %2392 = vmatmul.bf16.gmra.mxu1 %v7888_v4 }
 0x1b2   : > { %v1119_v33 = vpop.permute.xlu0 %1118  ;;  %v1121_v35 = vpop.permute.xlu1 %1120 }
 0x1b3   : > { %v1136_v1 = vrot.slane %v1119_v33, 4  ;;  %v1137_v36 = vrot.slane %v1121_v35, 4  ;;  %1186 = vst.msk [vmem:[#allocation2 + $0x29c] sm:$0xf] %vm397_vm0, %v1121_v35  ;;  %v6678_v35 = vld [vmem:[%s9685_s2 + $0x38] sm:$0xf0] }
 0x1b4   : > { %2532 = vmatmul.bf16.vlgmr.msra.gmra.mxu2 %v7840_v20 }
 0x1b5   : > { %v1153_v39 = vsel %vm362_vm1, %v1136_v1, %v1137_v36  ;;  %v7861_v40 = vpop.permute.xlu2 %1374 }
 0x1b6   : > { %v1154_v24 = vsel %vm1139_vm9, %v1119_v33, %v1153_v39  ;;  %v6776_v41 = vld [vmem:[#allocation2 + $0x2a8] sm:$0xf0]  ;;  %1442 = vst.msk [vmem:[#allocation2 + $0x350] sm:$0xf] %vm397_vm0, %v7861_v40  ;;  %v1393_v13 = vrot.slane %v7861_v40, 4 }
 0x1b7   : > { %1185 = vst [vmem:[#allocation2 + $0x294] sm:$0xff] %v1154_v24  ;;  %v6039_v42 = vor.u32 %v6776_v41, %v6038_v14  ;;  %1648 = vperm.xlu1 %6968, %v1618_v55   ;;  %v6026_v57 = vld [vmem:[#allocation2 + $0x288] sm:$0xf] }
 0x1b8   : > { %v5642_v33 = vld [vmem:[%s9685_s2 + $0x28] sm:$0xf] }
 0x1b9   : > { %2440 = vmatpush.bf16.msrb.mxu3 %v6039_v42  ;;  %v7921_v39 = vor.u32 %v6678_v35, %v5642_v33 }
 0x1ba   : > { %v1109_v59 = vpop.permute.xlu0 %1108  ;;  %v1111_v49 = vpop.permute.xlu1 %1110 }
 0x1bb   : > { %v1131_v60 = vrot.slane %v1109_v59, 4  ;;  %1180 = vst.msk [vmem:[#allocation2 + $0x278] sm:$0xf] %vm397_vm0, %v1109_v59  ;;  %v1132_v50 = vrot.slane %v1111_v49, 4 }
 0x1bd   : > { %v1147_v51 = vsel %vm362_vm1, %v1130_v43, %v1131_v60  ;;  %v1149_v52 = vsel %vm362_vm1, %v1132_v50, %v1133_v44  ;;  %v7877_v53 = vpop.permute.xlu2 %1090  ;;  %v1615_v44 = vld [vmem:[%s9686_s3 + $0x10] sm:$0xff] }
 0x1be   : > { %v1148_v48 = vsel %vm1139_vm9, %v7788_v37, %v1147_v51  ;;  %v1150_v54 = vsel %vm1139_vm9, %v1111_v49, %v1149_v52  ;;  %v6773_v58 = vld [vmem:[#allocation2 + $0x290] sm:$0xf0]  ;;  %v5622_v37 = vld [vmem:[%s9685_s2] sm:$0xf]  ;;  %1633 = vperm.xlu2 %6969, %v1615_v44   ;;  %v6130_v60 = vld [vmem:[#allocation2 + $0x350] sm:$0xf] }
 0x1bf   : > { %1179 = vst [vmem:[#allocation2 + $0x270] sm:$0xff] %v1148_v48  ;;  %v6027_v7 = vor.u32 %v6773_v58, %v6026_v57  ;;  %v7896_v62 = vor.u32 %v6673_v47, %v5622_v37  ;;  %v1122_v51 = vrot.slane %v7877_v53, 4 }
 0x1c0   : > { %1181 = vst [vmem:[#allocation2 + $0x27c] sm:$0xff] %v1150_v54 }
 0x1c1   : > { %2441 = vmatpush.bf16.msrb.mxu3 %v6027_v7  ;;  %2358 = vmatmul.bf16.vlgmr.msra.gmra.mxu0 %v7896_v62 }
 0x1c2   : > { %v1099_v5 = vpop.permute.xlu0 %1098  ;;  %v1101_v10 = vpop.permute.xlu1 %1100  ;;  %2503 = vmatmul.bf16.vlgmr.msrb.gmra.mxu1 %v7896_v62 }
 0x1c3   : > { %v1126_v11 = vrot.slane %v1099_v5, 4  ;;  %v1127_v29 = vrot.slane %v1101_v10, 4  ;;  %1176 = vst.msk [vmem:[#allocation2 + $0x260] sm:$0xf] %vm397_vm0, %v1101_v10 }
 0x1c4   : > { %2537 = vmatmul.bf16.gmra.mxu2 %v7888_v4 }
 0x1c5   : > { %v1143_v9 = vsel %vm362_vm1, %v1126_v11, %v1127_v29  ;;  %v1097_v17 = vpop.permute.xlu2 %1096 }
 0x1c6   : > { %v1144_v63 = vsel %vm1139_vm9, %v1099_v5, %v1143_v9  ;;  %v6014_v18 = vld [vmem:[#allocation2 + $0x270] sm:$0xf]  ;;  %1174 = vst.msk [vmem:[#allocation2 + $0x254] sm:$0xf] %vm397_vm0, %v1097_v17  ;;  %v1125_v59 = vrot.slane %v1097_v17, 4  ;;  %v1620_v17 = vld [vmem:[%s9686_s3 + $0x38] sm:$0xff] }
 0x1c7   : > { %1175 = vst [vmem:[#allocation2 + $0x258] sm:$0xff] %v1144_v63  ;;  %v6770_v19 = vld [vmem:[#allocation2 + $0x278] sm:$0xf0]  ;;  %1658 = vperm.xlu2 %6969, %v1620_v17   ;;  %v5652_v17 = vld [vmem:[%s9685_s2 + $0x44] sm:$0xf0] }
 0x1c8   : > { %v6015_v6 = vor.u32 %v6770_v19, %v6014_v18 }
 0x1ca   : > { %2442 = vmatpush.bf16.msrb.mxu3 %v6015_v6  ;;  %v1105_v23 = vpop.permute.xlu0 %1104  ;;  %v1373_v16 = vpop.permute.xlu1 %1372 }
 0x1cb   : > { %v1129_v27 = vrot.slane %v1105_v23, 4  ;;  %1178 = vst.msk [vmem:[#allocation2 + $0x26c] sm:$0xf] %vm397_vm0, %v1105_v23  ;;  %v1392_v26 = vrot.slane %v1373_v16, 4  ;;  %v5980_v23 = vld [vmem:[#allocation2 + $0x234] sm:$0xf0] }
 0x1cd   : > { %v1145_v30 = vsel %vm362_vm1, %v1128_v25, %v1129_v27  ;;  %v1409_v32 = vsel %vm362_vm1, %v1392_v26, %v1393_v13  ;;  %v7910_v31 = vpop.permute.xlu2 %1368  ;;  %v6760_v13 = vld [vmem:[#allocation2 + $0x22c] sm:$0xf]  ;;  %v5632_v26 = vld [vmem:[%s9685_s2 + $0x1c] sm:$0xf0] }
 0x1ce   : > { %v1146_v22 = vsel %vm1139_vm9, %v7829_v12, %v1145_v30  ;;  %v1410_v34 = vsel %vm1397_vm10, %v1373_v16, %v1409_v32  ;;  %v6002_v42 = vld [vmem:[#allocation2 + $0x258] sm:$0xf]  ;;  %v6672_v27 = vld [vmem:[%s9685_s2 + $0xc] sm:$0xf]  ;;  %v5983_v35 = vor.u32 %v6760_v13, %v5980_v23 }
 0x1cf   : > { %1177 = vst [vmem:[#allocation2 + $0x264] sm:$0xff] %v1146_v22  ;;  %v7963_v22 = vpop.f32.mrf.mxu2  ;;  %v6748_v13 = vld [vmem:[#allocation2 + $0x1cc] sm:$0xf] }
 0x1d0   : > { %1441 = vst [vmem:[#allocation2 + $0x348] sm:$0xff] %v1410_v34 }
 0x1d1   : > { %2363 = vmatmul.bf16.gmra.mxu0 %v7921_v39 }
 0x1d2   : > { %v1377_v1 = vpop.permute.xlu0 %1376  ;;  %v1379_v36 = vpop.permute.xlu1 %1378  ;;  %2508 = vmatmul.bf16.gmra.mxu1 %v7921_v39 }
 0x1d3   : > { %v1394_v40 = vrot.slane %v1377_v1, 4  ;;  %v1395_v12 = vrot.slane %v1379_v36, 4  ;;  %1444 = vst.msk [vmem:[#allocation2 + $0x35c] sm:$0xf] %vm397_vm0, %v1379_v36 }
 0x1d4   : > { %2542 = vmatmul.bf16.gmra.mxu2 %v7807_v0 }
 0x1d5   : > { %v1411_v24 = vsel %vm362_vm1, %v1394_v40, %v1395_v12  ;;  %v7928_v14 = vpop.permute.xlu2 %1358  ;;  %v5968_v12 = vld [vmem:[#allocation2 + $0x21c] sm:$0xf0] }
 0x1d6   : > { %v1412_v41 = vsel %vm1397_vm10, %v1377_v1, %v1411_v24  ;;  %v6767_v38 = vld [vmem:[#allocation2 + $0x260] sm:$0xf0]  ;;  %1434 = vst.msk [vmem:[#allocation2 + $0x320] sm:$0xf] %vm397_vm0, %v7928_v14  ;;  %v1385_v33 = vrot.slane %v7928_v14, 4  ;;  %v7968_v1 = vor.u32 %v6672_v27, %v5632_v26  ;;  %v1390_v24 = vrot.slane %v7910_v31, 4 }
 0x1d7   : > { %1443 = vst [vmem:[#allocation2 + $0x354] sm:$0xff] %v1412_v41  ;;  %v6003_v55 = vor.u32 %v6767_v38, %v6002_v42  ;;  %v6122_v7 = vld [vmem:[#allocation2 + $0x348] sm:$0xf]  ;;  %v6796_v10 = vld [vmem:[#allocation2 + $0x34c] sm:$0xf] }
 0x1d8   : > { %v6757_v38 = vld [vmem:[#allocation2 + $0x214] sm:$0xf] }
 0x1d9   : > { %2443 = vmatpush.bf16.msrb.mxu3 %v6003_v55  ;;  %v5971_v14 = vor.u32 %v6757_v38, %v5968_v12 }
 0x1da   : > { %v1093_v49 = vpop.permute.xlu0 %1092  ;;  %v1095_v43 = vpop.permute.xlu1 %1094  ;;  %v6798_v50 = vld [vmem:[#allocation2 + $0x358] sm:$0xf0] }
 0x1db   : > { %v1123_v52 = vrot.slane %v1093_v49, 4  ;;  %1172 = vst.msk [vmem:[#allocation2 + $0x248] sm:$0xf] %vm397_vm0, %v1093_v49  ;;  %v1124_v48 = vrot.slane %v1095_v43, 4  ;;  %v6131_v54 = vor.u32 %v6798_v50, %v6130_v60  ;;  %v6754_v60 = vld [vmem:[#allocation2 + $0x1fc] sm:$0xf] }
 0x1dd   : > { %v1138_v57 = vsel %vm362_vm1, %v1122_v51, %v1123_v52  ;;  %v1141_v58 = vsel %vm362_vm1, %v1124_v48, %v1125_v59  ;;  %2760 = vmatpush.bf16.msra.mxu2 %v6131_v54  ;;  %v7940_v61 = vpop.permute.xlu2 %1348  ;;  %v6751_v51 = vld [vmem:[#allocation2 + $0x1e4] sm:$0xf]  ;;  %v7978_v52 = vpop.f32.mrf.mxu2 }
 0x1de   : > { %v1140_v37 = vsel %vm1139_vm9, %v7877_v53, %v1138_v57  ;;  %v1142_v47 = vsel %vm1139_vm9, %v1095_v43, %v1141_v58  ;;  %v6797_v5 = vld [vmem:[#allocation2 + $0x350] sm:$0xf0]  ;;  %v6124_v11 = vld [vmem:[#allocation2 + $0x354] sm:$0xf0]  ;;  %v5956_v43 = vld [vmem:[#allocation2 + $0x204] sm:$0xf0] }
 0x1df   : > { %1171 = vst [vmem:[#allocation2 + $0x240] sm:$0xff] %v1140_v37  ;;  %v6123_v29 = vor.u32 %v6797_v5, %v6122_v7  ;;  %v6127_v9 = vor.u32 %v6796_v10, %v6124_v11  ;;  %v5959_v50 = vor.u32 %v6754_v60, %v5956_v43  ;;  %v5944_v7 = vld [vmem:[#allocation2 + $0x1ec] sm:$0xf0]  ;;  %v5932_v5 = vld [vmem:[#allocation2 + $0x1d4] sm:$0xf0] }
 0x1e0   : > { %1173 = vst [vmem:[#allocation2 + $0x24c] sm:$0xff] %v1142_v47  ;;  %v5947_v11 = vor.u32 %v6751_v51, %v5944_v7 }
 0x1e1   : > { %2470 = vmatpush.bf16.msrb.mxu0 %v6123_v29  ;;  %2615 = vmatpush.bf16.msra.mxu1 %v6127_v9  ;;  %v6677_v9 = vld [vmem:[%s9685_s2 + $0x34] sm:$0xf] }
 0x1e2   : > { %v1365_v63 = vpop.permute.xlu0 %1364  ;;  %v1367_v18 = vpop.permute.xlu1 %1366  ;;  %2513 = vmatmul.bf16.gmra.mxu1 %v7520_v8 }
 0x1e3   : > { %v1388_v53 = vrot.slane %v1365_v63, 4  ;;  %v1389_v19 = vrot.slane %v1367_v18, 4  ;;  %1438 = vst.msk [vmem:[#allocation2 + $0x338] sm:$0xf] %vm397_vm0, %v1367_v18 }
 0x1e4   : > { %2547 = vmatmul.bf16.gmra.mxu2 %v7854_v21 }
 0x1e5   : > { %v1405_v6 = vsel %vm362_vm1, %v1388_v53, %v1389_v19  ;;  %v7961_v30 = vpop.permute.xlu2 %1354 }
 0x1e6   : > { %v1406_v16 = vsel %vm1397_vm10, %v1365_v63, %v1405_v6  ;;  %v5990_v25 = vld [vmem:[#allocation2 + $0x240] sm:$0xf]  ;;  %1432 = vst.msk [vmem:[#allocation2 + $0x314] sm:$0xf] %vm397_vm0, %v7961_v30  ;;  %v1383_v23 = vrot.slane %v7961_v30, 4 }
 0x1e7   : > { %1437 = vst [vmem:[#allocation2 + $0x330] sm:$0xff] %v1406_v16  ;;  %v6764_v32 = vld [vmem:[#allocation2 + $0x248] sm:$0xf0]  ;;  %v5935_v16 = vor.u32 %v6748_v13, %v5932_v5  ;;  %v6739_v5 = vld [vmem:[#allocation2 + $0x184] sm:$0xf] }
 0x1e8   : > { %v5991_v34 = vor.u32 %v6764_v32, %v5990_v25  ;;  %v7992_v25 = vor.u32 %v6677_v9, %v5652_v17  ;;  %v6106_v32 = vld [vmem:[#allocation2 + $0x320] sm:$0xf]  ;;  %v6735_v9 = vld [vmem:[#allocation2 + $0x160] sm:$0xf0]  ;;  %v6682_v17 = vld [vmem:[%s9685_s2 + $0x5c] sm:$0xf] }
 0x1ea   : > { %2444 = vmatpush.bf16.msrb.mxu3 %v5991_v34  ;;  %v1371_v36 = vpop.permute.xlu0 %1370  ;;  %v1357_v40 = vpop.permute.xlu1 %1356  ;;  %v6118_v57 = vld [vmem:[#allocation2 + $0x338] sm:$0xf] }
 0x1eb   : > { %v1391_v41 = vrot.slane %v1371_v36, 4  ;;  %1440 = vst.msk [vmem:[#allocation2 + $0x344] sm:$0xf] %vm397_vm0, %v1371_v36  ;;  %v1384_v42 = vrot.slane %v1357_v40, 4 }
 0x1ed   : > { %v1407_v55 = vsel %vm362_vm1, %v1390_v24, %v1391_v41  ;;  %v1401_v44 = vsel %vm362_vm1, %v1384_v42, %v1385_v33  ;;  %2445 = vmatmul.bf16.vlgmr.msrb.gmra.mxu3 %v7968_v1  ;;  %v5920_v33 = vld [vmem:[#allocation2 + $0x1bc] sm:$0xf0]  ;;  %v6745_v24 = vld [vmem:[#allocation2 + $0x1b4] sm:$0xf]  ;;  %v6742_v41 = vld [vmem:[#allocation2 + $0x19c] sm:$0xf]  ;;  %v7996_v42 = vpop.f32.mrf.mxu2 }
 0x1ee   : > { %2553 = vmatpush.bf16.msra.mxu3 %v5983_v35  ;;  %v1408_v59 = vsel %vm1397_vm10, %v7910_v31, %v1407_v55  ;;  %v1402_v49 = vsel %vm1397_vm10, %v1357_v40, %v1401_v44  ;;  %v6110_v29 = vld [vmem:[#allocation2 + $0x330] sm:$0xf]  ;;  %v6793_v53 = vld [vmem:[#allocation2 + $0x334] sm:$0xf]  ;;  %v1380_v35 = vrot.slane %v7940_v61, 4  ;;  %v5923_v55 = vor.u32 %v6745_v24, %v5920_v33 }
 0x1ef   : > { %1439 = vst [vmem:[#allocation2 + $0x33c] sm:$0xff] %v1408_v59  ;;  %v1616_v59 = vld [vmem:[%s9686_s3 + $0x18] sm:$0xff]  ;;  %v6064_v24 = vld [vmem:[#allocation2 + $0x2dc] sm:$0xf0] }
 0x1f0   : > { %1433 = vst [vmem:[#allocation2 + $0x318] sm:$0xff] %v1402_v49  ;;  %1638 = vperm.xlu2 %6969, %v1616_v59   ;;  %v5866_v59 = vld [vmem:[#allocation2 + $0x140] sm:$0xf] }
 0x1f2   : > { %2554 = vmatpush.bf16.msra.mxu3 %v5971_v14  ;;  %v1361_v48 = vpop.permute.xlu0 %1360  ;;  %v1363_v54 = vpop.permute.xlu1 %1362  ;;  %v6795_v58 = vld [vmem:[#allocation2 + $0x340] sm:$0xf0]  ;;  %v5908_v14 = vld [vmem:[#allocation2 + $0x1a4] sm:$0xf0]  ;;  %2518 = vmatmul.bf16.gmra.mxu1 %v7649_v46 }
 0x1f3   : > { %v1386_v37 = vrot.slane %v1361_v48, 4  ;;  %v1387_v31 = vrot.slane %v1363_v54, 4  ;;  %1436 = vst.msk [vmem:[#allocation2 + $0x32c] sm:$0xf] %vm397_vm0, %v1363_v54  ;;  %v6119_v47 = vor.u32 %v6795_v58, %v6118_v57  ;;  %v6789_v57 = vld [vmem:[#allocation2 + $0x310] sm:$0xf0]  ;;  %v5911_v58 = vor.u32 %v6742_v41, %v5908_v14 }
 0x1f4   : > { %2648 = vmatmul.bf16.vlgmr.msrb.gmra.mxu2 %v7896_v62  ;;  %v6783_v41 = vld [vmem:[#allocation2 + $0x2e0] sm:$0xf0] }
 0x1f5   : > { %v1403_v10 = vsel %vm362_vm1, %v1386_v37, %v1387_v31  ;;  %2761 = vmatpush.bf16.msra.mxu2 %v6119_v47  ;;  %v5896_v37 = vld [vmem:[#allocation2 + $0x18c] sm:$0xf0]  ;;  %v6738_v47 = vld [vmem:[#allocation2 + $0x178] sm:$0xf0] }
 0x1f6   : > { %2555 = vmatpush.bf16.msra.mxu3 %v5959_v50  ;;  %v1404_v63 = vsel %vm1397_vm10, %v1361_v48, %v1403_v10  ;;  %v6794_v18 = vld [vmem:[#allocation2 + $0x338] sm:$0xf0]  ;;  %v6112_v19 = vld [vmem:[#allocation2 + $0x33c] sm:$0xf0]  ;;  %v5890_v31 = vld [vmem:[#allocation2 + $0x170] sm:$0xf] }
 0x1f7   : > { %1435 = vst [vmem:[#allocation2 + $0x324] sm:$0xff] %v1404_v63  ;;  %v6111_v62 = vor.u32 %v6794_v18, %v6110_v29  ;;  %v6115_v6 = vor.u32 %v6793_v53, %v6112_v19  ;;  %v6098_v44 = vld [vmem:[#allocation2 + $0x318] sm:$0xf]  ;;  %v6790_v50 = vld [vmem:[#allocation2 + $0x31c] sm:$0xf]  ;;  %v5899_v29 = vor.u32 %v6739_v5, %v5896_v37  ;;  %v5891_v53 = vor.u32 %v6738_v47, %v5890_v31 }
 0x1f8   : > { %v6076_v10 = vld [vmem:[#allocation2 + $0x2f4] sm:$0xf0]  ;;  %v5672_v63 = vld [vmem:[%s9685_s2 + $0x6c] sm:$0xf0]  ;;  %v6777_v31 = vld [vmem:[#allocation2 + $0x2b0] sm:$0xf0] }
 0x1f9   : > { %2471 = vmatpush.bf16.msrb.mxu0 %v6111_v62  ;;  %2616 = vmatpush.bf16.msra.mxu1 %v6115_v6  ;;  %v5638_v18 = vld [vmem:[%s9685_s2 + $0x10] sm:$0xf]  ;;  %v6675_v62 = vld [vmem:[%s9685_s2 + $0x20] sm:$0xf0]  ;;  %v8021_v6 = vpop.f32.mrf.mxu2  ;;  %v6726_v5 = vld [vmem:[#allocation2 + $0x118] sm:$0xf0] }
 0x1fa   : > { %2556 = vmatpush.bf16.msra.mxu3 %v5947_v11  ;;  %v1351_v27 = vpop.permute.xlu0 %1350  ;;  %v1353_v26 = vpop.permute.xlu1 %1352  ;;  %v6792_v34 = vld [vmem:[#allocation2 + $0x328] sm:$0xf0]  ;;  %v6786_v11 = vld [vmem:[#allocation2 + $0x2f8] sm:$0xf0]  ;;  %v5842_v47 = vld [vmem:[#allocation2 + $0x110] sm:$0xf] }
 0x1fb   : > { %v1381_v36 = vrot.slane %v1351_v27, 4  ;;  %1430 = vst.msk [vmem:[#allocation2 + $0x308] sm:$0xf] %vm397_vm0, %v1351_v27  ;;  %v1382_v40 = vrot.slane %v1353_v26, 4  ;;  %v6107_v12 = vor.u32 %v6792_v34, %v6106_v32  ;;  %v6784_v32 = vld [vmem:[#allocation2 + $0x2ec] sm:$0xf] }
 0x1fc   : > { %v6082_v34 = vld [vmem:[#allocation2 + $0x2f0] sm:$0xf]  ;;  %v6079_v33 = vor.u32 %v6784_v32, %v6076_v10  ;;  %v6775_v10 = vld [vmem:[#allocation2 + $0x2a4] sm:$0xf] }
 0x1fd   : > { %v1396_v30 = vsel %vm362_vm1, %v1380_v35, %v1381_v36  ;;  %v1399_v38 = vsel %vm362_vm1, %v1382_v40, %v1383_v23  ;;  %2450 = vmatmul.bf16.gmra.mxu3 %v7992_v25  ;;  %2762 = vmatpush.bf16.msra.mxu2 %v6107_v12  ;;  %v6083_v35 = vor.u32 %v6786_v11, %v6082_v34  ;;  %v6046_v11 = vld [vmem:[#allocation2 + $0x2a8] sm:$0xf] }
 0x1fe   : > { %2557 = vmatpush.bf16.msra.mxu3 %v5935_v16  ;;  %v1398_v49 = vsel %vm1397_vm10, %v7940_v61, %v1396_v30  ;;  %v1400_v43 = vsel %vm1397_vm10, %v1353_v26, %v1399_v38  ;;  %v6791_v60 = vld [vmem:[#allocation2 + $0x320] sm:$0xf0]  ;;  %v6100_v51 = vld [vmem:[#allocation2 + $0x324] sm:$0xf0]  ;;  %v5878_v16 = vld [vmem:[#allocation2 + $0x158] sm:$0xf]  ;;  %v8023_v36 = vor.u32 %v6682_v17, %v5672_v63  ;;  %v8025_v40 = vor.u32 %v6675_v62, %v5638_v18 }
 0x1ff   : > { %1429 = vst [vmem:[#allocation2 + $0x300] sm:$0xff] %v1398_v49  ;;  %v6099_v48 = vor.u32 %v6791_v60, %v6098_v44  ;;  %v6103_v54 = vor.u32 %v6790_v50, %v6100_v51  ;;  %v5879_v12 = vor.u32 %v6735_v9, %v5878_v16  ;;  %v6732_v30 = vld [vmem:[#allocation2 + $0x148] sm:$0xf0]  ;;  %v6781_v38 = vld [vmem:[#allocation2 + $0x2d4] sm:$0xf]  ;;  %v6047_v9 = vor.u32 %v6777_v31, %v6046_v11 }
 0x200   : > { %1431 = vst [vmem:[#allocation2 + $0x30c] sm:$0xff] %v1400_v43  ;;  %v6067_v44 = vor.u32 %v6781_v38, %v6064_v24  ;;  %v6780_v49 = vld [vmem:[#allocation2 + $0x2c8] sm:$0xf0]  ;;  %v5867_v43 = vor.u32 %v6732_v30, %v5866_v59  ;;  %v6778_v60 = vld [vmem:[#allocation2 + $0x2bc] sm:$0xf] }
 0x201   : > { %2472 = vmatpush.bf16.msrb.mxu0 %v6099_v48  ;;  %2617 = vmatpush.bf16.msra.mxu1 %v6103_v54  ;;  %v6052_v50 = vld [vmem:[#allocation2 + $0x2c4] sm:$0xf0]  ;;  %v6058_v51 = vld [vmem:[#allocation2 + $0x2c0] sm:$0xf]  ;;  %v6729_v48 = vld [vmem:[#allocation2 + $0x130] sm:$0xf0]  ;;  %v8030_v54 = vpop.f32.mrf.mxu2 }
 0x202   : > { %2558 = vmatpush.bf16.msra.mxu3 %v5923_v55  ;;  %v6094_v7 = vld [vmem:[#allocation2 + $0x308] sm:$0xf]  ;;  %v6070_v55 = vld [vmem:[#allocation2 + $0x2d8] sm:$0xf]  ;;  %v6774_v63 = vld [vmem:[#allocation2 + $0x298] sm:$0xf0] }
 0x203   : > { %v6095_v61 = vor.u32 %v6789_v57, %v6094_v7  ;;  %v6071_v14 = vor.u32 %v6783_v41, %v6070_v55  ;;  %v6055_v57 = vor.u32 %v6778_v60, %v6052_v50  ;;  %v5854_v7 = vld [vmem:[#allocation2 + $0x128] sm:$0xf]  ;;  %v6028_v17 = vld [vmem:[#allocation2 + $0x294] sm:$0xf0]  ;;  %v6687_v18 = vld [vmem:[%s9685_s2 + $0x84] sm:$0xf] }
 0x204   : > { %2653 = vmatmul.bf16.gmra.mxu2 %v7921_v39  ;;  %v5855_v37 = vor.u32 %v6729_v48, %v5854_v7  ;;  %v6723_v62 = vld [vmem:[#allocation2 + $0x100] sm:$0xf0]  ;;  %v6016_v24 = vld [vmem:[#allocation2 + $0x27c] sm:$0xf0]  ;;  %v6022_v41 = vld [vmem:[#allocation2 + $0x278] sm:$0xf] }
 0x205   : > { %2763 = vmatpush.bf16.msra.mxu2 %v6095_v61  ;;  %v6040_v61 = vld [vmem:[#allocation2 + $0x2ac] sm:$0xf0]  ;;  %v6720_v38 = vld [vmem:[#allocation2 + $0xe8] sm:$0xf0]  ;;  %v5806_v60 = vld [vmem:[#allocation2 + $0xc8] sm:$0xf] }
 0x206   : > { %2559 = vmatpush.bf16.msra.mxu3 %v5911_v58  ;;  %v6086_v39 = vld [vmem:[#allocation2 + $0x300] sm:$0xf]  ;;  %v6787_v19 = vld [vmem:[#allocation2 + $0x304] sm:$0xf]  ;;  %v6059_v58 = vor.u32 %v6780_v49, %v6058_v51  ;;  %v6004_v49 = vld [vmem:[#allocation2 + $0x264] sm:$0xf0] }
 0x207   : > { %v6788_v13 = vld [vmem:[#allocation2 + $0x308] sm:$0xf0]  ;;  %v6088_v23 = vld [vmem:[#allocation2 + $0x30c] sm:$0xf0]  ;;  %v6717_v50 = vld [vmem:[#allocation2 + $0xd0] sm:$0xf0] }
 0x208   : > { %v6087_v27 = vor.u32 %v6788_v13, %v6086_v39  ;;  %v6091_v26 = vor.u32 %v6787_v19, %v6088_v23  ;;  %v5692_v39 = vld [vmem:[%s9685_s2 + $0x94] sm:$0xf0]  ;;  %v6772_v13 = vld [vmem:[#allocation2 + $0x28c] sm:$0xf]  ;;  %v6034_v23 = vld [vmem:[#allocation2 + $0x290] sm:$0xf] }
 0x209   : > { %v5658_v19 = vld [vmem:[%s9685_s2 + $0x38] sm:$0xf]  ;;  %v6031_v16 = vor.u32 %v6772_v13, %v6028_v17  ;;  %v8047_v32 = vor.u32 %v6687_v18, %v5692_v39  ;;  %v8051_v30 = vpop.f32.mrf.mxu2  ;;  %v6766_v51 = vld [vmem:[#allocation2 + $0x25c] sm:$0xf]  ;;  %v6010_v48 = vld [vmem:[#allocation2 + $0x260] sm:$0xf] }
 0x20a   : > { %2560 = vmatpush.bf16.msra.mxu3 %v5899_v29  ;;  %2473 = vmatpush.bf16.msrb.mxu0 %v6087_v27  ;;  %v6043_v29 = vor.u32 %v6775_v10, %v6040_v61  ;;  %v6035_v27 = vor.u32 %v6774_v63, %v6034_v23  ;;  %v6765_v7 = vld [vmem:[#allocation2 + $0x250] sm:$0xf0]  ;;  %v6763_v61 = vld [vmem:[#allocation2 + $0x244] sm:$0xf]  ;;  %v5992_v31 = vld [vmem:[#allocation2 + $0x24c] sm:$0xf0] }
 0x20b   : > { %2618 = vmatpush.bf16.msra.mxu1 %v6091_v26  ;;  %v5830_v26 = vld [vmem:[#allocation2 + $0xf8] sm:$0xf]  ;;  %v6762_v10 = vld [vmem:[#allocation2 + $0x238] sm:$0xf0]  ;;  %v5678_v18 = vld [vmem:[%s9685_s2 + $0x60] sm:$0xf] }
 0x20c   : > { %v6759_v39 = vld [vmem:[#allocation2 + $0x220] sm:$0xf0]  ;;  %v6756_v23 = vld [vmem:[#allocation2 + $0x208] sm:$0xf0] }
 0x20d   : > { %2455 = vmatmul.bf16.gmra.mxu3 %v8023_v36  ;;  %6132 = vmatmul.msk.bf16.vlgmr.msrb.gmra.mxu0 %vm2337_vm11, %v8025_v40 }
 0x20e   : > { %2669 = vmatpush.bf16.msrb.mxu3 %v5891_v53  ;;  %2582 = vmatpush.bf16.msra.mxu0 %v6079_v33  ;;  %v5843_v53 = vor.u32 %v6726_v5, %v5842_v47  ;;  %v6771_v33 = vld [vmem:[#allocation2 + $0x280] sm:$0xf0]  ;;  %v5998_v47 = vld [vmem:[#allocation2 + $0x248] sm:$0xf]  ;;  %v5986_v5 = vld [vmem:[#allocation2 + $0x230] sm:$0xf] }
 0x20f   : > { %2727 = vmatpush.bf16.msrb.mxu1 %v6083_v35  ;;  %v5831_v35 = vor.u32 %v6723_v62, %v5830_v26  ;;  %v5999_v17 = vor.u32 %v6765_v7, %v5998_v47  ;;  %v5987_v63 = vor.u32 %v6762_v10, %v5986_v5  ;;  %v6741_v5 = vld [vmem:[#allocation2 + $0x190] sm:$0xf0]  ;;  %v5902_v10 = vld [vmem:[#allocation2 + $0x188] sm:$0xf] }
 0x210   : > { %6136 = vmatmul.msk.bf16.vlgmr.msra.gmra.mxu1 %vm2337_vm11, %v8025_v40  ;;  %v8058_v11 = vpop.permute.xlu0 %1623 }
 0x212   : > { %2670 = vmatpush.bf16.msrb.mxu3 %v5879_v12  ;;  %2583 = vmatpush.bf16.msra.mxu0 %v6067_v44  ;;  %v6769_v12 = vld [vmem:[#allocation2 + $0x274] sm:$0xf]  ;;  %v6023_v44 = vor.u32 %v6771_v33, %v6022_v41 }
 0x213   : > { %2728 = vmatpush.bf16.msrb.mxu1 %v6071_v14  ;;  %v6019_v55 = vor.u32 %v6769_v12, %v6016_v24  ;;  %v5818_v14 = vld [vmem:[#allocation2 + $0xe0] sm:$0xf]  ;;  %v5950_v12 = vld [vmem:[#allocation2 + $0x1e8] sm:$0xf]  ;;  %v6753_v24 = vld [vmem:[#allocation2 + $0x1f0] sm:$0xf0] }
 0x214   : > { %2658 = vmatmul.bf16.gmra.mxu2 %v7520_v8  ;;  %v6680_v8 = vld [vmem:[%s9685_s2 + $0x48] sm:$0xf0]  ;;  %v5819_v59 = vor.u32 %v6720_v38, %v5818_v14 }
 0x215   : > { %v8049_v34 = vor.u32 %v6680_v8, %v5658_v19  ;;  %v5974_v8 = vld [vmem:[#allocation2 + $0x218] sm:$0xf] }
 0x216   : > { %2671 = vmatpush.bf16.msrb.mxu3 %v5867_v43  ;;  %2584 = vmatpush.bf16.msra.mxu0 %v6055_v57  ;;  %v6768_v43 = vld [vmem:[#allocation2 + $0x268] sm:$0xf0]  ;;  %v6007_v57 = vor.u32 %v6766_v51, %v6004_v49  ;;  %v5975_v13 = vor.u32 %v6759_v39, %v5974_v8  ;;  %v5938_v49 = vld [vmem:[#allocation2 + $0x1d0] sm:$0xf]  ;;  %v6747_v51 = vld [vmem:[#allocation2 + $0x1c0] sm:$0xf0] }
 0x217   : > { %2729 = vmatpush.bf16.msrb.mxu1 %v6059_v58  ;;  %v6011_v58 = vor.u32 %v6768_v43, %v6010_v48 }
 0x21a   : > { %2672 = vmatpush.bf16.msrb.mxu3 %v5855_v37  ;;  %2585 = vmatpush.bf16.msra.mxu0 %v6043_v29  ;;  %v5807_v37 = vor.u32 %v6717_v50, %v5806_v60  ;;  %v8060_v29 = vpop.f32.mrf.mxu2  ;;  %v5698_v60 = vld [vmem:[%s9685_s2 + $0x88] sm:$0xf]  ;;  %v6690_v50 = vld [vmem:[%s9685_s2 + $0x98] sm:$0xf0] }
 0x21b   : > { %2730 = vmatpush.bf16.msrb.mxu1 %v6047_v9  ;;  %v5995_v9 = vor.u32 %v6763_v61, %v5992_v31  ;;  %v2398_v19 = vpop.f32.mrf.mxu3  ;;  %v5699_v7 = vor.u32 %v6690_v50, %v5698_v60  ;;  %v6744_v61 = vld [vmem:[#allocation2 + $0x1a8] sm:$0xf0] }
 0x21d   : > { %2460 = vmatmul.bf16.gmra.mxu3 %v8047_v32  ;;  %6133 = vmatmul.msk.bf16.gmra.mxu0 %vm2337_vm11, %v8049_v34 }
 0x21e   : > { %2673 = vmatpush.bf16.msrb.mxu3 %v5843_v53  ;;  %2586 = vmatpush.bf16.msra.mxu0 %v6031_v16  ;;  %v6685_v53 = vld [vmem:[%s9685_s2 + $0x70] sm:$0xf0]  ;;  %v8073_v16 = vpop.permute.xlu0 %1643  ;;  %v2388_v47 = vpop.f32.mrf.mxu1 }
 0x21f   : > { %2731 = vmatpush.bf16.msrb.mxu1 %v6035_v27  ;;  %v8069_v62 = vor.u32 %v6685_v53, %v5678_v18  ;;  %v5962_v27 = vld [vmem:[#allocation2 + $0x200] sm:$0xf]  ;;  %v2370_v26 = vadd.f32 %v7942_v3, %v8073_v16 }
 0x220   : > { %6137 = vmatmul.msk.bf16.gmra.mxu1 %vm2337_vm11, %v8049_v34  ;;  %v5963_v33 = vor.u32 %v6756_v23, %v5962_v27 }
 0x221   : > { %v2399_v38 = vadd.f32 %v2398_v19, %v2370_v26 }
 0x222   : > { %2674 = vmatpush.bf16.msrb.mxu3 %v5831_v35  ;;  %2587 = vmatpush.bf16.msra.mxu0 %v6019_v55  ;;  %v2427_v35 = vpop.f32.mrf.mxu2  ;;  %v5951_v55 = vor.u32 %v6753_v24, %v5950_v12 }
 0x223   : > { %2732 = vmatpush.bf16.msrb.mxu1 %v6023_v44  ;;  %v8080_v41 = vpop.f32.mrf.mxu3  ;;  %v6750_v44 = vld [vmem:[#allocation2 + $0x1d8] sm:$0xf0] }
 0x224   : > { %2663 = vmatmul.bf16.gmra.mxu2 %v7649_v46  ;;  %v8071_v46 = vpop.permute.xlu1 %1628  ;;  %v5939_v43 = vor.u32 %v6750_v44, %v5938_v49 }
 0x226   : > { %2675 = vmatpush.bf16.msrb.mxu3 %v5819_v59  ;;  %2588 = vmatpush.bf16.msra.mxu0 %v6007_v57  ;;  %v8086_v59 = vadd.f32 %v2427_v35, %v2399_v38  ;;  %v2390_v19 = vpop.f32.mrf.mxu1 }
 0x227   : > { %2733 = vmatpush.bf16.msrb.mxu1 %v6011_v58 }
 0x22a   : > { %2676 = vmatpush.bf16.msrb.mxu3 %v5807_v37  ;;  %2589 = vmatpush.bf16.msra.mxu0 %v5995_v9  ;;  %v8098_v57 = vpop.f32.mrf.mxu2 }
 0x22b   : > { %2734 = vmatpush.bf16.msrb.mxu1 %v5999_v17  ;;  %v2403_v48 = vpop.f32.mrf.mxu3 }
 0x22c   : > { %v8084_v14 = vpop.permute.xlu1 %1653 }
 0x22d   : > { %6134 = vmatmul.msk.bf16.gmra.mxu0 %vm2337_vm11, %v8069_v62  ;;  %2561 = vmatmul.bf16.vlgmr.msra.gmra.mxu3 %v7687_v28  ;;  %v2375_v3 = vadd.f32 %v7978_v52, %v8084_v14  ;;  %v5926_v52 = vld [vmem:[#allocation2 + $0x1b8] sm:$0xf] }
 0x22e   : > { %2698 = vmatpush.bf16.msrb.mxu0 %v5987_v63  ;;  %v5927_v37 = vor.u32 %v6747_v51, %v5926_v52  ;;  %v5903_v63 = vor.u32 %v6741_v5, %v5902_v10  ;;  %v2393_v26 = vpop.f32.mrf.mxu1 }
 0x22f   : > { %v2404_v58 = vadd.f32 %v2403_v48, %v2375_v3 }
 0x230   : > { %6138 = vmatmul.msk.bf16.gmra.mxu1 %vm2337_vm11, %v8069_v62 }
 0x232   : > { %2699 = vmatpush.bf16.msrb.mxu0 %v5975_v13  ;;  %v2432_v17 = vpop.f32.mrf.mxu2  ;;  %v8110_v13 = vpop.permute.xlu2 %1633 }
 0x233   : > { %v8104_v53 = vadd.f32 %v2432_v17, %v2404_v58 }
 0x234   : > { %6140 = vmatmul.msk.bf16.vlgmr.msra.gmra.mxu2 %vm2337_vm11, %v8025_v40  ;;  %v5914_v40 = vld [vmem:[#allocation2 + $0x1a0] sm:$0xf] }
 0x235   : > { %v5915_v31 = vor.u32 %v6744_v61, %v5914_v40  ;;  %v8162_v61 = vstv %s281_s12 }
 0x236   : > { %2700 = vmatpush.bf16.msrb.mxu0 %v5963_v33 }
 0x23a   : > { %2701 = vmatpush.bf16.msrb.mxu0 %v5951_v55  ;;  %v8116_v35 = vpop.f32.mrf.mxu2  ;;  %v8164_v5 = vpop.permute.xlu2 %1658 }
 0x23d   : > { %6135 = vmatmul.msk.bf16.gmra.mxu0 %vm2337_vm11, %v5699_v7  ;;  %2566 = vmatmul.bf16.gmra.mxu3 %v7739_v2 }
 0x23e   : > { %2702 = vmatpush.bf16.msrb.mxu0 %v5939_v43  ;;  %v2359_v9 = vpop.f32.mrf.mxu0 }
 0x23f   : > { %v2360_v18 = vadd.f32 %v2359_v9, %v8058_v11 }
 0x240   : > { %6139 = vmatmul.msk.bf16.gmra.mxu1 %vm2337_vm11, %v5699_v7 }
 0x241   : > { %v2389_v39 = vadd.f32 %v2388_v47, %v2360_v18 }
 0x242   : > { %2703 = vmatpush.bf16.msrb.mxu0 %v5927_v37  ;;  %v8122_v12 = vpop.f32.mrf.mxu2 }
 0x243   : > { %v2418_v55 = vadd.f32 %v8021_v6, %v2389_v39  ;;  %v2858_v6 = vld [vmem:[%s9689_s6] sm:$0x7] }
 0x244   : > { %6141 = vmatmul.msk.bf16.gmra.mxu2 %vm2337_vm11, %v8049_v34  ;;  %v8118_v34 = vpop.f32.mrf.mxu1  ;;  %vm2859_vm12 = vcmp.gt.f32.partialorder %v2858_v6, 0.0 }
 0x245   : > { %v8154_v58 = vsel %vm2859_vm12, 1, %v7053_v15 }
 0x246   : > { %2704 = vmatpush.bf16.msrb.mxu0 %v5915_v31  ;;  %v2361_v8 = vpop.f32.mrf.mxu0  ;;  %v2861_v37 = vperm.slane %v8154_v58, 0 }
 0x247   : > { %v2362_v52 = vadd.f32 %v2361_v8, %v8071_v46 }
 0x248   : > { %vm8166_vm13 = vcmp.eq.s32.totalorder %v2861_v37, 1 }
 0x249   : > { %v2391_v31 = vadd.f32 %v2390_v19, %v2362_v52 }
 0x24a   : > { %2705 = vmatpush.bf16.msrb.mxu0 %v5903_v63  ;;  %v8130_v38 = vpop.f32.mrf.mxu2 }
 0x24b   : > { %v2420_v10 = vadd.f32 %v8030_v54, %v2391_v31 }
 0x24c   : > { %v8125_v24 = vpop.f32.mrf.mxu1 }
 0x24d   : > { %2571 = vmatmul.bf16.gmra.mxu3 %v7773_v56  ;;  %2590 = vmatmul.bf16.vlgmr.msra.gmra.mxu0 %v7968_v1 }
 0x24e   : > { %v2364_v23 = vpop.f32.mrf.mxu0 }
 0x24f   : > { %v2365_v27 = vadd.f32 %v2364_v23, %v8110_v13 }
 0x250   : > { %2735 = vmatmul.bf16.vlgmr.msrb.gmra.mxu1 %v7968_v1  ;;  %v8128_v1 = vpop.f32.mrf.mxu3 }
 0x251   : > { %v2394_v33 = vadd.f32 %v2393_v26, %v2365_v27  ;;  %v8184_v27 = vpop.permute.xlu2 %1638 }
 0x253   : > { %v2423_v50 = vadd.f32 %v8051_v30, %v2394_v33 }
 0x254   : > { %6142 = vmatmul.msk.bf16.gmra.mxu2 %vm2337_vm11, %v8069_v62  ;;  %v8134_v62 = vpop.f32.mrf.mxu1 }
 0x256   : > { %v2366_v48 = vpop.f32.mrf.mxu0 }
 0x257   : > { %v2367_v54 = vadd.f32 %v2366_v48, %v8184_v27 }
 0x25c   : > { %v8140_v49 = vpop.f32.mrf.mxu1 }
 0x25d   : > { %2576 = vmatmul.bf16.gmra.mxu3 %v7799_v45  ;;  %2595 = vmatmul.bf16.gmra.mxu0 %v7992_v25 }
 0x260   : > { %2740 = vmatmul.bf16.gmra.mxu1 %v7992_v25  ;;  %v8138_v25 = vpop.f32.mrf.mxu2 }
 0x264   : > { %6143 = vmatmul.msk.bf16.gmra.mxu2 %vm2337_vm11, %v5699_v7 }
 0x268   : > { %v8144_v60 = vpop.f32.mrf.mxu2 }
 0x26d   : > { %2600 = vmatmul.bf16.gmra.mxu0 %v8023_v36  ;;  %2677 = vmatmul.bf16.vlgmr.msrb.gmra.mxu3 %v7840_v20  ;;  %v8146_v20 = vpop.f32.mrf.mxu1 }
 0x270   : > { %v2446_v44 = vpop.f32.mrf.mxu3  ;;  %2745 = vmatmul.bf16.gmra.mxu1 %v8023_v36  ;;  %v8159_v7 = vpop.f32.mrf.mxu2 }
 0x271   : > { %v2447_v3 = vadd.f32 %v2446_v44, %v2418_v55 }
 0x278   : > { %v2448_v43 = vpop.f32.mrf.mxu3  ;;  %v8182_v8 = vpop.f32.mrf.mxu2 }
 0x279   : > { %v2449_v39 = vadd.f32 %v2448_v43, %v2420_v10 }
 0x27d   : > { %2605 = vmatmul.bf16.gmra.mxu0 %v8047_v32  ;;  %2682 = vmatmul.bf16.gmra.mxu3 %v7888_v4  ;;  %v8156_v4 = vpop.f32.mrf.mxu1 }
 0x280   : > { %v2451_v36 = vpop.f32.mrf.mxu3  ;;  %2750 = vmatmul.bf16.gmra.mxu1 %v8047_v32 }
 0x281   : > { %v2452_v51 = vadd.f32 %v2451_v36, %v2423_v50  ;;  %v8196_v50 = vpop.f32.mrf.mxu2 }
 0x285   : > { %v8179_v18 = vpop.f32.mrf.mxu1 }
 0x288   : > { %v2453_v30 = vpop.f32.mrf.mxu3 }
 0x28a   : > { %v2475_v40 = vpop.f32.mrf.mxu0 }
 0x28b   : > { %v2476_v47 = vadd.f32 %v2475_v40, %v2447_v3  ;;  %v2396_v3 = vadd.f32 %v8118_v34, %v2367_v54 }
 0x28d   : > { %vm2785_vm14 = vcmp.gt.f32.partialorder %v2476_v47, 0.0  ;;  %v2810_v15 = vmul.f32 %v8162_v61, %v2476_v47  ;;  %2687 = vmatmul.bf16.gmra.mxu3 %v7807_v0  ;;  %2706 = vmatmul.bf16.vlgmr.msrb.gmra.mxu0 %v7687_v28  ;;  %v2425_v36 = vadd.f32 %v8060_v29, %v2396_v3 }
 0x28f   : > { %v8174_v9 = vsel %vm2785_vm14, %v2476_v47, %v2810_v15  ;;  %v2454_v34 = vadd.f32 %v2453_v30, %v2425_v36  ;;  %v8208_v47 = vpop.permute.xlu1 %1648 }
 0x290   : > { %v2867_v17 = vsel %vm8166_vm13, %v8174_v9, 0.0  ;;  %v2456_v63 = vpop.f32.mrf.mxu3  ;;  %v2372_v29 = vadd.f32 %v7963_v22, %v8208_v47 }
 0x291   : > { %v2457_v19 = vadd.f32 %v2456_v63, %v8086_v59  ;;  %v8193_v59 = vpop.f32.mrf.mxu1 }
 0x292   : > { %v2477_v23 = vpop.f32.mrf.mxu0 }
 0x293   : > { %v2478_v0 = vadd.f32 %v2477_v23, %v2449_v39  ;;  %v2401_v39 = vadd.f32 %v8080_v41, %v2372_v29 }
 0x295   : > { %vm2788_vm15 = vcmp.gt.f32.partialorder %v2478_v0, 0.0  ;;  %v2813_v28 = vmul.f32 %v8162_v61, %v2478_v0  ;;  %v2430_v54 = vadd.f32 %v8098_v57, %v2401_v39 }
 0x297   : > { %v8188_v26 = vsel %vm2788_vm15, %v2478_v0, %v2813_v28 }
 0x298   : > { %v2870_v33 = vsel %vm8166_vm13, %v8188_v26, 0.0  ;;  %v2458_v55 = vpop.f32.mrf.mxu3 }
 0x299   : > { %v8210_v15 = vpop.f32.mrf.mxu1 }
 0x29a   : > { %v2480_v44 = vpop.f32.mrf.mxu0 }
 0x29b   : > { %v2481_v43 = vadd.f32 %v2480_v44, %v2452_v51 }
 0x29d   : > { %vm2791_vm4 = vcmp.gt.f32.partialorder %v2481_v43, 0.0  ;;  %v2816_v6 = vmul.f32 %v8162_v61, %v2481_v43  ;;  %2692 = vmatmul.bf16.gmra.mxu3 %v7854_v21  ;;  %2711 = vmatmul.bf16.gmra.mxu0 %v7739_v2  ;;  %v8213_v21 = vpop.f32.mrf.mxu2 }
 0x29f   : > { %v8202_v48 = vsel %vm2791_vm4, %v2481_v43, %v2816_v6  ;;  %v2459_v6 = vadd.f32 %v2458_v55, %v2430_v54 }
 0x2a0   : > { %v2873_v52 = vsel %vm8166_vm13, %v8202_v48, 0.0  ;;  %v2461_v37 = vpop.f32.mrf.mxu3 }
 0x2a1   : > { %v2462_v51 = vadd.f32 %v2461_v37, %v8104_v53  ;;  %v2620_v28 = vpop.f32.mrf.mxu1 }
 0x2a2   : > { %v2482_v40 = vpop.f32.mrf.mxu0 }
 0x2a3   : > { %v2483_v31 = vadd.f32 %v2482_v40, %v2454_v34 }
 0x2a5   : > { %vm2794_vm6 = vcmp.gt.f32.partialorder %v2483_v31, 0.0  ;;  %v2819_v2 = vmul.f32 %v8162_v61, %v2483_v31  ;;  %v8228_v44 = vpop.f32.mrf.mxu2 }
 0x2a7   : > { %v8217_v10 = vsel %vm2794_vm6, %v2483_v31, %v2819_v2 }
 0x2a8   : > { %v2876_v53 = vsel %vm8166_vm13, %v8217_v10, 0.0  ;;  %v2463_v30 = vpop.f32.mrf.mxu3 }
 0x2a9   : > { %v2622_v40 = vpop.f32.mrf.mxu1 }
 0x2aa   : > { %v2485_v63 = vpop.f32.mrf.mxu0 }
 0x2ab   : > { %v2486_v23 = vadd.f32 %v2485_v63, %v2457_v19 }
 0x2ad   : > { %vm2797_vm8 = vcmp.gt.f32.partialorder %v2486_v23, 0.0  ;;  %v2822_v0 = vmul.f32 %v8162_v61, %v2486_v23  ;;  %2716 = vmatmul.bf16.gmra.mxu0 %v7773_v56  ;;  %v2377_v56 = vadd.f32 %v7996_v42, %v8164_v5  ;;  %v8241_v31 = vpop.f32.mrf.mxu2 }
 0x2ae   : > { %v2652_v32 = vadd.f32 %v8241_v31, %v8071_v46 }
 0x2af   : > { %v8226_v22 = vsel %vm2797_vm8, %v2486_v23, %v2822_v0  ;;  %v2406_v55 = vadd.f32 %v8128_v1, %v2377_v56  ;;  %v2505_v1 = vadd.f32 %v8125_v24, %v8058_v11  ;;  %v2507_v24 = vadd.f32 %v8134_v62, %v8071_v46 }
 0x2b0   : > { %v2879_v3 = vsel %vm8166_vm13, %v8226_v22, 0.0  ;;  %v2562_v43 = vpop.f32.mrf.mxu3 }
 0x2b1   : > { %v2435_v42 = vadd.f32 %v8116_v35, %v2406_v55  ;;  %v2534_v35 = vadd.f32 %v8122_v12, %v2505_v1  ;;  %v2536_v1 = vadd.f32 %v8130_v38, %v2507_v24 }
 0x2b2   : > { %v2487_v41 = vpop.f32.mrf.mxu0 }
 0x2b3   : > { %v2488_v19 = vadd.f32 %v2487_v41, %v2459_v6  ;;  %v2464_v54 = vadd.f32 %v2463_v30, %v2435_v42  ;;  %v2625_v41 = vpop.f32.mrf.mxu1 }
 0x2b5   : > { %vm2800_vm9 = vcmp.gt.f32.partialorder %v2488_v19, 0.0  ;;  %v2825_v36 = vmul.f32 %v8162_v61, %v2488_v19 }
 0x2b7   : > { %v8236_v37 = vsel %vm2800_vm9, %v2488_v19, %v2825_v36  ;;  %v8254_v19 = vpop.f32.mrf.mxu2 }
 0x2b8   : > { %v2882_v57 = vsel %vm8166_vm13, %v8236_v37, 0.0  ;;  %v2564_v34 = vpop.f32.mrf.mxu3 }
 0x2ba   : > { %v2490_v2 = vpop.f32.mrf.mxu0 }
 0x2bb   : > { %v2491_v29 = vadd.f32 %v2490_v2, %v2462_v51  ;;  %v2563_v2 = vadd.f32 %v2562_v43, %v2534_v35  ;;  %v2627_v42 = vpop.f32.mrf.mxu1 }
 0x2bd   : > { %vm2803_vm10 = vcmp.gt.f32.partialorder %v2491_v29, 0.0  ;;  %v2828_v63 = vmul.f32 %v8162_v61, %v2491_v29  ;;  %2721 = vmatmul.bf16.gmra.mxu0 %v7799_v45 }
 0x2bf   : > { %v8247_v39 = vsel %vm2803_vm10, %v2491_v29, %v2828_v63  ;;  %v2862_v29 = vperm.slane %v8154_v58, 1 }
 0x2c0   : > { %v2885_v23 = vsel %vm8166_vm13, %v8247_v39, 0.0  ;;  %v2567_v0 = vpop.f32.mrf.mxu3 }
 0x2c1   : > { %vm8268_vm14 = vcmp.eq.s32.totalorder %v2862_v29, 1 }
 0x2c2   : > { %v2492_v6 = vpop.f32.mrf.mxu0 }
 0x2c3   : > { %v2493_v51 = vadd.f32 %v2492_v6, %v2464_v54  ;;  %v8266_v6 = vpop.f32.mrf.mxu2  ;;  %v2630_v24 = vpop.f32.mrf.mxu1 }
 0x2c5   : > { %vm2806_vm12 = vcmp.gt.f32.partialorder %v2493_v51, 0.0  ;;  %v2831_v45 = vmul.f32 %v8162_v61, %v2493_v51 }
 0x2c7   : > { %v8258_v36 = vsel %vm2806_vm12, %v2493_v51, %v2831_v45  ;;  %v2565_v45 = vadd.f32 %v2564_v34, %v2536_v1 }
 0x2c8   : > { %v2888_v56 = vsel %vm8166_vm13, %v8258_v36, 0.0  ;;  %v2569_v30 = vpop.f32.mrf.mxu3 }
 0x2ca   : > { %v2591_v55 = vpop.f32.mrf.mxu0 }
 0x2cb   : > { %v2592_v63 = vadd.f32 %v2591_v55, %v2563_v2 }
 0x2cd   : > { %v2621_v54 = vadd.f32 %v2620_v28, %v2592_v63  ;;  %v2510_v28 = vadd.f32 %v8140_v49, %v8110_v13 }
 0x2cf   : > { %vm2786_vm15 = vcmp.gt.f32.partialorder %v2621_v54, 0.0  ;;  %v2811_v43 = vmul.f32 %v8162_v61, %v2621_v54  ;;  %v2539_v34 = vadd.f32 %v8138_v25, %v2510_v28 }
 0x2d0   : > { %v2572_v51 = vpop.f32.mrf.mxu3 }
 0x2d1   : > { %v2835_v35 = vsel %vm2786_vm15, %v2621_v54, %v2811_v43  ;;  %v8287_v54 = vpop.f32.mrf.mxu2  ;;  %v2568_v1 = vadd.f32 %v2567_v0, %v2539_v34  ;;  %v2515_v34 = vadd.f32 %v8156_v4, %v8073_v16 }
 0x2d2   : > { %v2868_v62 = vsel %vm8268_vm14, %v2835_v35, 0.0  ;;  %v2593_v2 = vpop.f32.mrf.mxu0 }
 0x2d3   : > { %v8282_v55 = vpack.c.bf16 %v2868_v62, %v2867_v17  ;;  %v2594_v38 = vadd.f32 %v2593_v2, %v2565_v45  ;;  %v2512_v45 = vadd.f32 %v8146_v20, %v8184_v27  ;;  %v2544_v4 = vadd.f32 %v8159_v7, %v2515_v34 }
 0x2d5   : > { %2907 = vst [vmem:[#allocation3 + $0x4] sm:$0xff] %v8282_v55  ;;  %v2623_v29 = vadd.f32 %v2622_v40, %v2594_v38  ;;  %v2541_v20 = vadd.f32 %v8144_v60, %v2512_v45 }
 0x2d7   : > { %vm2789_vm4 = vcmp.gt.f32.partialorder %v2623_v29, 0.0  ;;  %v2814_v63 = vmul.f32 %v8162_v61, %v2623_v29  ;;  %v2570_v2 = vadd.f32 %v2569_v30, %v2541_v20 }
 0x2d8   : > { %v2574_v9 = vpop.f32.mrf.mxu3 }
 0x2d9   : > { %v2838_v49 = vsel %vm2789_vm4, %v2623_v29, %v2814_v63  ;;  %v8308_v38 = vpop.f32.mrf.mxu2 }
 0x2da   : > { %v2871_v43 = vsel %vm8268_vm14, %v2838_v49, 0.0  ;;  %v2596_v17 = vpop.f32.mrf.mxu0 }
 0x2db   : > { %v8297_v25 = vpack.c.bf16 %v2871_v43, %v2870_v33  ;;  %v2597_v40 = vadd.f32 %v2596_v17, %v2568_v1  ;;  %v2632_v33 = vpop.f32.mrf.mxu1  ;;  %v2573_v17 = vadd.f32 %v2572_v51, %v2544_v4 }
 0x2dc   : > { %v8299_v35 = vld [vmem:[#allocation3] sm:$0xff] }
 0x2dd   : > { %v3760_v62 = vld [vmem:[#allocation3 + $0x4] sm:$0xff]  ;;  %2909 = vst [vmem:[#allocation3 + $0x14] sm:$0xff] %v8297_v25  ;;  %v2626_v0 = vadd.f32 %v2625_v41, %v2597_v40  ;;  %3092 = vrot.lane.b32.xlu1 %v8299_v35, %s7054_s14  ;;  %2955 = vrot.lane.b32.xlu0 %v8299_v35, %s7055_s15 }
 0x2de   : > { %3487 = vst [vmem:[#allocation2 + $0x180] sm:$0xff] %v3760_v62  ;;  %v2517_v62 = vadd.f32 %v8179_v18, %v8208_v47 }
 0x2df   : > { %vm2792_vm6 = vcmp.gt.f32.partialorder %v2626_v0, 0.0  ;;  %v2817_v26 = vmul.f32 %v8162_v61, %v2626_v0 }
 0x2e0   : > { %v2577_v1 = vpop.f32.mrf.mxu3  ;;  %v2546_v10 = vadd.f32 %v8182_v8, %v2517_v62  ;;  %v2522_v62 = vadd.f32 %v8210_v15, %v8164_v5 }
 0x2e1   : > { %v2841_v28 = vsel %vm2792_vm6, %v2626_v0, %v2817_v26  ;;  %v8342_v20 = vpop.f32.mrf.mxu2 }
 0x2e2   : > { %v2874_v41 = vsel %vm8268_vm14, %v2841_v28, 0.0  ;;  %v2598_v29 = vpop.f32.mrf.mxu0  ;;  %v2575_v28 = vadd.f32 %v2574_v9, %v2546_v10  ;;  %v2551_v37 = vadd.f32 %v8213_v21, %v2522_v62 }
 0x2e3   : > { %v8318_v60 = vpack.c.bf16 %v2874_v41, %v2873_v52  ;;  %v2599_v63 = vadd.f32 %v2598_v29, %v2570_v2  ;;  %v2635_v52 = vpop.f32.mrf.mxu1 }
 0x2e4   : > { %v8320_v49 = vld [vmem:[#allocation3 + $0x10] sm:$0xff] }
 0x2e5   : > { %v8322_v30 = vld [vmem:[#allocation3 + $0x14] sm:$0xff]  ;;  %2911 = vst [vmem:[#allocation3 + $0x24] sm:$0xff] %v8318_v60  ;;  %v2628_v43 = vadd.f32 %v2627_v42, %v2599_v63  ;;  %3096 = vrot.lane.b32.xlu0 %v8320_v49, %s7054_s14  ;;  %2959 = vrot.lane.b32.xlu2 %v8320_v49, %s7055_s15  ;;  %v2520_v63 = vadd.f32 %v8193_v59, %v8084_v14 }
 0x2e6   : > { %3489 = vst [vmem:[#allocation2 + $0x18c] sm:$0xff] %v8322_v30 }
 0x2e7   : > { %vm2795_vm8 = vcmp.gt.f32.partialorder %v2628_v43, 0.0  ;;  %v2820_v48 = vmul.f32 %v8162_v61, %v2628_v43  ;;  %v2549_v22 = vadd.f32 %v8196_v50, %v2520_v63 }
 0x2e8   : > { %v2579_v18 = vpop.f32.mrf.mxu3 }
 0x2e9   : > { %v2844_v45 = vsel %vm2795_vm8, %v2628_v43, %v2820_v48  ;;  %v8375_v59 = vpop.f32.mrf.mxu2 }
 0x2ea   : > { %v2877_v40 = vsel %vm8268_vm14, %v2844_v45, 0.0  ;;  %v2601_v42 = vpop.f32.mrf.mxu0  ;;  %v2578_v45 = vadd.f32 %v2577_v1, %v2549_v22 }
 0x2eb   : > { %v8340_v0 = vpack.c.bf16 %v2877_v40, %v2876_v53  ;;  %v2602_v7 = vadd.f32 %v2601_v42, %v2573_v17  ;;  %v2637_v34 = vpop.f32.mrf.mxu1 }
 0x2ec   : > { %v8344_v26 = vld [vmem:[#allocation3 + $0x20] sm:$0xff] }
 0x2ed   : > { %v8346_v51 = vld [vmem:[#allocation3 + $0x24] sm:$0xff]  ;;  %2913 = vst [vmem:[#allocation3 + $0x34] sm:$0xff] %v8340_v0  ;;  %v2631_v2 = vadd.f32 %v2630_v24, %v2602_v7  ;;  %2963 = vrot.lane.b32.xlu1 %v8344_v26, %s7055_s15  ;;  %3374 = vrot.lane.b32.xlu2 %v8344_v26, %s7056_s16 }
 0x2ee   : > { %3491 = vst [vmem:[#allocation2 + $0x198] sm:$0xff] %v8346_v51 }
 0x2ef   : > { %vm2798_vm9 = vcmp.gt.f32.partialorder %v2631_v2, 0.0  ;;  %v2823_v53 = vmul.f32 %v8162_v61, %v2631_v2 }
 0x2f0   : > { %v2678_v17 = vpop.f32.mrf.mxu3 }
 0x2f1   : > { %v2847_v41 = vsel %vm2798_vm9, %v2631_v2, %v2823_v53  ;;  %v2765_v15 = vpop.f32.mrf.mxu2 }
 0x2f2   : > { %v2880_v24 = vsel %vm8268_vm14, %v2847_v41, 0.0  ;;  %v2603_v29 = vpop.f32.mrf.mxu0 }
 0x2f3   : > { %v8364_v43 = vpack.c.bf16 %v2880_v24, %v2879_v3  ;;  %v2604_v8 = vadd.f32 %v2603_v29, %v2575_v28  ;;  %v2736_v10 = vpop.f32.mrf.mxu1  ;;  %v2580_v28 = vadd.f32 %v2579_v18, %v2551_v37 }
 0x2f4   : > { %v8366_v4 = vld [vmem:[#allocation3 + $0x30] sm:$0xff] }
 0x2f5   : > { %v8368_v48 = vld [vmem:[#allocation3 + $0x34] sm:$0xff]  ;;  %2915 = vst [vmem:[#allocation3 + $0x44] sm:$0xff] %v8364_v43  ;;  %v2633_v9 = vadd.f32 %v2632_v33, %v2604_v8  ;;  %3100 = vrot.lane.b32.xlu1 %v8344_v26, %s7054_s14  ;;  %2967 = vrot.lane.b32.xlu0 %v8366_v4, %s7055_s15 }
 0x2f6   : > { %3493 = vst [vmem:[#allocation2 + $0x1a4] sm:$0xff] %v8368_v48 }
 0x2f7   : > { %vm2801_vm10 = vcmp.gt.f32.partialorder %v2633_v9, 0.0  ;;  %v2826_v3 = vmul.f32 %v8162_v61, %v2633_v9 }
 0x2f8   : > { %v2680_v24 = vpop.f32.mrf.mxu3 }
 0x2f9   : > { %v2850_v40 = vsel %vm2801_vm10, %v2633_v9, %v2826_v3  ;;  %v2681_v12 = vadd.f32 %v2680_v24, %v2652_v32 }
 0x2fa   : > { %v2883_v33 = vsel %vm8268_vm14, %v2850_v40, 0.0  ;;  %v2606_v42 = vpop.f32.mrf.mxu0 }
 0x2fb   : > { %v8388_v7 = vpack.c.bf16 %v2883_v33, %v2882_v57  ;;  %v2607_v50 = vadd.f32 %v2606_v42, %v2578_v45  ;;  %v2738_v39 = vpop.f32.mrf.mxu1 }
 0x2fc   : > { %v8390_v2 = vld [vmem:[#allocation3 + $0x40] sm:$0xff] }
 0x2fd   : > { %v3640_v53 = vld [vmem:[#allocation3 + $0x44] sm:$0xff]  ;;  %2917 = vst [vmem:[#allocation3 + $0x54] sm:$0xff] %v8388_v7  ;;  %v2636_v1 = vadd.f32 %v2635_v52, %v2607_v50  ;;  %3378 = vrot.lane.b32.xlu1 %v8366_v4, %s7056_s16  ;;  %3104 = vrot.lane.b32.xlu0 %v8366_v4, %s7054_s14 }
 0x2fe   : > { %2971 = vrot.lane.b32.xlu2 %v8390_v2, %s7055_s15  ;;  %3495 = vst [vmem:[#allocation2 + $0x1b0] sm:$0xff] %v3640_v53 }
 0x2ff   : > { %vm2804_vm12 = vcmp.gt.f32.partialorder %v2636_v1, 0.0  ;;  %v2829_v57 = vmul.f32 %v8162_v61, %v2636_v1 }
 0x300   : > { %v2683_v50 = vpop.f32.mrf.mxu3 }
 0x301   : > { %v2853_v41 = vsel %vm2804_vm12, %v2636_v1, %v2829_v57 }
 0x302   : > { %v2886_v52 = vsel %vm8268_vm14, %v2853_v41, 0.0  ;;  %v2608_v29 = vpop.f32.mrf.mxu0  ;;  %v2655_v41 = vadd.f32 %v8254_v19, %v8110_v13  ;;  %v2657_v19 = vadd.f32 %v8266_v6, %v8184_v27  ;;  %v2660_v6 = vadd.f32 %v8287_v54, %v8073_v16 }
 0x303   : > { %v8407_v63 = vpack.c.bf16 %v2886_v52, %v2885_v23  ;;  %v2609_v8 = vadd.f32 %v2608_v29, %v2580_v28  ;;  %v2650_v23 = vadd.f32 %v8228_v44, %v8058_v11  ;;  %v2863_v11 = vperm.slane %v8154_v58, 2  ;;  %v2741_v58 = vpop.f32.mrf.mxu1 }
 0x304   : > { %v8409_v9 = vld [vmem:[#allocation3 + $0x50] sm:$0xff]  ;;  %v2684_v52 = vadd.f32 %v2683_v50, %v2655_v41 }
 0x305   : > { %v3642_v21 = vld [vmem:[#allocation3 + $0x54] sm:$0xff]  ;;  %2919 = vst [vmem:[#allocation3 + $0x64] sm:$0xff] %v8407_v63  ;;  %v2638_v22 = vadd.f32 %v2637_v34, %v2609_v8  ;;  %3108 = vrot.lane.b32.xlu0 %v8390_v2, %s7054_s14  ;;  %2975 = vrot.lane.b32.xlu1 %v8409_v9, %s7055_s15  ;;  %v2767_v34 = vpop.f32.mrf.mxu2  ;;  %v2679_v3 = vadd.f32 %v2678_v17, %v2650_v23  ;;  %vm8441_vm13 = vcmp.eq.s32.totalorder %v2863_v11, 1 }
 0x306   : > { %3499 = vst [vmem:[#allocation2 + $0x1c8] sm:$0xff] %v8407_v63  ;;  %3382 = vrot.lane.b32.xlu2 %v8390_v2, %s7056_s16 }
 0x307   : > { %vm2807_vm15 = vcmp.gt.f32.partialorder %v2638_v22, 0.0  ;;  %v2832_v18 = vmul.f32 %v8162_v61, %v2638_v22  ;;  %3497 = vst [vmem:[#allocation2 + $0x1bc] sm:$0xff] %v3642_v21 }
 0x309   : > { %v2856_v45 = vsel %vm2807_vm15, %v2638_v22, %v2832_v18 }
 0x30a   : > { %v2889_v40 = vsel %vm8268_vm14, %v2856_v45, 0.0  ;;  %v2707_v33 = vpop.f32.mrf.mxu0 }
 0x30b   : > { %v8428_v42 = vpack.c.bf16 %v2889_v40, %v2888_v56  ;;  %v2708_v62 = vadd.f32 %v2707_v33, %v2679_v3  ;;  %v2743_v21 = vpop.f32.mrf.mxu1 }
 0x30c   : > { %v8448_v28 = vld [vmem:[#allocation3 + $0x60] sm:$0xff] }
 0x30d   : > { %2921 = vst [vmem:[#allocation3 + $0x74] sm:$0xff] %v8428_v42  ;;  %v2737_v44 = vadd.f32 %v2736_v10, %v2708_v62  ;;  %3551 = vrot.lane.b32.xlu0 %v8364_v43, %s7057_s17  ;;  %3386 = vrot.lane.b32.xlu1 %v8409_v9, %s7056_s16  ;;  %v2770_v53 = vpop.f32.mrf.mxu2 }
 0x30e   : > { %3501 = vst [vmem:[#allocation2 + $0x1d4] sm:$0xff] %v8428_v42  ;;  %3112 = vrot.lane.b32.xlu2 %v8409_v9, %s7054_s14 }
 0x30f   : > { %v2766_v36 = vadd.f32 %v2765_v15, %v2737_v44  ;;  %v2685_v15 = vpop.f32.mrf.mxu3 }
 0x310   : > { %v2686_v33 = vadd.f32 %v2685_v15, %v2657_v19 }
 0x311   : > { %vm2787_vm14 = vcmp.gt.f32.partialorder %v2766_v36, 0.0  ;;  %v2812_v17 = vmul.f32 %v8162_v61, %v2766_v36 }
 0x312   : > { %v2709_v10 = vpop.f32.mrf.mxu0 }
 0x313   : > { %v2836_v1 = vsel %vm2787_vm14, %v2766_v36, %v2812_v17  ;;  %v2710_v37 = vadd.f32 %v2709_v10, %v2681_v12  ;;  %v2746_v36 = vpop.f32.mrf.mxu1  ;;  %vm3141_vm14 = vcmask 146432  }
 0x314   : > { %v2869_v57 = vsel %vm8441_vm13, %v2836_v1, 0.0  ;;  %v3074_v23 = vld [vmem:[#allocation3 + $0x70] sm:$0xff] }
 0x315   : > { %v2892_v46 = vpack.c.bf16 %v2869_v57, %v2869_v57  ;;  %v2739_v31 = vadd.f32 %v2738_v39, %v2710_v37  ;;  %3543 = vrot.lane.b32.xlu0 %v8318_v60, %s7057_s17  ;;  %2979 = vrot.lane.b32.xlu1 %v8448_v28, %s7055_s15  ;;  %v2772_v18 = vpop.f32.mrf.mxu2 }
 0x316   : > { %3555 = vrot.lane.b32.xlu2 %v8388_v7, %s7057_s17 }
 0x317   : > { %2908 = vst.msk [vmem:[#allocation3 + $0xc] sm:$0xf] %vm397_vm0, %v2892_v46  ;;  %v2768_v24 = vadd.f32 %v2767_v34, %v2739_v31  ;;  %v2688_v40 = vpop.f32.mrf.mxu3 }
 0x318   : > { %v2689_v10 = vadd.f32 %v2688_v40, %v2660_v6 }
 0x319   : > { %vm2790_vm4 = vcmp.gt.f32.partialorder %v2768_v24, 0.0  ;;  %v2815_v29 = vmul.f32 %v8162_v61, %v2768_v24 }
 0x31a   : > { %v2712_v8 = vpop.f32.mrf.mxu0 }
 0x31b   : > { %v2839_v60 = vsel %vm2790_vm4, %v2768_v24, %v2815_v29  ;;  %v2713_v22 = vadd.f32 %v2712_v8, %v2684_v52  ;;  %v2748_v54 = vpop.f32.mrf.mxu1  ;;  %v2662_v52 = vadd.f32 %v8308_v38, %v8208_v47  ;;  %v2665_v47 = vadd.f32 %v8342_v20, %v8084_v14 }
 0x31c   : > { %v2872_v39 = vsel %vm8441_vm13, %v2839_v60, 0.0  ;;  %vm3004_vm4 = vcmask 154624  }
 0x31d   : > { %v2894_v3 = vpack.c.bf16 %v2872_v39, %v2872_v39  ;;  %v2742_v45 = vadd.f32 %v2741_v58, %v2713_v22  ;;  %3559 = vrot.lane.b32.xlu0 %v8407_v63, %s7057_s17  ;;  %3120 = vrot.lane.b32.xlu1 %v3074_v23, %s7054_s14  ;;  %v2775_v27 = vpop.f32.mrf.mxu2 }
 0x31e   : > { %v3472_v13 = vld [vmem:[#allocation3 + $0xc] sm:$0xf]  ;;  %3116 = vrot.lane.b32.xlu2 %v8448_v28, %s7054_s14 }
 0x31f   : > { %3488 = vst.msk [vmem:[#allocation2 + $0x188] sm:$0xf] %vm397_vm0, %v3472_v13  ;;  %v2771_v34 = vadd.f32 %v2770_v53, %v2742_v45  ;;  %v2690_v37 = vpop.f32.mrf.mxu3 }
 0x320   : > { %2910 = vst.msk [vmem:[#allocation3 + $0x1c] sm:$0xf] %vm397_vm0, %v2894_v3 }
 0x321   : > { %vm2793_vm6 = vcmp.gt.f32.partialorder %v2771_v34, 0.0  ;;  %v2818_v62 = vmul.f32 %v8162_v61, %v2771_v34 }
 0x322   : > { %v2714_v50 = vpop.f32.mrf.mxu0 }
 0x323   : > { %v2842_v11 = vsel %vm2793_vm6, %v2771_v34, %v2818_v62  ;;  %v2715_v44 = vadd.f32 %v2714_v50, %v2686_v33  ;;  %v2751_v19 = vpop.f32.mrf.mxu1  ;;  %vm3584_vm6 = vcmask 1039360  }
 0x324   : > { %v2875_v32 = vsel %vm8441_vm13, %v2842_v11, 0.0  ;;  %v8510_v11 = vld [vmem:[#allocation3 + $0x8] sm:$0xff] }
 0x325   : > { %v2896_v58 = vpack.c.bf16 %v2875_v32, %v2875_v32  ;;  %v2744_v12 = vadd.f32 %v2743_v21, %v2715_v44  ;;  %2983 = vrot.lane.b32.xlu0 %v3074_v23, %s7055_s15  ;;  %3394 = vrot.lane.b32.xlu1 %v3074_v23, %s7056_s16  ;;  %v2777_v8 = vpop.f32.mrf.mxu2  ;;  %v2691_v21 = vadd.f32 %v2690_v37, %v2662_v52 }
 0x326   : > { %3390 = vrot.lane.b32.xlu2 %v8448_v28, %s7056_s16 }
 0x327   : > { %2912 = vst.msk [vmem:[#allocation3 + $0x2c] sm:$0xf] %vm397_vm0, %v2896_v58  ;;  %v2773_v17 = vadd.f32 %v2772_v18, %v2744_v12  ;;  %v3474_v1 = vld [vmem:[#allocation3 + $0x1c] sm:$0xf]  ;;  %v2693_v18 = vpop.f32.mrf.mxu3 }
 0x328   : > { %3490 = vst.msk [vmem:[#allocation2 + $0x194] sm:$0xf] %vm397_vm0, %v3474_v1  ;;  %v2694_v34 = vadd.f32 %v2693_v18, %v2665_v47  ;;  %v8525_v1 = vld [vmem:[#allocation3 + $0x18] sm:$0xff] }
 0x329   : > { %vm2796_vm8 = vcmp.gt.f32.partialorder %v2773_v17, 0.0  ;;  %v2821_v53 = vmul.f32 %v8162_v61, %v2773_v17 }
 0x32a   : > { %v2717_v57 = vpop.f32.mrf.mxu0 }
 0x32b   : > { %v2845_v46 = vsel %vm2796_vm8, %v2773_v17, %v2821_v53  ;;  %v2718_v31 = vadd.f32 %v2717_v57, %v2689_v10  ;;  %v2753_v17 = vpop.f32.mrf.mxu1  ;;  %vm3278_vm8 = vcmask 138240  }
 0x32c   : > { %v2878_v15 = vsel %vm8441_vm13, %v2845_v46, 0.0 }
 0x32d   : > { %v2898_v41 = vpack.c.bf16 %v2878_v15, %v2878_v15  ;;  %v2747_v24 = vadd.f32 %v2746_v36, %v2718_v31  ;;  %3535 = vrot.lane.b32.xlu0 %v8282_v55, %s7057_s17  ;;  %3370 = vrot.lane.b32.xlu1 %v8320_v49, %s7056_s16  ;;  %v2667_v36 = vadd.f32 %v8375_v59, %v8164_v5 }
 0x32e   : > { %v3476_v16 = vld [vmem:[#allocation3 + $0x2c] sm:$0xf]  ;;  %3563 = vrot.lane.b32.xlu2 %v8428_v42, %s7057_s17 }
 0x32f   : > { %3492 = vst.msk [vmem:[#allocation2 + $0x1a0] sm:$0xf] %vm397_vm0, %v3476_v16  ;;  %v2776_v29 = vadd.f32 %v2775_v27, %v2747_v24  ;;  %v2695_v44 = vpop.f32.mrf.mxu3  ;;  %v3506_v16 = vld [vmem:[#allocation3 + $0x1c] sm:$0xf] }
 0x330   : > { %2914 = vst.msk [vmem:[#allocation3 + $0x3c] sm:$0xf] %vm397_vm0, %v2898_v41  ;;  %v2696_v12 = vadd.f32 %v2695_v44, %v2667_v36 }
 0x331   : > { %vm2799_vm9 = vcmp.gt.f32.partialorder %v2776_v29, 0.0  ;;  %v2824_v55 = vmul.f32 %v8162_v61, %v2776_v29 }
 0x332   : > { %v2719_v60 = vpop.f32.mrf.mxu0 }
 0x333   : > { %v2848_v22 = vsel %vm2799_vm9, %v2776_v29, %v2824_v55  ;;  %v2720_v39 = vadd.f32 %v2719_v60, %v2691_v21  ;;  %v8548_v29 = vld [vmem:[#allocation3 + $0x28] sm:$0xff] }
 0x334   : > { %v2881_v3 = vsel %vm8441_vm13, %v2848_v22, 0.0  ;;  %v3508_v60 = vld [vmem:[#allocation3 + $0x2c] sm:$0xf] }
 0x335   : > { %v2900_v45 = vpack.c.bf16 %v2881_v3, %v2881_v3  ;;  %v2749_v13 = vadd.f32 %v2748_v54, %v2720_v39  ;;  %3257 = vrot.lane.b32.xlu0 %v3074_v23, %s7058_s18  ;;  %3253 = vrot.lane.b32.xlu1 %v8448_v28, %s7058_s18  ;;  %v2780_v23 = vpop.f32.mrf.mxu2  ;;  %v3504_v54 = vld [vmem:[#allocation3 + $0xc] sm:$0xf] }
 0x336   : > { %3547 = vrot.lane.b32.xlu2 %v8340_v0, %s7057_s17 }
 0x337   : > { %2916 = vst.msk [vmem:[#allocation3 + $0x4c] sm:$0xf] %vm397_vm0, %v2900_v45  ;;  %v2778_v38 = vadd.f32 %v2777_v8, %v2749_v13  ;;  %v3478_v33 = vld [vmem:[#allocation3 + $0x3c] sm:$0xf] }
 0x338   : > { %3494 = vst.msk [vmem:[#allocation2 + $0x1ac] sm:$0xf] %vm397_vm0, %v3478_v33  ;;  %v3510_v55 = vld [vmem:[#allocation3 + $0x3c] sm:$0xf] }
 0x339   : > { %vm2802_vm10 = vcmp.gt.f32.partialorder %v2778_v38, 0.0  ;;  %v2827_v40 = vmul.f32 %v8162_v61, %v2778_v38  ;;  %v2930_v45 = vld [vmem:[#allocation3 + $0x38] sm:$0xff] }
 0x33a   : > { %v2722_v62 = vpop.f32.mrf.mxu0 }
 0x33b   : > { %v2851_v28 = vsel %vm2802_vm10, %v2778_v38, %v2827_v40  ;;  %v2723_v50 = vadd.f32 %v2722_v62, %v2694_v34 }
 0x33c   : > { %v2884_v0 = vsel %vm8441_vm13, %v2851_v28, 0.0 }
 0x33d   : > { %v2902_v14 = vpack.c.bf16 %v2884_v0, %v2884_v0  ;;  %v2752_v20 = vadd.f32 %v2751_v19, %v2723_v50  ;;  %3368 = vrot.lane.b32.xlu0 %v8510_v11, %s7056_s16  ;;  %3249 = vrot.lane.b32.xlu1 %v8409_v9, %s7058_s18  ;;  %v2782_v37 = vpop.f32.mrf.mxu2 }
 0x33e   : > { %v3480_v32 = vld [vmem:[#allocation3 + $0x4c] sm:$0xf]  ;;  %3366 = vrot.lane.b32.xlu2 %v8299_v35, %s7056_s16 }
 0x33f   : > { %3496 = vst.msk [vmem:[#allocation2 + $0x1b8] sm:$0xf] %vm397_vm0, %v3480_v32  ;;  %v2781_v58 = vadd.f32 %v2780_v23, %v2752_v20  ;;  %v8531_v57 = vpop.permute.xlu2 %2959  ;;  %v2932_v3 = vld [vmem:[#allocation3 + $0x48] sm:$0xff] }
 0x340   : > { %2918 = vst.msk [vmem:[#allocation3 + $0x5c] sm:$0xf] %vm397_vm0, %v2902_v14  ;;  %v3512_v50 = vld [vmem:[#allocation3 + $0x4c] sm:$0xf] }
 0x341   : > { %vm2805_vm12 = vcmp.gt.f32.partialorder %v2781_v58, 0.0  ;;  %v2830_v27 = vmul.f32 %v8162_v61, %v2781_v58 }
 0x342   : > { %v2724_v6 = vpop.f32.mrf.mxu0 }
 0x343   : > { %v2854_v9 = vsel %vm2805_vm12, %v2781_v58, %v2830_v27  ;;  %v2725_v10 = vadd.f32 %v2724_v6, %v2696_v12 }
 0x344   : > { %v2887_v53 = vsel %vm8441_vm13, %v2854_v9, 0.0 }
 0x345   : > { %v2904_v5 = vpack.c.bf16 %v2887_v53, %v2887_v53  ;;  %v2754_v59 = vadd.f32 %v2753_v17, %v2725_v10  ;;  %2961 = vrot.lane.b32.xlu0 %v8525_v1, %s7055_s15  ;;  %2957 = vrot.lane.b32.xlu1 %v8510_v11, %s7055_s15 }
 0x346   : > { %3539 = vrot.lane.b32.xlu2 %v8297_v25, %s7057_s17 }
 0x347   : > { %2920 = vst.msk [vmem:[#allocation3 + $0x6c] sm:$0xf] %vm397_vm0, %v2904_v5  ;;  %v2783_v46 = vadd.f32 %v2782_v37, %v2754_v59  ;;  %v3482_v15 = vld [vmem:[#allocation3 + $0x5c] sm:$0xf] }
 0x348   : > { %3498 = vst.msk [vmem:[#allocation2 + $0x1c4] sm:$0xf] %vm397_vm0, %v3482_v15  ;;  %v3071_v28 = vld [vmem:[#allocation3 + $0x58] sm:$0xff] }
 0x349   : > { %vm2808_vm15 = vcmp.gt.f32.partialorder %v2783_v46, 0.0  ;;  %v2833_v31 = vmul.f32 %v8162_v61, %v2783_v46  ;;  %v8546_v61 = vpop.permute.xlu2 %3374  ;;  %v3514_v44 = vld [vmem:[#allocation3 + $0x5c] sm:$0xf] }
 0x34b   : > { %v2857_v41 = vsel %vm2808_vm15, %v2783_v46, %v2833_v31 }
 0x34c   : > { %v2890_v24 = vsel %vm8441_vm13, %v2857_v41, 0.0  ;;  %vm3415_vm13 = vcmask 7168  }
 0x34d   : > { %v2906_v52 = vpack.c.bf16 %v2890_v24, %v2890_v24  ;;  %3541 = vrot.lane.b32.xlu0 %v3506_v16, %s7057_s17  ;;  %3537 = vrot.lane.b32.xlu1 %v3504_v54, %s7057_s17 }
 0x34e   : > { %v3484_v25 = vld [vmem:[#allocation3 + $0x6c] sm:$0xf]  ;;  %3245 = vrot.lane.b32.xlu2 %v8390_v2, %s7058_s18 }
 0x34f   : > { %3500 = vst.msk [vmem:[#allocation2 + $0x1d0] sm:$0xf] %vm397_vm0, %v3484_v25  ;;  %v8550_v56 = vpop.permute.xlu0 %2955  ;;  %v8558_v2 = vpop.permute.xlu1 %3092  ;;  %v3073_v12 = vld [vmem:[#allocation3 + $0x68] sm:$0xff] }
 0x350   : > { %2922 = vst.msk [vmem:[#allocation3 + $0x7c] sm:$0xf] %vm397_vm0, %v2906_v52  ;;  %v3516_v27 = vld [vmem:[#allocation3 + $0x6c] sm:$0xf] }
 0x355   : > { %3376 = vrot.lane.b32.xlu0 %v8548_v29, %s7056_s16  ;;  %3098 = vrot.lane.b32.xlu1 %v8525_v1, %s7054_s14 }
 0x356   : > { %3094 = vrot.lane.b32.xlu2 %v8510_v11, %s7054_s14 }
 0x357   : > { %v3486_v21 = vld [vmem:[#allocation3 + $0x7c] sm:$0xf]  ;;  %v8567_v22 = vpop.permute.xlu0 %3096 }
 0x358   : > { %v8560_v8 = vpop.permute.xlu2 %2971  ;;  %3502 = vst.msk [vmem:[#allocation2 + $0x1dc] sm:$0xf] %vm397_vm0, %v3486_v21  ;;  %v2938_v10 = vld [vmem:[#allocation3 + $0x78] sm:$0xff]  ;;  %v3124_v21 = vrot.slane %v8558_v2, 4 }
 0x359   : > { %v3518_v59 = vld [vmem:[#allocation3 + $0x7c] sm:$0xf] }
 0x35d   : > { %3549 = vrot.lane.b32.xlu0 %v3510_v55, %s7057_s17  ;;  %3545 = vrot.lane.b32.xlu1 %v3508_v60, %s7057_s17 }
 0x35e   : > { %3372 = vrot.lane.b32.xlu2 %v8525_v1, %s7056_s16 }
 0x35f   : > { %v8569_v39 = vpop.permute.xlu1 %2963 }
 0x360   : > { %v8571_v18 = vpop.permute.xlu2 %3382 }
 0x365   : > { %2973 = vrot.lane.b32.xlu0 %v2932_v3, %s7055_s15  ;;  %2969 = vrot.lane.b32.xlu1 %v2930_v45, %s7055_s15 }
 0x366   : > { %2965 = vrot.lane.b32.xlu2 %v8548_v29, %s7055_s15 }
 0x367   : > { %v8577_v13 = vpop.permute.xlu0 %2967  ;;  %v8579_v47 = vpop.permute.xlu1 %3100 }
 0x368   : > { %v8581_v38 = vpop.permute.xlu2 %3112 }
 0x36d   : > { %3384 = vrot.lane.b32.xlu0 %v2932_v3, %s7056_s16  ;;  %3106 = vrot.lane.b32.xlu1 %v2930_v45, %s7054_s14 }
 0x36e   : > { %3102 = vrot.lane.b32.xlu2 %v8548_v29, %s7054_s14 }
 0x36f   : > { %v8587_v19 = vpop.permute.xlu0 %3104  ;;  %v8589_v34 = vpop.permute.xlu1 %3378 }
 0x370   : > { %v8591_v40 = vpop.permute.xlu2 %3555 }
 0x375   : > { %3247 = vrot.lane.b32.xlu0 %v2932_v3, %s7058_s18  ;;  %3110 = vrot.lane.b32.xlu1 %v2932_v3, %s7054_s14 }
 0x376   : > { %3380 = vrot.lane.b32.xlu2 %v2930_v45, %s7056_s16 }
 0x377   : > { %v8596_v33 = vpop.permute.xlu0 %3108  ;;  %v8598_v62 = vpop.permute.xlu1 %2975 }
 0x378   : > { %v8600_v23 = vpop.permute.xlu2 %3116 }
 0x37d   : > { %3114 = vrot.lane.b32.xlu0 %v3071_v28, %s7054_s14  ;;  %3553 = vrot.lane.b32.xlu1 %v3512_v50, %s7057_s17 }
 0x37e   : > { %3388 = vrot.lane.b32.xlu2 %v3071_v28, %s7056_s16 }
 0x37f   : > { %v8605_v0 = vpop.permute.xlu0 %3551  ;;  %v8607_v14 = vpop.permute.xlu1 %3386 }
 0x380   : > { %v8609_v20 = vpop.permute.xlu2 %3390 }
 0x385   : > { %3557 = vrot.lane.b32.xlu0 %v3514_v44, %s7057_s17  ;;  %2977 = vrot.lane.b32.xlu1 %v3071_v28, %s7055_s15 }
 0x386   : > { %3251 = vrot.lane.b32.xlu2 %v3071_v28, %s7058_s18 }
 0x387   : > { %v8614_v32 = vpop.permute.xlu0 %3543  ;;  %v8616_v36 = vpop.permute.xlu1 %2979 }
 0x388   : > { %v8618_v58 = vpop.permute.xlu2 %3563 }
 0x38d   : > { %3118 = vrot.lane.b32.xlu0 %v3073_v12, %s7054_s14  ;;  %3561 = vrot.lane.b32.xlu1 %v3516_v27, %s7057_s17  ;;  %v2987_v27 = vrot.slane %v8550_v56, 4 }
 0x38e   : > { %2981 = vrot.lane.b32.xlu2 %v3073_v12, %s7055_s15 }
 0x38f   : > { %v8623_v6 = vpop.permute.xlu0 %3559  ;;  %v8625_v17 = vpop.permute.xlu1 %3120 }
 0x390   : > { %v8627_v9 = vpop.permute.xlu2 %3547 }
 0x395   : > { %3392 = vrot.lane.b32.xlu0 %v3073_v12, %s7056_s16  ;;  %2985 = vrot.lane.b32.xlu1 %v2938_v10, %s7055_s15 }
 0x396   : > { %3255 = vrot.lane.b32.xlu2 %v3073_v12, %s7058_s18  ;;  %v2989_v12 = vrot.slane %v8531_v57, 4 }
 0x397   : > { %v8632_v53 = vpop.permute.xlu0 %2983  ;;  %v8634_v37 = vpop.permute.xlu1 %3394 }
 0x398   : > { %v3367_v5 = vpop.permute.xlu2 %3366 }
 0x399   : > { %v3398_v52 = vrot.slane %v3367_v5, 4 }
 0x39d   : > { %3565 = vrot.lane.b32.xlu0 %v3518_v59, %s7057_s17  ;;  %3259 = vrot.lane.b32.xlu1 %v2938_v10, %s7058_s18 }
 0x39e   : > { %3122 = vrot.lane.b32.xlu2 %v2938_v10, %s7054_s14 }
 0x39f   : > { %v8639_v46 = vpop.permute.xlu0 %3535  ;;  %v3371_v31 = vpop.permute.xlu1 %3370 }
 0x3a0   : > { %v8641_v15 = vpop.permute.xlu2 %3539  ;;  %v3400_v59 = vrot.slane %v3371_v31, 4 }
 0x3a5   : > { %3237 = vrot.lane.b32.xlu0 %v8344_v26, %s7058_s18  ;;  %3239 = vrot.lane.b32.xlu1 %v8548_v29, %s7058_s18 }
 0x3a6   : > { %3396 = vrot.lane.b32.xlu2 %v2938_v10, %s7056_s16 }
 0x3a7   : > { %v8648_v41 = vpop.permute.xlu0 %3257  ;;  %v8650_v24 = vpop.permute.xlu1 %3253 }
 0x3a8   : > { %v8652_v16 = vpop.permute.xlu2 %3245 }
 0x3ad   : > { %3243 = vrot.lane.b32.xlu0 %v2930_v45, %s7058_s18  ;;  %3229 = vrot.lane.b32.xlu1 %v8299_v35, %s7058_s18 }
 0x3ae   : > { %3241 = vrot.lane.b32.xlu2 %v8366_v4, %s7058_s18 }
 0x3af   : > { %v3369_v26 = vpop.permute.xlu0 %3368  ;;  %v8659_v54 = vpop.permute.xlu1 %3249 }
 0x3b0   : > { %v3399_v25 = vrot.slane %v3369_v26, 4  ;;  %v3095_v29 = vpop.permute.xlu2 %3094 }
 0x3b1   : > { %v3125_v55 = vrot.slane %v3095_v29, 4 }
 0x3b2   : > { %v3414_v60 = vsel %vm362_vm1, %v3398_v52, %v3399_v25  ;;  %v3417_v3 = vsel %vm3415_vm13, %v3369_v26, %v3399_v25 }
 0x3b3   : > { %v3416_v35 = vsel %vm3415_vm13, %v3367_v5, %v3414_v60  ;;  %3456 = vst.msk [vmem:[#allocation2 + $0x128] sm:$0xf] %vm397_vm0, %v3417_v3  ;;  %v3140_v4 = vsel %vm362_vm1, %v3124_v21, %v3125_v55  ;;  %v3143_v45 = vsel %vm3141_vm14, %v3095_v29, %v3125_v55  ;;  %v3773_v60 = vld [vmem:[#allocation3 + $0x6c] sm:$0xf] }
 0x3b4   : > { %3455 = vst [vmem:[#allocation2 + $0x120] sm:$0xff] %v3416_v35  ;;  %v3142_v28 = vsel %vm3141_vm14, %v8558_v2, %v3140_v4 }
 0x3b5   : > { %3181 = vst [vmem:[#allocation2 + $0x60] sm:$0xff] %v3142_v28  ;;  %3233 = vrot.lane.b32.xlu0 %v8320_v49, %s7058_s18  ;;  %3235 = vrot.lane.b32.xlu1 %v8525_v1, %s7058_s18 }
 0x3b6   : > { %3182 = vst.msk [vmem:[#allocation2 + $0x68] sm:$0xf] %vm397_vm0, %v3143_v45  ;;  %3231 = vrot.lane.b32.xlu2 %v8510_v11, %s7058_s18 }
 0x3b7   : > { %v2962_v50 = vpop.permute.xlu0 %2961  ;;  %v2958_v44 = vpop.permute.xlu1 %2957 }
 0x3b8   : > { %v2990_v2 = vrot.slane %v2962_v50, 4  ;;  %v3373_v10 = vpop.permute.xlu2 %3372  ;;  %v2988_v5 = vrot.slane %v2958_v44, 4 }
 0x3b9   : > { %v3401_v49 = vrot.slane %v3373_v10, 4 }
 0x3ba   : > { %v3007_v26 = vsel %vm362_vm1, %v2989_v12, %v2990_v2  ;;  %v3009_v1 = vsel %vm3004_vm4, %v2962_v50, %v2990_v2  ;;  %v3003_v52 = vsel %vm362_vm1, %v2987_v27, %v2988_v5  ;;  %v3006_v3 = vsel %vm3004_vm4, %v2958_v44, %v2988_v5 }
 0x3bb   : > { %v3008_v11 = vsel %vm3004_vm4, %v8531_v57, %v3007_v26  ;;  %3047 = vst.msk [vmem:[#allocation2 + $0x14] sm:$0xf] %vm397_vm0, %v3009_v1  ;;  %v3418_v25 = vsel %vm362_vm1, %v3400_v59, %v3401_v49  ;;  %v3420_v29 = vsel %vm3415_vm13, %v3373_v10, %v3401_v49  ;;  %v3005_v55 = vsel %vm3004_vm4, %v8550_v56, %v3003_v52  ;;  %v3769_v59 = vld [vmem:[#allocation3 + $0x4c] sm:$0xf]  ;;  %v3775_v49 = vld [vmem:[#allocation3 + $0x7c] sm:$0xf] }
 0x3bc   : > { %3046 = vst [vmem:[#allocation2 + $0xc] sm:$0xff] %v3008_v11  ;;  %v3419_v21 = vsel %vm3415_vm13, %v3371_v31, %v3418_v25  ;;  %v3567_v57 = vrot.slane %v8639_v46, 4  ;;  %v3569_v56 = vrot.slane %v8641_v15, 4  ;;  %v3126_v1 = vrot.slane %v8567_v22, 4 }
 0x3bd   : > { %3457 = vst [vmem:[#allocation2 + $0x12c] sm:$0xff] %v3419_v21  ;;  %3818 = vrot.lane.b32.xlu0 %v3773_v60, %s7044_s8  ;;  %3820 = vrot.lane.b32.xlu1 %v8428_v42, %s7044_s8  ;;  %v2991_v42 = vrot.slane %v8569_v39, 4  ;;  %v3128_v25 = vrot.slane %v8579_v47, 4 }
 0x3be   : > { %3458 = vst.msk [vmem:[#allocation2 + $0x134] sm:$0xf] %vm397_vm0, %v3420_v29  ;;  %3816 = vrot.lane.b32.xlu2 %v8407_v63, %s7044_s8 }
 0x3bf   : > { %3044 = vst [vmem:[#allocation2] sm:$0xff] %v3005_v55  ;;  %v3542_v31 = vpop.permute.xlu0 %3541  ;;  %v3538_v35 = vpop.permute.xlu1 %3537 }
 0x3c0   : > { %3045 = vst.msk [vmem:[#allocation2 + $0x8] sm:$0xf] %vm397_vm0, %v3006_v3  ;;  %v3570_v4 = vrot.slane %v3542_v31, 4  ;;  %v2966_v45 = vpop.permute.xlu2 %2965  ;;  %v3568_v28 = vrot.slane %v3538_v35, 4 }
 0x3c1   : > { %3619 = vst.msk [vmem:[#allocation2 + $0x1f4] sm:$0xf] %vm397_vm0, %v3542_v31  ;;  %v2992_v50 = vrot.slane %v2966_v45, 4 }
 0x3c2   : > { %v3586_v63 = vsel %vm362_vm1, %v3569_v56, %v3570_v4  ;;  %v3583_v44 = vsel %vm362_vm1, %v3567_v57, %v3568_v28  ;;  %3617 = vst.msk [vmem:[#allocation2 + $0x1e8] sm:$0xf] %vm397_vm0, %v3538_v35  ;;  %v3771_v56 = vld [vmem:[#allocation3 + $0x5c] sm:$0xf] }
 0x3c3   : > { %v3587_v12 = vsel %vm3584_vm6, %v8641_v15, %v3586_v63  ;;  %v3010_v27 = vsel %vm362_vm1, %v2991_v42, %v2992_v50  ;;  %v3012_v2 = vsel %vm3004_vm4, %v2966_v45, %v2992_v50  ;;  %v3585_v5 = vsel %vm3584_vm6, %v8639_v46, %v3583_v44 }
 0x3c4   : > { %3618 = vst [vmem:[#allocation2 + $0x1ec] sm:$0xff] %v3587_v12  ;;  %v3011_v10 = vsel %vm3004_vm4, %v8569_v39, %v3010_v27  ;;  %v3402_v39 = vrot.slane %v8546_v61, 4  ;;  %v3571_v45 = vrot.slane %v8614_v32, 4  ;;  %v3404_v63 = vrot.slane %v8589_v34, 4 }
 0x3c5   : > { %3048 = vst [vmem:[#allocation2 + $0x18] sm:$0xff] %v3011_v10  ;;  %3808 = vrot.lane.b32.xlu0 %v8364_v43, %s7044_s8  ;;  %3810 = vrot.lane.b32.xlu1 %v3769_v59, %s7044_s8  ;;  %v3767_v59 = vld [vmem:[#allocation3 + $0x3c] sm:$0xf] }
 0x3c6   : > { %3049 = vst.msk [vmem:[#allocation2 + $0x20] sm:$0xf] %vm397_vm0, %v3012_v2  ;;  %3822 = vrot.lane.b32.xlu2 %v3775_v49, %s7044_s8  ;;  %v3765_v49 = vld [vmem:[#allocation3 + $0x2c] sm:$0xf] }
 0x3c7   : > { %3616 = vst [vmem:[#allocation2 + $0x1e0] sm:$0xff] %v3585_v5  ;;  %v3377_v15 = vpop.permute.xlu0 %3376  ;;  %v3099_v26 = vpop.permute.xlu1 %3098 }
 0x3c8   : > { %v3403_v46 = vrot.slane %v3377_v15, 4  ;;  %v3103_v52 = vpop.permute.xlu2 %3102  ;;  %v3127_v11 = vrot.slane %v3099_v26, 4 }
 0x3c9   : > { %v3129_v43 = vrot.slane %v3103_v52, 4 }
 0x3ca   : > { %v3421_v29 = vsel %vm362_vm1, %v3402_v39, %v3403_v46  ;;  %v3423_v21 = vsel %vm3415_vm13, %v3377_v15, %v3403_v46  ;;  %v3144_v55 = vsel %vm362_vm1, %v3126_v1, %v3127_v11  ;;  %v3146_v4 = vsel %vm3141_vm14, %v3099_v26, %v3127_v11 }
 0x3cb   : > { %v3422_v60 = vsel %vm3415_vm13, %v8546_v61, %v3421_v29  ;;  %3460 = vst.msk [vmem:[#allocation2 + $0x140] sm:$0xf] %vm397_vm0, %v3423_v21  ;;  %v3147_v3 = vsel %vm362_vm1, %v3128_v25, %v3129_v43  ;;  %v3149_v57 = vsel %vm3141_vm14, %v3103_v52, %v3129_v43  ;;  %v3145_v35 = vsel %vm3141_vm14, %v8567_v22, %v3144_v55 }
 0x3cc   : > { %3459 = vst [vmem:[#allocation2 + $0x138] sm:$0xff] %v3422_v60  ;;  %v3148_v31 = vsel %vm3141_vm14, %v8579_v47, %v3147_v3  ;;  %v3573_v22 = vrot.slane %v8627_v9, 4  ;;  %v2993_v26 = vrot.slane %v8577_v13, 4  ;;  %v3408_v46 = vrot.slane %v8607_v14, 4  ;;  %v3761_v3 = vld [vmem:[#allocation3 + $0xc] sm:$0xf] }
 0x3cd   : > { %3185 = vst [vmem:[#allocation2 + $0x78] sm:$0xff] %v3148_v31  ;;  %3814 = vrot.lane.b32.xlu0 %v3771_v56, %s7044_s8  ;;  %3800 = vrot.lane.b32.xlu1 %v8346_v51, %s7044_s8 }
 0x3ce   : > { %3186 = vst.msk [vmem:[#allocation2 + $0x80] sm:$0xf] %vm397_vm0, %v3149_v57  ;;  %3812 = vrot.lane.b32.xlu2 %v8388_v7, %s7044_s8 }
 0x3cf   : > { %3183 = vst [vmem:[#allocation2 + $0x6c] sm:$0xff] %v3145_v35  ;;  %v3550_v61 = vpop.permute.xlu0 %3549  ;;  %v3546_v47 = vpop.permute.xlu1 %3545  ;;  %v3130_v35 = vrot.slane %v8587_v19, 4 }
 0x3d0   : > { %3184 = vst.msk [vmem:[#allocation2 + $0x74] sm:$0xf] %vm397_vm0, %v3146_v4  ;;  %v3574_v28 = vrot.slane %v3550_v61, 4  ;;  %v3381_v42 = vpop.permute.xlu2 %3380  ;;  %v3572_v50 = vrot.slane %v3546_v47, 4 }
 0x3d1   : > { %3623 = vst.msk [vmem:[#allocation2 + $0x20c] sm:$0xf] %vm397_vm0, %v3550_v61  ;;  %v3405_v51 = vrot.slane %v3381_v42, 4  ;;  %v3271_v61 = vrot.slane %v8659_v54, 4 }
 0x3d2   : > { %v3590_v44 = vsel %vm362_vm1, %v3573_v22, %v3574_v28  ;;  %v3588_v7 = vsel %vm362_vm1, %v3571_v45, %v3572_v50  ;;  %3621 = vst.msk [vmem:[#allocation2 + $0x200] sm:$0xf] %vm397_vm0, %v3546_v47 }
 0x3d3   : > { %v3591_v12 = vsel %vm3584_vm6, %v8627_v9, %v3590_v44  ;;  %v3424_v27 = vsel %vm362_vm1, %v3404_v63, %v3405_v51  ;;  %v3426_v2 = vsel %vm3415_vm13, %v3381_v42, %v3405_v51  ;;  %v3589_v5 = vsel %vm3584_vm6, %v8614_v32, %v3588_v7  ;;  %v3644_v7 = vld [vmem:[#allocation3 + $0x64] sm:$0xff] }
 0x3d4   : > { %3622 = vst [vmem:[#allocation2 + $0x204] sm:$0xff] %v3591_v12  ;;  %v3425_v10 = vsel %vm3415_vm13, %v8589_v34, %v3424_v27  ;;  %v2995_v34 = vrot.slane %v8560_v8, 4  ;;  %v3645_v12 = vld [vmem:[#allocation3 + $0x6c] sm:$0xf] }
 0x3d5   : > { %3461 = vst [vmem:[#allocation2 + $0x144] sm:$0xff] %v3425_v10  ;;  %3804 = vrot.lane.b32.xlu0 %v8368_v48, %s7044_s8  ;;  %3806 = vrot.lane.b32.xlu1 %v3767_v59, %s7044_s8  ;;  %v3132_v10 = vrot.slane %v8596_v33, 4 }
 0x3d6   : > { %3462 = vst.msk [vmem:[#allocation2 + $0x14c] sm:$0xf] %vm397_vm0, %v3426_v2  ;;  %3802 = vrot.lane.b32.xlu2 %v3765_v49, %s7044_s8 }
 0x3d7   : > { %3620 = vst [vmem:[#allocation2 + $0x1f8] sm:$0xff] %v3589_v5  ;;  %v2974_v9 = vpop.permute.xlu0 %2973  ;;  %v2970_v15 = vpop.permute.xlu1 %2969 }
 0x3d8   : > { %v2996_v32 = vrot.slane %v2974_v9, 4  ;;  %v3389_v39 = vpop.permute.xlu2 %3388  ;;  %v2994_v1 = vrot.slane %v2970_v15, 4 }
 0x3d9   : > { %v3409_v48 = vrot.slane %v3389_v39, 4 }
 0x3da   : > { %v3016_v52 = vsel %vm362_vm1, %v2995_v34, %v2996_v32  ;;  %v3018_v11 = vsel %vm3004_vm4, %v2974_v9, %v2996_v32  ;;  %v3013_v25 = vsel %vm362_vm1, %v2993_v26, %v2994_v1  ;;  %v3015_v57 = vsel %vm3004_vm4, %v2970_v15, %v2994_v1 }
 0x3db   : > { %v3017_v43 = vsel %vm3004_vm4, %v8560_v8, %v3016_v52  ;;  %3053 = vst.msk [vmem:[#allocation2 + $0x38] sm:$0xf] %vm397_vm0, %v3018_v11  ;;  %v3430_v29 = vsel %vm362_vm1, %v3408_v46, %v3409_v48  ;;  %v3432_v21 = vsel %vm3415_vm13, %v3389_v39, %v3409_v48  ;;  %v3014_v60 = vsel %vm3004_vm4, %v8577_v13, %v3013_v25  ;;  %v8781_v8 = vld [vmem:[#allocation2 + $0x180] sm:$0xff]  ;;  %v3647_v11 = vld [vmem:[#allocation3 + $0x7c] sm:$0xf] }
 0x3dc   : > { %3052 = vst [vmem:[#allocation2 + $0x30] sm:$0xff] %v3017_v43  ;;  %v3431_v55 = vsel %vm3415_vm13, %v8607_v14, %v3430_v29  ;;  %v3406_v14 = vrot.slane %v8571_v18, 4  ;;  %v2999_v9 = vrot.slane %v8616_v36, 4 }
 0x3dd   : > { %3465 = vst [vmem:[#allocation2 + $0x15c] sm:$0xff] %v3431_v55  ;;  %3794 = vrot.lane.b32.xlu0 %v3761_v3, %s7044_s8  ;;  %3796 = vrot.lane.b32.xlu1 %v8322_v30, %s7044_s8  ;;  %v3273_v3 = vrot.slane %v8650_v24, 4 }
 0x3de   : > { %3466 = vst.msk [vmem:[#allocation2 + $0x164] sm:$0xf] %vm397_vm0, %v3432_v21  ;;  %3792 = vrot.lane.b32.xlu2 %v8781_v8, %s7044_s8 }
 0x3df   : > { %3050 = vst [vmem:[#allocation2 + $0x24] sm:$0xff] %v3014_v60  ;;  %v3385_v13 = vpop.permute.xlu0 %3384  ;;  %v3107_v31 = vpop.permute.xlu1 %3106 }
 0x3e0   : > { %3051 = vst.msk [vmem:[#allocation2 + $0x2c] sm:$0xf] %vm397_vm0, %v3015_v57  ;;  %v3407_v56 = vrot.slane %v3385_v13, 4  ;;  %v3252_v4 = vpop.permute.xlu2 %3251  ;;  %v3131_v30 = vrot.slane %v3107_v31, 4 }
 0x3e1   : > { %v3272_v47 = vrot.slane %v3252_v4, 4 }
 0x3e2   : > { %v3427_v45 = vsel %vm362_vm1, %v3406_v14, %v3407_v56  ;;  %v3429_v22 = vsel %vm3415_vm13, %v3385_v13, %v3407_v56  ;;  %v3150_v28 = vsel %vm362_vm1, %v3130_v35, %v3131_v30  ;;  %v3152_v27 = vsel %vm3141_vm14, %v3107_v31, %v3131_v30 }
 0x3e3   : > { %v3428_v42 = vsel %vm3415_vm13, %v8571_v18, %v3427_v45  ;;  %3464 = vst.msk [vmem:[#allocation2 + $0x158] sm:$0xf] %vm397_vm0, %v3429_v22  ;;  %v3293_v50 = vsel %vm362_vm1, %v3271_v61, %v3272_v47  ;;  %v3295_v63 = vsel %vm3278_vm8, %v3252_v4, %v3272_v47  ;;  %v3151_v44 = vsel %vm3141_vm14, %v8587_v19, %v3150_v28  ;;  %v3763_v18 = vld [vmem:[#allocation3 + $0x1c] sm:$0xf]  ;;  %v3901_v45 = vld [vmem:[#allocation3 + $0x6c] sm:$0xf] }
 0x3e4   : > { %3463 = vst [vmem:[#allocation2 + $0x150] sm:$0xff] %v3428_v42  ;;  %v3294_v51 = vsel %vm3278_vm8, %v8659_v54, %v3293_v50  ;;  %v3269_v19 = vrot.slane %v8652_v16, 4  ;;  %v3903_v47 = vld [vmem:[#allocation3 + $0x7c] sm:$0xf]  ;;  %v3577_v28 = vrot.slane %v8591_v40, 4 }
 0x3e5   : > { %3328 = vst [vmem:[#allocation2 + $0xfc] sm:$0xff] %v3294_v51  ;;  %3688 = vrot.lane.b32.xlu0 %v3644_v7, %s7045_s9  ;;  %3690 = vrot.lane.b32.xlu1 %v3645_v12, %s7045_s9 }
 0x3e6   : > { %3329 = vst.msk [vmem:[#allocation2 + $0x104] sm:$0xf] %vm397_vm0, %v3295_v63  ;;  %3798 = vrot.lane.b32.xlu2 %v3763_v18, %s7044_s8  ;;  %v3138_v63 = vrot.slane %v8625_v17, 4 }
 0x3e7   : > { %3187 = vst [vmem:[#allocation2 + $0x84] sm:$0xff] %v3151_v44  ;;  %v3248_v2 = vpop.permute.xlu0 %3247  ;;  %v3111_v54 = vpop.permute.xlu1 %3110 }
 0x3e8   : > { %3188 = vst.msk [vmem:[#allocation2 + $0x8c] sm:$0xf] %vm397_vm0, %v3152_v27  ;;  %v3270_v5 = vrot.slane %v3248_v2, 4  ;;  %v2982_v59 = vpop.permute.xlu2 %2981  ;;  %v3133_v49 = vrot.slane %v3111_v54, 4 }
 0x3e9   : > { %v3000_v15 = vrot.slane %v2982_v59, 4 }
 0x3ea   : > { %v3290_v34 = vsel %vm362_vm1, %v3269_v19, %v3270_v5  ;;  %v3292_v26 = vsel %vm3278_vm8, %v3248_v2, %v3270_v5  ;;  %v3153_v32 = vsel %vm362_vm1, %v3132_v10, %v3133_v49  ;;  %v3155_v25 = vsel %vm3141_vm14, %v3111_v54, %v3133_v49  ;;  %v3641_v19 = vld [vmem:[#allocation3 + $0x4c] sm:$0xf]  ;;  %v7031_v5 = vld [vmem:[#allocation2 + $0x1bc] sm:$0xff] }
 0x3eb   : > { %v3291_v39 = vsel %vm3278_vm8, %v8652_v16, %v3290_v34  ;;  %3327 = vst.msk [vmem:[#allocation2 + $0xf8] sm:$0xf] %vm397_vm0, %v3292_v26  ;;  %v3022_v1 = vsel %vm362_vm1, %v2999_v9, %v3000_v15  ;;  %v3024_v46 = vsel %vm3004_vm4, %v2982_v59, %v3000_v15  ;;  %v3154_v52 = vsel %vm3141_vm14, %v8596_v33, %v3153_v32  ;;  %v3646_v16 = vld [vmem:[#allocation3 + $0x74] sm:$0xff] }
 0x3ec   : > { %3326 = vst [vmem:[#allocation2 + $0xf0] sm:$0xff] %v3291_v39  ;;  %v3023_v48 = vsel %vm3004_vm4, %v8616_v36, %v3022_v1  ;;  %v3134_v36 = vrot.slane %v8581_v38, 4  ;;  %v3575_v33 = vrot.slane %v8605_v0, 4  ;;  %v3579_v9 = vrot.slane %v8623_v6, 4 }
 0x3ed   : > { %3056 = vst [vmem:[#allocation2 + $0x48] sm:$0xff] %v3023_v48  ;;  %3694 = vrot.lane.b32.xlu0 %v3647_v11, %s7045_s9  ;;  %3944 = vrot.lane.b32.xlu1 %v3644_v7, %s7049_s13  ;;  %v3412_v26 = vrot.slane %v8634_v37, 4 }
 0x3ee   : > { %3057 = vst.msk [vmem:[#allocation2 + $0x50] sm:$0xf] %vm397_vm0, %v3024_v46  ;;  %3692 = vrot.lane.b32.xlu2 %v3646_v16, %s7045_s9 }
 0x3ef   : > { %3189 = vst [vmem:[#allocation2 + $0x90] sm:$0xff] %v3154_v52  ;;  %v3115_v43 = vpop.permute.xlu0 %3114  ;;  %v3554_v29 = vpop.permute.xlu1 %3553 }
 0x3f0   : > { %3190 = vst.msk [vmem:[#allocation2 + $0x98] sm:$0xf] %vm397_vm0, %v3155_v25  ;;  %v3135_v21 = vrot.slane %v3115_v43, 4  ;;  %v3256_v55 = vpop.permute.xlu2 %3255  ;;  %v3576_v60 = vrot.slane %v3554_v29, 4 }
 0x3f1   : > { %v3274_v57 = vrot.slane %v3256_v55, 4  ;;  %3625 = vst.msk [vmem:[#allocation2 + $0x218] sm:$0xf] %vm397_vm0, %v3554_v29  ;;  %v3643_v29 = vld [vmem:[#allocation3 + $0x5c] sm:$0xf] }
 0x3f2   : > { %v3156_v14 = vsel %vm362_vm1, %v3134_v36, %v3135_v21  ;;  %v3158_v13 = vsel %vm3141_vm14, %v3115_v43, %v3135_v21  ;;  %v3592_v31 = vsel %vm362_vm1, %v3575_v33, %v3576_v60  ;;  %v3897_v43 = vld [vmem:[#allocation3 + $0x4c] sm:$0xf]  ;;  %v3410_v33 = vrot.slane %v8609_v20, 4 }
 0x3f3   : > { %v3157_v35 = vsel %vm3141_vm14, %v8581_v38, %v3156_v14  ;;  %3192 = vst.msk [vmem:[#allocation2 + $0xa4] sm:$0xf] %vm397_vm0, %v3158_v13  ;;  %v3296_v56 = vsel %vm362_vm1, %v3273_v3, %v3274_v57  ;;  %v3298_v4 = vsel %vm3278_vm8, %v3256_v55, %v3274_v57  ;;  %v3593_v61 = vsel %vm3584_vm6, %v8605_v0, %v3592_v31 }
 0x3f4   : > { %3191 = vst [vmem:[#allocation2 + $0x9c] sm:$0xff] %v3157_v35  ;;  %v3297_v30 = vsel %vm3278_vm8, %v8650_v24, %v3296_v56  ;;  %v2997_v24 = vrot.slane %v8598_v62, 4 }
 0x3f5   : > { %3330 = vst [vmem:[#allocation2 + $0x108] sm:$0xff] %v3297_v30  ;;  %3948 = vrot.lane.b32.xlu0 %v3646_v16, %s7049_s13  ;;  %3950 = vrot.lane.b32.xlu1 %v3903_v47, %s7049_s13 }
 0x3f6   : > { %3331 = vst.msk [vmem:[#allocation2 + $0x110] sm:$0xf] %vm397_vm0, %v3298_v4  ;;  %3946 = vrot.lane.b32.xlu2 %v3901_v45, %s7049_s13  ;;  %v3899_v4 = vld [vmem:[#allocation3 + $0x5c] sm:$0xf] }
 0x3f7   : > { %3624 = vst [vmem:[#allocation2 + $0x210] sm:$0xff] %v3593_v61  ;;  %v3558_v38 = vpop.permute.xlu0 %3557  ;;  %v2978_v22 = vpop.permute.xlu1 %2977  ;;  %v8902_v61 = vld [vmem:[#allocation2 + $0x198] sm:$0xff] }
 0x3f8   : > { %v3578_v42 = vrot.slane %v3558_v38, 4  ;;  %3627 = vst.msk [vmem:[#allocation2 + $0x224] sm:$0xf] %vm397_vm0, %v3558_v38  ;;  %v3123_v0 = vpop.permute.xlu2 %3122  ;;  %v2998_v50 = vrot.slane %v2978_v22, 4  ;;  %v6298_v38 = vld [vmem:[#allocation2 + $0x90] sm:$0xf] }
 0x3f9   : > { %v3139_v51 = vrot.slane %v3123_v0, 4 }
 0x3fa   : > { %v3594_v44 = vsel %vm362_vm1, %v3577_v28, %v3578_v42  ;;  %v3019_v7 = vsel %vm362_vm1, %v2997_v24, %v2998_v50  ;;  %v3021_v12 = vsel %vm3004_vm4, %v2978_v22, %v2998_v50  ;;  %v3275_v22 = vrot.slane %v8648_v41, 4 }
 0x3fb   : > { %v3595_v27 = vsel %vm3584_vm6, %v8591_v40, %v3594_v44  ;;  %v3162_v18 = vsel %vm362_vm1, %v3138_v63, %v3139_v51  ;;  %v3164_v2 = vsel %vm3141_vm14, %v3123_v0, %v3139_v51  ;;  %3055 = vst.msk [vmem:[#allocation2 + $0x44] sm:$0xf] %vm397_vm0, %v3021_v12  ;;  %v3020_v10 = vsel %vm3004_vm4, %v8598_v62, %v3019_v7  ;;  %v7032_v40 = vld [vmem:[#allocation2 + $0x1b0] sm:$0xff]  ;;  %v6835_v63 = vld [vmem:[#allocation2 + $0x80] sm:$0xf0] }
 0x3fc   : > { %3626 = vst [vmem:[#allocation2 + $0x21c] sm:$0xff] %v3595_v27  ;;  %v3163_v54 = vsel %vm3141_vm14, %v8625_v17, %v3162_v18  ;;  %v3136_v17 = vrot.slane %v8600_v23, 4  ;;  %v6286_v12 = vld [vmem:[#allocation2 + $0x78] sm:$0xf] }
 0x3fd   : > { %3195 = vst [vmem:[#allocation2 + $0xb4] sm:$0xff] %v3163_v54  ;;  %3682 = vrot.lane.b32.xlu0 %v3641_v19, %s7045_s9  ;;  %3684 = vrot.lane.b32.xlu1 %v7031_v5, %s7045_s9  ;;  %v3639_v19 = vld [vmem:[#allocation3 + $0x3c] sm:$0xf] }
 0x3fe   : > { %3196 = vst.msk [vmem:[#allocation2 + $0xbc] sm:$0xf] %vm397_vm0, %v3164_v2  ;;  %3680 = vrot.lane.b32.xlu2 %v7032_v40, %s7045_s9 }
 0x3ff   : > { %3054 = vst [vmem:[#allocation2 + $0x3c] sm:$0xff] %v3020_v10  ;;  %v3119_v59 = vpop.permute.xlu0 %3118  ;;  %v3562_v49 = vpop.permute.xlu1 %3561 }
 0x400   : > { %v3137_v62 = vrot.slane %v3119_v59, 4  ;;  %v3397_v15 = vpop.permute.xlu2 %3396  ;;  %v3580_v34 = vrot.slane %v3562_v49, 4  ;;  %3629 = vst.msk [vmem:[#allocation2 + $0x230] sm:$0xf] %vm397_vm0, %v3562_v49  ;;  %v6832_v49 = vld [vmem:[#allocation2 + $0x68] sm:$0xf0] }
 0x401   : > { %v3413_v32 = vrot.slane %v3397_v15, 4 }
 0x402   : > { %v3159_v39 = vsel %vm362_vm1, %v3136_v17, %v3137_v62  ;;  %v3161_v1 = vsel %vm3141_vm14, %v3119_v59, %v3137_v62  ;;  %v3596_v46 = vsel %vm362_vm1, %v3579_v9, %v3580_v34  ;;  %v7034_v59 = vld [vmem:[#allocation2 + $0x1a4] sm:$0xff]  ;;  %v6274_v62 = vld [vmem:[#allocation2 + $0x60] sm:$0xf] }
 0x403   : > { %v3160_v48 = vsel %vm3141_vm14, %v8600_v23, %v3159_v39  ;;  %3194 = vst.msk [vmem:[#allocation2 + $0xb0] sm:$0xf] %vm397_vm0, %v3161_v1  ;;  %v3436_v52 = vsel %vm362_vm1, %v3412_v26, %v3413_v32  ;;  %v3438_v11 = vsel %vm3415_vm13, %v3397_v15, %v3413_v32  ;;  %v3597_v16 = vsel %vm3584_vm6, %v8623_v6, %v3596_v46  ;;  %v6862_v39 = vld [vmem:[#allocation2 + $0x158] sm:$0xf0] }
 0x404   : > { %3193 = vst [vmem:[#allocation2 + $0xa8] sm:$0xff] %v3160_v48  ;;  %v3437_v25 = vsel %vm3415_vm13, %v8634_v37, %v3436_v52  ;;  %v3001_v37 = vrot.slane %v8632_v53, 4  ;;  %v6841_v56 = vld [vmem:[#allocation2 + $0xb0] sm:$0xf0]  ;;  %v6275_v32 = vor.u32 %v6832_v49, %v6274_v62 }
 0x405   : > { %3469 = vst [vmem:[#allocation2 + $0x174] sm:$0xff] %v3437_v25  ;;  %3936 = vrot.lane.b32.xlu0 %v7032_v40, %s7049_s13  ;;  %3938 = vrot.lane.b32.xlu1 %v3897_v43, %s7049_s13  ;;  %v6859_v25 = vld [vmem:[#allocation2 + $0x140] sm:$0xf0]  ;;  %v6801_v49 = vld [vmem:[%s9687_s4 + $0x10] sm:$0xf0] }
 0x406   : > { %3470 = vst.msk [vmem:[#allocation2 + $0x17c] sm:$0xf] %vm397_vm0, %v3438_v11  ;;  %3686 = vrot.lane.b32.xlu2 %v3643_v29, %s7045_s9  ;;  %v6262_v11 = vld [vmem:[#allocation2 + $0x48] sm:$0xf] }
 0x407   : > { %3628 = vst [vmem:[#allocation2 + $0x228] sm:$0xff] %v3597_v16  ;;  %v3393_v23 = vpop.permute.xlu0 %3392  ;;  %v2986_v36 = vpop.permute.xlu1 %2985 }
 0x408   : > { %v3411_v21 = vrot.slane %v3393_v23, 4  ;;  %v8890_v6 = vpop.permute.xlu2 %3241  ;;  %v3002_v55 = vrot.slane %v2986_v36, 4 }
 0x40a   : > { %v3433_v60 = vsel %vm362_vm1, %v3410_v33, %v3411_v21  ;;  %v3435_v3 = vsel %vm3415_vm13, %v3393_v23, %v3411_v21  ;;  %v3025_v57 = vsel %vm362_vm1, %v3001_v37, %v3002_v55  ;;  %v3027_v31 = vsel %vm3004_vm4, %v2986_v36, %v3002_v55  ;;  %v3893_v23 = vld [vmem:[#allocation3 + $0x2c] sm:$0xf]  ;;  %v6382_v33 = vld [vmem:[#allocation2 + $0x138] sm:$0xf]  ;;  %v6826_v55 = vld [vmem:[#allocation2 + $0x38] sm:$0xf0] }
 0x40b   : > { %v3434_v14 = vsel %vm3415_vm13, %v8609_v20, %v3433_v60  ;;  %3468 = vst.msk [vmem:[#allocation2 + $0x170] sm:$0xf] %vm397_vm0, %v3435_v3  ;;  %v3026_v13 = vsel %vm3004_vm4, %v8632_v53, %v3025_v57  ;;  %v6310_v35 = vld [vmem:[#allocation2 + $0xa8] sm:$0xf]  ;;  %v6838_v20 = vld [vmem:[#allocation2 + $0x98] sm:$0xf0]  ;;  %v6383_v21 = vor.u32 %v6859_v25, %v6382_v33 }
 0x40c   : > { %3467 = vst [vmem:[#allocation2 + $0x168] sm:$0xff] %v3434_v14  ;;  %v6311_v30 = vor.u32 %v6841_v56, %v6310_v35  ;;  %v3581_v53 = vrot.slane %v8618_v58, 4  ;;  %v6299_v0 = vor.u32 %v6838_v20, %v6298_v38  ;;  %v6865_v10 = vld [vmem:[#allocation2 + $0x170] sm:$0xf0]  ;;  %v6856_v60 = vld [vmem:[#allocation2 + $0x128] sm:$0xf0] }
 0x40d   : > { %3058 = vst [vmem:[#allocation2 + $0x54] sm:$0xff] %v3026_v13  ;;  %3942 = vrot.lane.b32.xlu0 %v3899_v4, %s7049_s13  ;;  %3672 = vrot.lane.b32.xlu1 %v8902_v61, %s7045_s9  ;;  %v6886_v3 = vld [vmem:[#allocation2 + $0x218] sm:$0xf0]  ;;  %v6250_v13 = vld [vmem:[#allocation2 + $0x30] sm:$0xf]  ;;  %v3267_v35 = vrot.slane %v8890_v6, 4 }
 0x40e   : > { %3059 = vst.msk [vmem:[#allocation2 + $0x5c] sm:$0xf] %vm397_vm0, %v3027_v31  ;;  %3940 = vrot.lane.b32.xlu2 %v7031_v5, %s7049_s13  ;;  %4920 = vmatpush.bf16.msra.mxu3 %v6311_v30  ;;  %v6287_v5 = vor.u32 %v6835_v63, %v6286_v12  ;;  %v6502_v43 = vld [vmem:[#allocation2 + $0x228] sm:$0xf]  ;;  %v6370_v31 = vld [vmem:[#allocation2 + $0x120] sm:$0xf]  ;;  %v6251_v20 = vor.u32 %v6826_v55, %v6250_v13 }
 0x40f   : > { %v3566_v47 = vpop.permute.xlu0 %3565  ;;  %v3260_v45 = vpop.permute.xlu1 %3259  ;;  %v6883_v63 = vld [vmem:[#allocation2 + $0x200] sm:$0xf0]  ;;  %v6238_v12 = vld [vmem:[#allocation2 + $0x18] sm:$0xf]  ;;  %v6874_v33 = vld [vmem:[#allocation2 + $0x1b8] sm:$0xf0] }
 0x410   : > { %v3582_v28 = vrot.slane %v3566_v47, 4  ;;  %3631 = vst.msk [vmem:[#allocation2 + $0x23c] sm:$0xf] %vm397_vm0, %v3566_v47  ;;  %v8911_v24 = vpop.permute.xlu2 %3231  ;;  %v3276_v42 = vrot.slane %v3260_v45, 4  ;;  %v6442_v55 = vld [vmem:[#allocation2 + $0x1b0] sm:$0xf] }
 0x411   : > { %v3262_v50 = vrot.slane %v8911_v24, 4  ;;  %v6443_v13 = vor.u32 %v6874_v33, %v6442_v55  ;;  %v6276_v55 = vld [vmem:[#allocation2 + $0x6c] sm:$0xf0] }
 0x412   : > { %v3598_v51 = vsel %vm362_vm1, %v3581_v53, %v3582_v28  ;;  %v3299_v44 = vsel %vm362_vm1, %v3275_v22, %v3276_v42  ;;  %v3301_v7 = vsel %vm3278_vm8, %v3260_v45, %v3276_v42  ;;  %4921 = vmatpush.bf16.msra.mxu3 %v6299_v0  ;;  %v6490_v53 = vld [vmem:[#allocation2 + $0x210] sm:$0xf]  ;;  %v6823_v45 = vld [vmem:[#allocation2 + $0x20] sm:$0xf0]  ;;  %v6478_v0 = vld [vmem:[#allocation2 + $0x1f8] sm:$0xf] }
 0x413   : > { %v3599_v27 = vsel %vm3584_vm6, %v8618_v58, %v3598_v51  ;;  %v3280_v18 = vsel %vm3278_vm8, %v8911_v24, %v3262_v50  ;;  %v3300_v2 = vsel %vm3278_vm8, %v8648_v41, %v3299_v44  ;;  %3333 = vst.msk [vmem:[#allocation2 + $0x11c] sm:$0xf] %vm397_vm0, %v3301_v7  ;;  %v6406_v54 = vld [vmem:[#allocation2 + $0x168] sm:$0xf]  ;;  %v3637_v58 = vld [vmem:[#allocation3 + $0x2c] sm:$0xf]  ;;  %v6491_v47 = vor.u32 %v6886_v3, %v6490_v53 }
 0x414   : > { %3630 = vst [vmem:[#allocation2 + $0x234] sm:$0xff] %v3599_v27  ;;  %v6407_v40 = vor.u32 %v6865_v10, %v6406_v54  ;;  %v6394_v41 = vld [vmem:[#allocation2 + $0x150] sm:$0xf]  ;;  %v6829_v46 = vld [vmem:[#allocation2 + $0x50] sm:$0xf0]  ;;  %v6239_v24 = vor.u32 %v6823_v45, %v6238_v12 }
 0x415   : > { %3319 = vst.msk [vmem:[#allocation2 + $0xc8] sm:$0xf] %vm397_vm0, %v3280_v18  ;;  %3676 = vrot.lane.b32.xlu0 %v7034_v59, %s7045_s9  ;;  %3678 = vrot.lane.b32.xlu1 %v3639_v19, %s7045_s9  ;;  %v6395_v1 = vor.u32 %v6862_v39, %v6394_v41  ;;  %v6263_v36 = vor.u32 %v6829_v46, %v6262_v11  ;;  %v3633_v7 = vld [vmem:[#allocation3 + $0xc] sm:$0xf]  ;;  %v3895_v27 = vld [vmem:[#allocation3 + $0x3c] sm:$0xf] }
 0x416   : > { %3332 = vst [vmem:[#allocation2 + $0x114] sm:$0xff] %v3300_v2  ;;  %3674 = vrot.lane.b32.xlu2 %v3637_v58, %s7045_s9  ;;  %4922 = vmatpush.bf16.msra.mxu3 %v6287_v5  ;;  %v6358_v18 = vld [vmem:[#allocation2 + $0x108] sm:$0xf]  ;;  %v6226_v2 = vld [vmem:[#allocation2] sm:$0xf] }
 0x417   : > { %4949 = vmatpush.bf16.msra.mxu0 %v6407_v40  ;;  %v3238_v17 = vpop.permute.xlu0 %3237  ;;  %v3240_v9 = vpop.permute.xlu1 %3239  ;;  %v6820_v54 = vld [vmem:[#allocation2 + $0x8] sm:$0xf0]  ;;  %v6346_v10 = vld [vmem:[#allocation2 + $0xf0] sm:$0xf]  ;;  %v6466_v19 = vld [vmem:[#allocation2 + $0x1e0] sm:$0xf] }
 0x418   : > { %v3265_v15 = vrot.slane %v3238_v17, 4  ;;  %v8930_v34 = vpop.permute.xlu2 %3816  ;;  %v3266_v26 = vrot.slane %v3240_v9, 4  ;;  %v6880_v5 = vld [vmem:[#allocation2 + $0x1e8] sm:$0xf0]  ;;  %v6146_v58 = vld [vmem:[%s9687_s4] sm:$0xf]  ;;  %v6227_v62 = vor.u32 %v6820_v54, %v6226_v2 }
 0x419   : > { %v8968_v46 = vor.u32 %v6801_v49, %v6146_v58  ;;  %v6837_v12 = vld [vmem:[#allocation2 + $0x94] sm:$0xf]  ;;  %v6806_v2 = vld [vmem:[%s9687_s4 + $0x38] sm:$0xf0]  ;;  %v6154_v54 = vld [vmem:[%s9687_s4 + $0x8] sm:$0xf] }
 0x41a   : > { %v3284_v48 = vsel %vm362_vm1, %v3265_v15, %v3266_v26  ;;  %v3286_v52 = vsel %vm3278_vm8, %v3240_v9, %v3266_v26  ;;  %4923 = vmatpush.bf16.msra.mxu3 %v6275_v32  ;;  %v6850_v15 = vld [vmem:[#allocation2 + $0xf8] sm:$0xf0]  ;;  %v6467_v32 = vor.u32 %v6880_v5, %v6466_v19  ;;  %v6408_v49 = vld [vmem:[#allocation2 + $0x174] sm:$0xf0] }
 0x41b   : > { %v3285_v16 = vsel %vm3278_vm8, %v3238_v17, %v3284_v48  ;;  %3323 = vst.msk [vmem:[#allocation2 + $0xe0] sm:$0xf] %vm397_vm0, %v3286_v52  ;;  %4950 = vmatpush.bf16.msra.mxu0 %v6395_v1  ;;  %v6889_v29 = vld [vmem:[#allocation2 + $0x230] sm:$0xf0]  ;;  %v6347_v26 = vor.u32 %v6850_v15, %v6346_v10 }
 0x41c   : > { %3322 = vst [vmem:[#allocation2 + $0xd8] sm:$0xff] %v3285_v16  ;;  %v6503_v37 = vor.u32 %v6889_v29, %v6502_v43  ;;  %v6877_v48 = vld [vmem:[#allocation2 + $0x1d0] sm:$0xf0]  ;;  %v3635_v16 = vld [vmem:[#allocation3 + $0x1c] sm:$0xf] }
 0x41d   : > { %3930 = vrot.lane.b32.xlu0 %v3893_v23, %s7049_s13  ;;  %3932 = vrot.lane.b32.xlu1 %v7034_v59, %s7049_s13  ;;  %v6853_v42 = vld [vmem:[#allocation2 + $0x110] sm:$0xf0]  ;;  %v6454_v29 = vld [vmem:[#allocation2 + $0x1c8] sm:$0xf] }
 0x41e   : > { %3928 = vrot.lane.b32.xlu2 %v8902_v61, %s7049_s13  ;;  %4924 = vmatpush.bf16.msra.mxu3 %v6263_v36  ;;  %v6371_v61 = vor.u32 %v6856_v60, %v6370_v31  ;;  %v6455_v23 = vor.u32 %v6877_v48, %v6454_v29  ;;  %v7035_v36 = vld [vmem:[#allocation2 + $0x18c] sm:$0xff]  ;;  %v3836_v60 = vrot.slane %v8930_v34, 4  ;;  %v6871_v31 = vld [vmem:[#allocation2 + $0x1a0] sm:$0xf0]  ;;  %v6396_v29 = vld [vmem:[#allocation2 + $0x15c] sm:$0xf0] }
 0x41f   : > { %4951 = vmatpush.bf16.msra.mxu0 %v6383_v21  ;;  %4978 = vmatpush.bf16.msra.mxu1 %v6503_v37  ;;  %v3244_v57 = vpop.permute.xlu0 %3243  ;;  %v3230_v14 = vpop.permute.xlu1 %3229  ;;  %v4186_v15 = vld [vmem:[%s9688_s5 + $0x10] sm:$0xff] }
 0x420   : > { %v3268_v56 = vrot.slane %v3244_v57, 4  ;;  %v8941_v4 = vpop.permute.xlu2 %3822  ;;  %v3261_v30 = vrot.slane %v3230_v14, 4 }
 0x421   : > { %3887 = vst.msk [vmem:[#allocation2 + $0x2fc] sm:$0xf] %vm397_vm0, %v8941_v4  ;;  %v3839_v3 = vrot.slane %v8941_v4, 4  ;;  %v6799_v4 = vld [vmem:[%s9687_s4 + $0x4] sm:$0xf] }
 0x422   : > { %v3287_v38 = vsel %vm362_vm1, %v3267_v35, %v3268_v56  ;;  %v3289_v22 = vsel %vm3278_vm8, %v3244_v57, %v3268_v56  ;;  %v3277_v28 = vsel %vm362_vm1, %v3261_v30, %v3262_v50  ;;  %4925 = vmatpush.bf16.msra.mxu3 %v6251_v20  ;;  %v6359_v50 = vor.u32 %v6853_v42, %v6358_v18  ;;  %v6840_v30 = vld [vmem:[#allocation2 + $0xac] sm:$0xf]  ;;  %v6148_v20 = vld [vmem:[%s9687_s4 + $0x14] sm:$0xf0] }
 0x423   : > { %v3288_v51 = vsel %vm3278_vm8, %v8890_v6, %v3287_v38  ;;  %3325 = vst.msk [vmem:[#allocation2 + $0xec] sm:$0xf] %vm397_vm0, %v3289_v22  ;;  %v3279_v44 = vsel %vm3278_vm8, %v3230_v14, %v3277_v28  ;;  %4952 = vmatpush.bf16.msra.mxu0 %v6371_v61  ;;  %4979 = vmatpush.bf16.msra.mxu1 %v6491_v47  ;;  %v6334_v11 = vld [vmem:[#allocation2 + $0xd8] sm:$0xf]  ;;  %v3891_v22 = vld [vmem:[#allocation3 + $0x1c] sm:$0xf] }
 0x424   : > { %3324 = vst [vmem:[#allocation2 + $0xe4] sm:$0xff] %v3288_v51  ;;  %v6479_v6 = vor.u32 %v6883_v63, %v6478_v0  ;;  %v6430_v38 = vld [vmem:[#allocation2 + $0x198] sm:$0xf]  ;;  %v3889_v0 = vld [vmem:[#allocation3 + $0xc] sm:$0xf] }
 0x425   : > { %3318 = vst [vmem:[#allocation2 + $0xc0] sm:$0xff] %v3279_v44  ;;  %3664 = vrot.lane.b32.xlu0 %v8781_v8, %s7045_s9  ;;  %3666 = vrot.lane.b32.xlu1 %v3633_v7, %s7045_s9  ;;  %v6312_v42 = vld [vmem:[#allocation2 + $0xb4] sm:$0xf0]  ;;  %v6431_v63 = vor.u32 %v6871_v31, %v6430_v38  ;;  %v8997_v44 = vor.u32 %v6799_v4, %v6148_v20  ;;  %v6418_v7 = vld [vmem:[#allocation2 + $0x180] sm:$0xf] }
 0x426   : > { %3934 = vrot.lane.b32.xlu2 %v3895_v27, %s7049_s13  ;;  %4926 = vmatpush.bf16.msra.mxu3 %v6239_v24  ;;  %v6315_v51 = vor.u32 %v6840_v30, %v6312_v42  ;;  %v6300_v27 = vld [vmem:[#allocation2 + $0x9c] sm:$0xf0]  ;;  %v6864_v24 = vld [vmem:[#allocation2 + $0x16c] sm:$0xf]  ;;  %v6372_v42 = vld [vmem:[#allocation2 + $0x12c] sm:$0xf0] }
 0x427   : > { %4953 = vmatpush.bf16.msra.mxu0 %v6359_v50  ;;  %4980 = vmatpush.bf16.msra.mxu1 %v6479_v6  ;;  %v3234_v40 = vpop.permute.xlu0 %3233  ;;  %v3236_v59 = vpop.permute.xlu1 %3235  ;;  %v6166_v6 = vld [vmem:[%s9687_s4 + $0x28] sm:$0xf]  ;;  %v6303_v58 = vor.u32 %v6837_v12, %v6300_v27  ;;  %v6360_v12 = vld [vmem:[#allocation2 + $0x114] sm:$0xf0] }
 0x428   : > { %v3263_v41 = vrot.slane %v3234_v40, 4  ;;  %v8964_v17 = vpop.permute.xlu2 %3812  ;;  %v3264_v9 = vrot.slane %v3236_v59, 4 }
 0x42a   : > { %v3281_v39 = vsel %vm362_vm1, %v3263_v41, %v3264_v9  ;;  %v3283_v1 = vsel %vm3278_vm8, %v3236_v59, %v3264_v9  ;;  %4927 = vmatpush.bf16.msra.mxu3 %v6227_v62  ;;  %v6411_v9 = vor.u32 %v6864_v24, %v6408_v49  ;;  %v4185_v62 = vld [vmem:[%s9688_s5 + $0x8] sm:$0xff] }
 0x42b   : > { %v3282_v52 = vsel %vm3278_vm8, %v3234_v40, %v3281_v39  ;;  %3321 = vst.msk [vmem:[#allocation2 + $0xd4] sm:$0xf] %vm397_vm0, %v3283_v1  ;;  %4954 = vmatpush.bf16.msra.mxu0 %v6347_v26  ;;  %4981 = vmatpush.bf16.msra.mxu1 %v6467_v32  ;;  %v6847_v25 = vld [vmem:[#allocation2 + $0xe0] sm:$0xf0]  ;;  %v6802_v40 = vld [vmem:[%s9687_s4 + $0x18] sm:$0xf0]  ;;  %v9023_v26 = vor.u32 %v6806_v2, %v6166_v6 }
 0x42c   : > { %3320 = vst [vmem:[#allocation2 + $0xcc] sm:$0xff] %v3282_v52  ;;  %v6335_v43 = vor.u32 %v6847_v25, %v6334_v11  ;;  %v6322_v47 = vld [vmem:[#allocation2 + $0xc0] sm:$0xf]  ;;  %v6861_v32 = vld [vmem:[#allocation2 + $0x154] sm:$0xf]  ;;  %v9029_v48 = vor.u32 %v6802_v40, %v6154_v54 }
 0x42d   : > { %3670 = vrot.lane.b32.xlu0 %v3635_v16, %s7045_s9  ;;  %3920 = vrot.lane.b32.xlu1 %v8781_v8, %s7049_s13  ;;  %v4184_v1 = vld [vmem:[%s9688_s5] sm:$0xff]  ;;  %v6288_v11 = vld [vmem:[#allocation2 + $0x84] sm:$0xf0]  ;;  %v6174_v6 = vld [vmem:[%s9687_s4 + $0x30] sm:$0xf] }
 0x42e   : > { %3668 = vrot.lane.b32.xlu2 %v7035_v36, %s7045_s9  ;;  %4928 = vmatmul.bf16.vlgmr.msra.gmra.mxu3 %v8968_v46  ;;  %v6825_v40 = vld [vmem:[#allocation2 + $0x34] sm:$0xf] }
 0x42f   : > { %4955 = vmatpush.bf16.msra.mxu0 %v6335_v43  ;;  %4982 = vmatpush.bf16.msra.mxu1 %v6455_v23  ;;  %v3819_v37 = vpop.permute.xlu0 %3818  ;;  %v3821_v21 = vpop.permute.xlu1 %3820  ;;  %v6834_v43 = vld [vmem:[#allocation2 + $0x7c] sm:$0xf] }
 0x430   : > { %v3837_v57 = vrot.slane %v3819_v37, 4  ;;  %3885 = vst.msk [vmem:[#allocation2 + $0x2f0] sm:$0xf] %vm397_vm0, %v3819_v37  ;;  %v8980_v8 = vpop.permute.xlu2 %3802  ;;  %v3838_v14 = vrot.slane %v3821_v21, 4  ;;  %v6291_v23 = vor.u32 %v6834_v43, %v6288_v11  ;;  %v6822_v43 = vld [vmem:[#allocation2 + $0x1c] sm:$0xf] }
 0x431   : > { %3877 = vst.msk [vmem:[#allocation2 + $0x2c0] sm:$0xf] %vm397_vm0, %v8980_v8 }
 0x432   : > { %v3852_v35 = vsel %vm362_vm1, %v3836_v60, %v3837_v57  ;;  %v3854_v56 = vsel %vm362_vm1, %v3838_v14, %v3839_v3  ;;  %v6384_v60 = vld [vmem:[#allocation2 + $0x144] sm:$0xf0]  ;;  %v3834_v3 = vrot.slane %v8964_v17, 4  ;;  %v3829_v57 = vrot.slane %v8980_v8, 4 }
 0x433   : > { %v3853_v53 = vsel %vm494_vm2, %v8930_v34, %v3852_v35  ;;  %v3855_v61 = vsel %vm494_vm2, %v3821_v21, %v3854_v56  ;;  %4983 = vmatpush.bf16.msra.mxu1 %v6443_v13  ;;  %v6844_v45 = vld [vmem:[#allocation2 + $0xc8] sm:$0xf0]  ;;  %v6831_v21 = vld [vmem:[#allocation2 + $0x64] sm:$0xf]  ;;  %v6858_v35 = vld [vmem:[#allocation2 + $0x13c] sm:$0xf] }
 0x434   : > { %3884 = vst [vmem:[#allocation2 + $0x2e8] sm:$0xff] %v3853_v53  ;;  %v6323_v28 = vor.u32 %v6844_v45, %v6322_v47  ;;  %v6868_v34 = vld [vmem:[#allocation2 + $0x188] sm:$0xf0]  ;;  %v4188_v56 = vld [vmem:[%s9688_s5 + $0x20] sm:$0xff]  ;;  %v6279_v4 = vor.u32 %v6831_v21, %v6276_v55  ;;  %v6387_v20 = vor.u32 %v6858_v35, %v6384_v60  ;;  %v6228_v55 = vld [vmem:[#allocation2 + $0xc] sm:$0xf0] }
 0x435   : > { %3886 = vst [vmem:[#allocation2 + $0x2f4] sm:$0xff] %v3855_v61  ;;  %3924 = vrot.lane.b32.xlu0 %v7035_v36, %s7049_s13  ;;  %3926 = vrot.lane.b32.xlu1 %v3891_v22, %s7049_s13  ;;  %v6419_v59 = vor.u32 %v6868_v34, %v6418_v7  ;;  %v6399_v36 = vor.u32 %v6861_v32, %v6396_v29  ;;  %v4189_v53 = vld [vmem:[%s9688_s5 + $0x28] sm:$0xff]  ;;  %v6168_v47 = vld [vmem:[%s9687_s4 + $0x3c] sm:$0xf0]  ;;  %v6849_v32 = vld [vmem:[#allocation2 + $0xf4] sm:$0xf] }
 0x436   : > { %3922 = vrot.lane.b32.xlu2 %v3889_v0, %s7049_s13  ;;  %4956 = vmatpush.bf16.msra.mxu0 %v6323_v28  ;;  %v6804_v61 = vld [vmem:[%s9687_s4 + $0x2c] sm:$0xf]  ;;  %v4187_v22 = vld [vmem:[%s9688_s5 + $0x18] sm:$0xff]  ;;  %v6252_v7 = vld [vmem:[#allocation2 + $0x3c] sm:$0xf0] }
 0x437   : > { %4984 = vmatpush.bf16.msra.mxu1 %v6431_v63  ;;  %v3809_v18 = vpop.permute.xlu0 %3808  ;;  %v3811_v50 = vpop.permute.xlu1 %3810  ;;  %v6264_v28 = vld [vmem:[#allocation2 + $0x54] sm:$0xf0]  ;;  %v6828_v0 = vld [vmem:[#allocation2 + $0x4c] sm:$0xf]  ;;  %v6855_v63 = vld [vmem:[#allocation2 + $0x124] sm:$0xf]  ;;  %v6255_v49 = vor.u32 %v6825_v40, %v6252_v7 }
 0x438   : > { %v3832_v10 = vrot.slane %v3809_v18, 4  ;;  %v9009_v19 = vpop.permute.xlu2 %3792  ;;  %v3833_v5 = vrot.slane %v3811_v50, 4  ;;  %3881 = vst.msk [vmem:[#allocation2 + $0x2d8] sm:$0xf] %vm397_vm0, %v3811_v50  ;;  %v6375_v34 = vor.u32 %v6855_v63, %v6372_v42  ;;  %v6811_v50 = vld [vmem:[%s9687_s4 + $0x60] sm:$0xf0] }
 0x439   : > { %4957 = vmatmul.bf16.vlgmr.msra.gmra.mxu0 %v8997_v44  ;;  %v6348_v29 = vld [vmem:[#allocation2 + $0xfc] sm:$0xf0]  ;;  %v6819_v21 = vld [vmem:[#allocation2 + $0x4] sm:$0xf]  ;;  %v6336_v60 = vld [vmem:[#allocation2 + $0xe4] sm:$0xf0] }
 0x43a   : > { %5065 = vmatpush.bf16.msrb.mxu0 %v6315_v51  ;;  %v3848_v41 = vsel %vm362_vm1, %v3832_v10, %v3833_v5  ;;  %v9060_v51 = vor.u32 %v6804_v61, %v6168_v47  ;;  %v6807_v5 = vld [vmem:[%s9687_s4 + $0x40] sm:$0xf0]  ;;  %v6318_v42 = vld [vmem:[#allocation2 + $0xb0] sm:$0xf] }
 0x43b   : > { %v3849_v39 = vsel %vm494_vm2, %v3809_v18, %v3848_v41  ;;  %4985 = vmatpush.bf16.msra.mxu1 %v6419_v59  ;;  %v6598_v52 = vld [vmem:[#allocation2 + $0x2e8] sm:$0xf]  ;;  %v6186_v18 = vld [vmem:[%s9687_s4 + $0x50] sm:$0xf]  ;;  %v6852_v59 = vld [vmem:[#allocation2 + $0x10c] sm:$0xf] }
 0x43c   : > { %3880 = vst [vmem:[#allocation2 + $0x2d0] sm:$0xff] %v3849_v39  ;;  %v6913_v25 = vld [vmem:[#allocation2 + $0x2f0] sm:$0xf0]  ;;  %v6363_v41 = vor.u32 %v6852_v59, %v6360_v12  ;;  %v6839_v7 = vld [vmem:[#allocation2 + $0xa0] sm:$0xf0] }
 0x43d   : > { %4199 = vperm.xlu0 %6967, %v4185_v62   ;;  %4204 = vperm.xlu1 %6968, %v4186_v15   ;;  %v6599_v16 = vor.u32 %v6913_v25, %v6598_v52  ;;  %v9082_v62 = vor.u32 %v6811_v50, %v6186_v18  ;;  %v6240_v15 = vld [vmem:[#allocation2 + $0x24] sm:$0xf0]  ;;  %v9088_v52 = vor.u32 %v6807_v5, %v6174_v6  ;;  %v6816_v18 = vld [vmem:[%s9687_s4 + $0x88] sm:$0xf0]  ;;  %v6194_v50 = vld [vmem:[%s9687_s4 + $0x58] sm:$0xf] }
 0x43e   : > { %5066 = vmatpush.bf16.msrb.mxu0 %v6303_v58  ;;  %4194 = vperm.xlu2 %6969, %v4184_v1   ;;  %v4190_v1 = vld [vmem:[%s9688_s5 + $0x30] sm:$0xff]  ;;  %v6812_v5 = vld [vmem:[%s9687_s4 + $0x68] sm:$0xf0]  ;;  %v6306_v59 = vld [vmem:[#allocation2 + $0x98] sm:$0xf] }
 0x43f   : > { %5094 = vmatpush.bf16.msrb.mxu1 %v6411_v9  ;;  %4933 = vmatmul.bf16.gmra.mxu3 %v9023_v26  ;;  %v3815_v33 = vpop.permute.xlu0 %3814  ;;  %v3801_v37 = vpop.permute.xlu1 %3800  ;;  %v4191_v9 = vld [vmem:[%s9688_s5 + $0x38] sm:$0xff] }
 0x440   : > { %4986 = vmatmul.bf16.vlgmr.msra.gmra.mxu1 %v9029_v48  ;;  %5007 = vmatpush.bf16.msrb.mxu2 %v6599_v16  ;;  %v3835_v14 = vrot.slane %v3815_v33, 4  ;;  %3883 = vst.msk [vmem:[#allocation2 + $0x2e4] sm:$0xf] %vm397_vm0, %v3815_v33  ;;  %v9036_v13 = vpop.permute.xlu2 %3798  ;;  %v3828_v31 = vrot.slane %v3801_v37, 4 }
 0x441   : > { %3875 = vst.msk [vmem:[#allocation2 + $0x2b4] sm:$0xf] %vm397_vm0, %v9036_v13 }
 0x442   : > { %5067 = vmatpush.bf16.msrb.mxu0 %v6291_v23  ;;  %v3850_v30 = vsel %vm362_vm1, %v3834_v3, %v3835_v14  ;;  %v3844_v8 = vsel %vm362_vm1, %v3828_v31, %v3829_v57  ;;  %v6243_v23 = vor.u32 %v6822_v43, %v6240_v15  ;;  %v3824_v3 = vrot.slane %v9009_v19, 4 }
 0x443   : > { %5095 = vmatpush.bf16.msrb.mxu1 %v6399_v36  ;;  %v3851_v45 = vsel %vm494_vm2, %v8964_v17, %v3850_v30  ;;  %v3845_v38 = vsel %vm494_vm2, %v3801_v37, %v3844_v8  ;;  %v6267_v17 = vor.u32 %v6828_v0, %v6264_v28  ;;  %v6586_v11 = vld [vmem:[#allocation2 + $0x2d0] sm:$0xf]  ;;  %v6351_v36 = vor.u32 %v6849_v32, %v6348_v29  ;;  %v6843_v0 = vld [vmem:[#allocation2 + $0xc4] sm:$0xf]  ;;  %v6833_v29 = vld [vmem:[#allocation2 + $0x70] sm:$0xf0] }
 0x444   : > { %3882 = vst [vmem:[#allocation2 + $0x2dc] sm:$0xff] %v3851_v45  ;;  %v3827_v57 = vrot.slane %v9036_v13, 4  ;;  %v6809_v13 = vld [vmem:[%s9687_s4 + $0x54] sm:$0xf] }
 0x445   : > { %3876 = vst [vmem:[#allocation2 + $0x2b8] sm:$0xff] %v3845_v38  ;;  %4214 = vperm.xlu0 %6967, %v4188_v56   ;;  %4219 = vperm.xlu1 %6968, %v4189_v53   ;;  %v6846_v56 = vld [vmem:[#allocation2 + $0xdc] sm:$0xf]  ;;  %v6188_v53 = vld [vmem:[%s9687_s4 + $0x64] sm:$0xf0] }
 0x446   : > { %5068 = vmatpush.bf16.msrb.mxu0 %v6279_v4  ;;  %4209 = vperm.xlu2 %6969, %v4187_v22   ;;  %v6231_v4 = vor.u32 %v6819_v21, %v6228_v55  ;;  %v6324_v22 = vld [vmem:[#allocation2 + $0xcc] sm:$0xf0]  ;;  %v9110_v63 = vor.u32 %v6809_v13, %v6188_v53 }
 0x447   : > { %5096 = vmatpush.bf16.msrb.mxu1 %v6387_v20  ;;  %v3805_v27 = vpop.permute.xlu0 %3804  ;;  %v3807_v24 = vpop.permute.xlu1 %3806  ;;  %v6339_v20 = vor.u32 %v6846_v56, %v6336_v60 }
 0x448   : > { %v3830_v2 = vrot.slane %v3805_v27, 4  ;;  %v9071_v54 = vpop.permute.xlu2 %3692  ;;  %v3831_v10 = vrot.slane %v3807_v24, 4  ;;  %3879 = vst.msk [vmem:[#allocation2 + $0x2cc] sm:$0xf] %vm397_vm0, %v3807_v24  ;;  %v6206_v24 = vld [vmem:[%s9687_s4 + $0x78] sm:$0xf] }
 0x449   : > { %4962 = vmatmul.bf16.gmra.mxu0 %v9060_v51 }
 0x44a   : > { %5069 = vmatpush.bf16.msrb.mxu0 %v6267_v17  ;;  %v3846_v58 = vsel %vm362_vm1, %v3830_v2, %v3831_v10  ;;  %v6327_v17 = vor.u32 %v6843_v0, %v6324_v22  ;;  %v6817_v22 = vld [vmem:[%s9687_s4 + $0x90] sm:$0xf0] }
 0x44b   : > { %5097 = vmatpush.bf16.msrb.mxu1 %v6375_v34  ;;  %v3847_v39 = vsel %vm494_vm2, %v3805_v27, %v3846_v58  ;;  %v6910_v25 = vld [vmem:[#allocation2 + $0x2d8] sm:$0xf0]  ;;  %v9129_v58 = vor.u32 %v6816_v18, %v6206_v24  ;;  %v6246_v24 = vld [vmem:[#allocation2 + $0x20] sm:$0xf] }
 0x44c   : > { %3878 = vst [vmem:[#allocation2 + $0x2c4] sm:$0xff] %v3847_v39  ;;  %v6587_v16 = vor.u32 %v6910_v25, %v6586_v11  ;;  %v6574_v45 = vld [vmem:[#allocation2 + $0x2b8] sm:$0xf]  ;;  %v6842_v34 = vld [vmem:[#allocation2 + $0xb8] sm:$0xf0] }
 0x44d   : > { %4229 = vperm.xlu0 %6967, %v4191_v9   ;;  %v6319_v27 = vor.u32 %v6842_v34, %v6318_v42  ;;  %v9132_v9 = vor.u32 %v6812_v5, %v6194_v50  ;;  %v6836_v39 = vld [vmem:[#allocation2 + $0x88] sm:$0xf0]  ;;  %v6294_v11 = vld [vmem:[#allocation2 + $0x80] sm:$0xf]  ;;  %v6258_v42 = vld [vmem:[#allocation2 + $0x38] sm:$0xf] }
 0x44e   : > { %5070 = vmatpush.bf16.msrb.mxu0 %v6255_v49  ;;  %4224 = vperm.xlu2 %6969, %v4190_v1   ;;  %v6295_v43 = vor.u32 %v6836_v39, %v6294_v11  ;;  %v6821_v5 = vld [vmem:[#allocation2 + $0x10] sm:$0xf0] }
 0x44f   : > { %5098 = vmatpush.bf16.msrb.mxu1 %v6363_v41  ;;  %4938 = vmatmul.bf16.gmra.mxu3 %v9082_v62  ;;  %v3795_v33 = vpop.permute.xlu0 %3794  ;;  %v3797_v37 = vpop.permute.xlu1 %3796  ;;  %v6307_v41 = vor.u32 %v6839_v7, %v6306_v59 }
 0x450   : > { %4991 = vmatmul.bf16.gmra.mxu1 %v9088_v52  ;;  %5008 = vmatpush.bf16.msrb.mxu2 %v6587_v16  ;;  %v3825_v14 = vrot.slane %v3795_v33, 4  ;;  %3873 = vst.msk [vmem:[#allocation2 + $0x2a8] sm:$0xf] %vm397_vm0, %v3795_v33  ;;  %v9095_v31 = vpop.permute.xlu2 %3946  ;;  %v3826_v35 = vrot.slane %v3797_v37, 4 }
 0x451   : > { %4013 = vst.msk [vmem:[#allocation2 + $0x350] sm:$0xf] %vm397_vm0, %v9095_v31 }
 0x452   : > { %5071 = vmatpush.bf16.msrb.mxu0 %v6243_v23  ;;  %v3840_v30 = vsel %vm362_vm1, %v3824_v3, %v3825_v14  ;;  %v3842_v8 = vsel %vm362_vm1, %v3826_v35, %v3827_v57  ;;  %v3710_v23 = vrot.slane %v9071_v54, 4  ;;  %v6282_v3 = vld [vmem:[#allocation2 + $0x68] sm:$0xf]  ;;  %v6814_v57 = vld [vmem:[%s9687_s4 + $0x7c] sm:$0xf] }
 0x453   : > { %5099 = vmatpush.bf16.msrb.mxu1 %v6351_v36  ;;  %v3841_v61 = vsel %vm494_vm2, %v9009_v19, %v3840_v30  ;;  %v3843_v47 = vsel %vm494_vm2, %v3797_v37, %v3842_v8  ;;  %v6907_v38 = vld [vmem:[#allocation2 + $0x2c0] sm:$0xf0]  ;;  %v3965_v36 = vrot.slane %v9095_v31, 4  ;;  %v6208_v14 = vld [vmem:[%s9687_s4 + $0x8c] sm:$0xf0]  ;;  %v6283_v56 = vor.u32 %v6833_v29, %v6282_v3 }
 0x454   : > { %3872 = vst [vmem:[#allocation2 + $0x2a0] sm:$0xff] %v3841_v61  ;;  %v6575_v28 = vor.u32 %v6907_v38, %v6574_v45  ;;  %v6830_v30 = vld [vmem:[#allocation2 + $0x58] sm:$0xf0]  ;;  %v9151_v8 = vor.u32 %v6814_v57, %v6208_v14  ;;  %v6827_v61 = vld [vmem:[#allocation2 + $0x40] sm:$0xf0] }
 0x455   : > { %3874 = vst [vmem:[#allocation2 + $0x2ac] sm:$0xff] %v3843_v47  ;;  %v6214_v47 = vld [vmem:[%s9687_s4 + $0x80] sm:$0xf] }
 0x456   : > { %5072 = vmatpush.bf16.msrb.mxu0 %v6231_v4  ;;  %5009 = vmatpush.bf16.msrb.mxu2 %v6575_v28  ;;  %v6270_v4 = vld [vmem:[#allocation2 + $0x50] sm:$0xf]  ;;  %v9165_v34 = vor.u32 %v6817_v22, %v6214_v47 }
 0x457   : > { %5100 = vmatpush.bf16.msrb.mxu1 %v6339_v20  ;;  %v3689_v12 = vpop.permute.xlu0 %3688  ;;  %v3691_v19 = vpop.permute.xlu1 %3690  ;;  %v6271_v53 = vor.u32 %v6830_v30, %v6270_v4 }
 0x458   : > { %v3708_v6 = vrot.slane %v3689_v12, 4  ;;  %v9121_v2 = vpop.permute.xlu2 %3680  ;;  %v3709_v10 = vrot.slane %v3691_v19, 4  ;;  %3757 = vst.msk [vmem:[#allocation2 + $0x290] sm:$0xf] %vm397_vm0, %v3691_v19 }
 0x459   : > { %4967 = vmatmul.bf16.gmra.mxu0 %v9110_v63 }
 0x45a   : > { %v3724_v40 = vsel %vm362_vm1, %v3708_v6, %v3709_v10  ;;  %v6234_v10 = vld [vmem:[#allocation2 + $0x8] sm:$0xf] }
 0x45b   : > { %5101 = vmatpush.bf16.msrb.mxu1 %v6327_v17  ;;  %v3725_v49 = vsel %vm364_vm3, %v3689_v12, %v3724_v40  ;;  %v6562_v15 = vld [vmem:[#allocation2 + $0x2a0] sm:$0xf]  ;;  %v6259_v17 = vor.u32 %v6827_v61, %v6258_v42  ;;  %v3704_v40 = vrot.slane %v9121_v2, 4 }
 0x45c   : > { %3756 = vst [vmem:[#allocation2 + $0x288] sm:$0xff] %v3725_v49  ;;  %v6904_v32 = vld [vmem:[#allocation2 + $0x2a8] sm:$0xf0] }
 0x45d   : > { %v6563_v1 = vor.u32 %v6904_v32, %v6562_v15 }
 0x45f   : > { %5210 = vmatpush.bf16.msra.mxu1 %v6319_v27  ;;  %4943 = vmatmul.bf16.gmra.mxu3 %v9129_v58  ;;  %v3695_v25 = vpop.permute.xlu0 %3694  ;;  %v3945_v16 = vpop.permute.xlu1 %3944  ;;  %v6824_v27 = vld [vmem:[#allocation2 + $0x28] sm:$0xf0] }
 0x460   : > { %4996 = vmatmul.bf16.gmra.mxu1 %v9132_v9  ;;  %5010 = vmatpush.bf16.msrb.mxu2 %v6563_v1  ;;  %v3711_v33 = vrot.slane %v3695_v25, 4  ;;  %3759 = vst.msk [vmem:[#allocation2 + $0x29c] sm:$0xf] %vm397_vm0, %v3695_v25  ;;  %v3687_v37 = vpop.permute.xlu2 %3686  ;;  %v3964_v21 = vrot.slane %v3945_v16, 4  ;;  %v6247_v6 = vor.u32 %v6824_v27, %v6246_v24 }
 0x461   : > { %3755 = vst.msk [vmem:[#allocation2 + $0x284] sm:$0xf] %vm397_vm0, %v3687_v37  ;;  %v3707_v59 = vrot.slane %v3687_v37, 4 }
 0x462   : > { %v3726_v55 = vsel %vm362_vm1, %v3710_v23, %v3711_v33  ;;  %v3980_v60 = vsel %vm362_vm1, %v3964_v21, %v3965_v36 }
 0x463   : > { %5211 = vmatpush.bf16.msra.mxu1 %v6307_v41  ;;  %v3727_v31 = vsel %vm364_vm3, %v9071_v54, %v3726_v55  ;;  %v3981_v35 = vsel %vm623_vm7, %v3945_v16, %v3980_v60  ;;  %v6550_v7 = vld [vmem:[#allocation2 + $0x288] sm:$0xf]  ;;  %v6235_v16 = vor.u32 %v6821_v5, %v6234_v10 }
 0x464   : > { %3758 = vst [vmem:[#allocation2 + $0x294] sm:$0xff] %v3727_v31 }
 0x465   : > { %4012 = vst [vmem:[#allocation2 + $0x348] sm:$0xff] %v3981_v35 }
 0x467   : > { %5212 = vmatpush.bf16.msra.mxu1 %v6295_v43  ;;  %v3949_v20 = vpop.permute.xlu0 %3948  ;;  %v3951_v13 = vpop.permute.xlu1 %3950 }
 0x468   : > { %v3966_v45 = vrot.slane %v3949_v20, 4  ;;  %v9156_v54 = vpop.permute.xlu2 %3940  ;;  %v3967_v38 = vrot.slane %v3951_v13, 4  ;;  %4015 = vst.msk [vmem:[#allocation2 + $0x35c] sm:$0xf] %vm397_vm0, %v3951_v13 }
 0x469   : > { %4972 = vmatmul.bf16.gmra.mxu0 %v9151_v8 }
 0x46a   : > { %v3982_v28 = vsel %vm362_vm1, %v3966_v45, %v3967_v38 }
 0x46b   : > { %5213 = vmatpush.bf16.msra.mxu1 %v6283_v56  ;;  %v3983_v0 = vsel %vm623_vm7, %v3949_v20, %v3982_v28  ;;  %v6901_v12 = vld [vmem:[#allocation2 + $0x290] sm:$0xf0]  ;;  %v6654_v56 = vld [vmem:[#allocation2 + $0x350] sm:$0xf] }
 0x46c   : > { %4014 = vst [vmem:[#allocation2 + $0x354] sm:$0xff] %v3983_v0  ;;  %v6551_v19 = vor.u32 %v6901_v12, %v6550_v7  ;;  %v6646_v1 = vld [vmem:[#allocation2 + $0x348] sm:$0xf]  ;;  %v6924_v29 = vld [vmem:[#allocation2 + $0x34c] sm:$0xf] }
 0x46e   : > { %5011 = vmatpush.bf16.msrb.mxu2 %v6551_v19 }
 0x46f   : > { %5214 = vmatpush.bf16.msra.mxu1 %v6271_v53  ;;  %v3683_v18 = vpop.permute.xlu0 %3682  ;;  %v3685_v50 = vpop.permute.xlu1 %3684  ;;  %v6926_v14 = vld [vmem:[#allocation2 + $0x358] sm:$0xf0]  ;;  %v3962_v53 = vrot.slane %v9156_v54, 4 }
 0x470   : > { %5001 = vmatmul.bf16.gmra.mxu1 %v9165_v34  ;;  %v3705_v49 = vrot.slane %v3683_v18, 4  ;;  %3753 = vst.msk [vmem:[#allocation2 + $0x278] sm:$0xf] %vm397_vm0, %v3683_v18  ;;  %v3675_v41 = vpop.permute.xlu2 %3674  ;;  %v3706_v15 = vrot.slane %v3685_v50, 4  ;;  %v6655_v4 = vor.u32 %v6926_v14, %v6654_v56 }
 0x471   : > { %3749 = vst.msk [vmem:[#allocation2 + $0x260] sm:$0xf] %vm397_vm0, %v3675_v41  ;;  %v3701_v61 = vrot.slane %v3675_v41, 4 }
 0x472   : > { %v3720_v32 = vsel %vm362_vm1, %v3704_v40, %v3705_v49  ;;  %v3722_v39 = vsel %vm362_vm1, %v3706_v15, %v3707_v59 }
 0x473   : > { %5215 = vmatpush.bf16.msra.mxu1 %v6259_v17  ;;  %v3721_v11 = vsel %vm364_vm3, %v9121_v2, %v3720_v32  ;;  %v3723_v25 = vsel %vm364_vm3, %v3685_v50, %v3722_v39  ;;  %v6925_v43 = vld [vmem:[#allocation2 + $0x350] sm:$0xf0]  ;;  %v6648_v23 = vld [vmem:[#allocation2 + $0x354] sm:$0xf0] }
 0x474   : > { %3752 = vst [vmem:[#allocation2 + $0x270] sm:$0xff] %v3721_v11  ;;  %v6647_v36 = vor.u32 %v6925_v43, %v6646_v1  ;;  %v6651_v33 = vor.u32 %v6924_v29, %v6648_v23 }
 0x475   : > { %3754 = vst [vmem:[#allocation2 + $0x27c] sm:$0xff] %v3723_v25 }
 0x476   : > { %5040 = vmatpush.bf16.msrb.mxu3 %v6647_v36  ;;  %5185 = vmatpush.bf16.msra.mxu0 %v6651_v33 }
 0x477   : > { %5216 = vmatpush.bf16.msra.mxu1 %v6247_v6  ;;  %v3937_v37 = vpop.permute.xlu0 %3936  ;;  %v3939_v21 = vpop.permute.xlu1 %3938 }
 0x478   : > { %v3960_v55 = vrot.slane %v3937_v37, 4  ;;  %v9176_v60 = vpop.permute.xlu2 %3928  ;;  %v3961_v3 = vrot.slane %v3939_v21, 4  ;;  %4009 = vst.msk [vmem:[#allocation2 + $0x338] sm:$0xf] %vm397_vm0, %v3939_v21 }
 0x479   : > { %5073 = vmatmul.bf16.vlgmr.msrb.gmra.mxu0 %v8968_v46  ;;  %v3956_v39 = vrot.slane %v9176_v60, 4 }
 0x47a   : > { %v3976_v2 = vsel %vm362_vm1, %v3960_v55, %v3961_v3 }
 0x47b   : > { %5217 = vmatpush.bf16.msra.mxu1 %v6235_v16  ;;  %v3977_v57 = vsel %vm623_vm7, %v3937_v37, %v3976_v2  ;;  %v6538_v31 = vld [vmem:[#allocation2 + $0x270] sm:$0xf] }
 0x47c   : > { %4008 = vst [vmem:[#allocation2 + $0x330] sm:$0xff] %v3977_v57  ;;  %v6898_v35 = vld [vmem:[#allocation2 + $0x278] sm:$0xf0] }
 0x47d   : > { %v6539_v30 = vor.u32 %v6898_v35, %v6538_v31 }
 0x47f   : > { %5012 = vmatpush.bf16.msrb.mxu2 %v6539_v30  ;;  %v3943_v20 = vpop.permute.xlu0 %3942  ;;  %v3673_v13 = vpop.permute.xlu1 %3672  ;;  %v6642_v12 = vld [vmem:[#allocation2 + $0x338] sm:$0xf] }
 0x480   : > { %5102 = vmatmul.bf16.vlgmr.msrb.gmra.mxu1 %v8997_v44  ;;  %v3963_v47 = vrot.slane %v3943_v20, 4  ;;  %4011 = vst.msk [vmem:[#allocation2 + $0x344] sm:$0xf] %vm397_vm0, %v3943_v20  ;;  %v3935_v45 = vpop.permute.xlu2 %3934  ;;  %v3700_v38 = vrot.slane %v3673_v13, 4 }
 0x481   : > { %5330 = vmatpush.bf16.msrb.mxu1 %v6655_v4  ;;  %4007 = vst.msk [vmem:[#allocation2 + $0x32c] sm:$0xf] %vm397_vm0, %v3935_v45  ;;  %v3959_v1 = vrot.slane %v3935_v45, 4 }
 0x482   : > { %v3978_v22 = vsel %vm362_vm1, %v3962_v53, %v3963_v47  ;;  %v3716_v28 = vsel %vm362_vm1, %v3700_v38, %v3701_v61 }
 0x483   : > { %v3979_v42 = vsel %vm623_vm7, %v9156_v54, %v3978_v22  ;;  %v3717_v0 = vsel %vm364_vm3, %v3673_v13, %v3716_v28  ;;  %v6634_v54 = vld [vmem:[#allocation2 + $0x330] sm:$0xf]  ;;  %v6921_v40 = vld [vmem:[#allocation2 + $0x334] sm:$0xf] }
 0x484   : > { %4010 = vst [vmem:[#allocation2 + $0x33c] sm:$0xff] %v3979_v42 }
 0x485   : > { %3748 = vst [vmem:[#allocation2 + $0x258] sm:$0xff] %v3717_v0 }
 0x487   : > { %v3677_v17 = vpop.permute.xlu0 %3676  ;;  %v3679_v7 = vpop.permute.xlu1 %3678  ;;  %v6923_v19 = vld [vmem:[#allocation2 + $0x340] sm:$0xf0] }
 0x488   : > { %v3702_v27 = vrot.slane %v3677_v17, 4  ;;  %v9191_v24 = vpop.permute.xlu2 %3668  ;;  %v3703_v18 = vrot.slane %v3679_v7, 4  ;;  %3751 = vst.msk [vmem:[#allocation2 + $0x26c] sm:$0xf] %vm397_vm0, %v3679_v7  ;;  %v6643_v50 = vor.u32 %v6923_v19, %v6642_v12  ;;  %v6920_v57 = vld [vmem:[#allocation2 + $0x328] sm:$0xf0] }
 0x489   : > { %5078 = vmatmul.bf16.gmra.mxu0 %v9023_v26  ;;  %v3698_v38 = vrot.slane %v9191_v24, 4 }
 0x48a   : > { %v3718_v6 = vsel %vm362_vm1, %v3702_v27, %v3703_v18  ;;  %5331 = vmatpush.bf16.msrb.mxu1 %v6643_v50 }
 0x48b   : > { %v3719_v10 = vsel %vm364_vm3, %v3677_v17, %v3718_v6  ;;  %v6922_v5 = vld [vmem:[#allocation2 + $0x338] sm:$0xf0]  ;;  %v6636_v59 = vld [vmem:[#allocation2 + $0x33c] sm:$0xf0] }
 0x48c   : > { %3750 = vst [vmem:[#allocation2 + $0x264] sm:$0xff] %v3719_v10  ;;  %v6635_v49 = vor.u32 %v6922_v5, %v6634_v54  ;;  %v6639_v41 = vor.u32 %v6921_v40, %v6636_v59  ;;  %v6526_v33 = vld [vmem:[#allocation2 + $0x258] sm:$0xf]  ;;  %v5355_v6 = vld [vmem:[%s7116_s30] sm:$0xff] }
 0x48d   : > { %v6504_v10 = vld [vmem:[#allocation2 + $0x234] sm:$0xf0]  ;;  %v6156_v5 = vld [vmem:[%s9687_s4 + $0x1c] sm:$0xf0]  ;;  %v5371_v40 = vunpack.c.l.bf16 %v5355_v6  ;;  %v5372_v59 = vunpack.c.h.bf16 %v5355_v6 }
 0x48e   : > { %5041 = vmatpush.bf16.msrb.mxu3 %v6635_v49  ;;  %5186 = vmatpush.bf16.msra.mxu0 %v6639_v41 }
 0x48f   : > { %v3931_v15 = vpop.permute.xlu0 %3930  ;;  %v3933_v32 = vpop.permute.xlu1 %3932 }
 0x490   : > { %5107 = vmatmul.bf16.gmra.mxu1 %v9060_v51  ;;  %v3957_v11 = vrot.slane %v3931_v15, 4  ;;  %4005 = vst.msk [vmem:[#allocation2 + $0x320] sm:$0xf] %vm397_vm0, %v3931_v15  ;;  %v3923_v25 = vpop.permute.xlu2 %3922  ;;  %v3958_v16 = vrot.slane %v3933_v32, 4 }
 0x491   : > { %4001 = vst.msk [vmem:[#allocation2 + $0x308] sm:$0xf] %vm397_vm0, %v3923_v25  ;;  %v3953_v22 = vrot.slane %v3923_v25, 4 }
 0x492   : > { %v3972_v43 = vsel %vm362_vm1, %v3956_v39, %v3957_v11  ;;  %v3974_v29 = vsel %vm362_vm1, %v3958_v16, %v3959_v1  ;;  %v6888_v39 = vld [vmem:[#allocation2 + $0x22c] sm:$0xf]  ;;  %v6970_v1 = vpack.i.bf16 %v5372_v59, %v5371_v40  ;;  %v6492_v16 = vld [vmem:[#allocation2 + $0x21c] sm:$0xf0] }
 0x493   : > { %v3973_v23 = vsel %vm623_vm7, %v9176_v60, %v3972_v43  ;;  %v3975_v36 = vsel %vm623_vm7, %v3933_v32, %v3974_v29  ;;  %v6895_v37 = vld [vmem:[#allocation2 + $0x260] sm:$0xf0]  ;;  %v6507_v11 = vor.u32 %v6888_v39, %v6504_v10 }
 0x494   : > { %4004 = vst [vmem:[#allocation2 + $0x318] sm:$0xff] %v3973_v23  ;;  %v6527_v21 = vor.u32 %v6895_v37, %v6526_v33  ;;  %6971 = vrot.lane.b32.xlu1 %v6970_v1, %s7047_s11  ;;  %v6882_v33 = vld [vmem:[#allocation2 + $0x1fc] sm:$0xf]  ;;  %v6480_v37 = vld [vmem:[#allocation2 + $0x204] sm:$0xf0]  ;;  %v5359_v40 = vld [vmem:[%s7116_s30 + $0x20] sm:$0xff] }
 0x495   : > { %4006 = vst [vmem:[#allocation2 + $0x324] sm:$0xff] %v3975_v36  ;;  %v6885_v36 = vld [vmem:[#allocation2 + $0x214] sm:$0xf]  ;;  %v5378_v39 = vunpack.c.h.bf16 %v5359_v40 }
 0x496   : > { %5013 = vmatpush.bf16.msrb.mxu2 %v6527_v21  ;;  %v6912_v21 = vld [vmem:[#allocation2 + $0x2ec] sm:$0xf] }
 0x497   : > { %v3665_v55 = vpop.permute.xlu0 %3664  ;;  %v3667_v3 = vpop.permute.xlu1 %3666  ;;  %v6630_v2 = vld [vmem:[#allocation2 + $0x320] sm:$0xf] }
 0x498   : > { %v3696_v14 = vrot.slane %v3665_v55, 4  ;;  %v3697_v31 = vrot.slane %v3667_v3, 4  ;;  %3745 = vst.msk [vmem:[#allocation2 + $0x248] sm:$0xf] %vm397_vm0, %v3667_v3  ;;  %v6631_v35 = vor.u32 %v6920_v57, %v6630_v2  ;;  %v6618_v43 = vld [vmem:[#allocation2 + $0x308] sm:$0xf]  ;;  %v6495_v3 = vor.u32 %v6885_v36, %v6492_v16 }
 0x499   : > { %5083 = vmatmul.bf16.gmra.mxu0 %v9082_v62  ;;  %v6600_v2 = vld [vmem:[#allocation2 + $0x2f4] sm:$0xf0]  ;;  %v6606_v57 = vld [vmem:[#allocation2 + $0x2f0] sm:$0xf]  ;;  %v6908_v16 = vld [vmem:[#allocation2 + $0x2c8] sm:$0xf0] }
 0x49a   : > { %v3712_v60 = vsel %vm362_vm1, %v3696_v14, %v3697_v31  ;;  %5332 = vmatpush.bf16.msrb.mxu1 %v6631_v35  ;;  %v9235_v14 = vld [vmem:[%s7116_s30 + $0x10] sm:$0xff]  ;;  %v5358_v31 = vld [vmem:[%s7116_s30 + $0x18] sm:$0xf] }
 0x49b   : > { %v3713_v56 = vsel %vm364_vm3, %v3665_v55, %v3712_v60  ;;  %v6622_v30 = vld [vmem:[#allocation2 + $0x318] sm:$0xf]  ;;  %v6918_v4 = vld [vmem:[#allocation2 + $0x31c] sm:$0xf]  ;;  %v6162_v60 = vld [vmem:[%s9687_s4 + $0x10] sm:$0xf] }
 0x49c   : > { %3744 = vst [vmem:[#allocation2 + $0x240] sm:$0xff] %v3713_v56  ;;  %v6919_v20 = vld [vmem:[#allocation2 + $0x320] sm:$0xf0]  ;;  %v6624_v13 = vld [vmem:[#allocation2 + $0x324] sm:$0xf0] }
 0x49d   : > { %v6623_v53 = vor.u32 %v6919_v20, %v6622_v30  ;;  %v6627_v61 = vor.u32 %v6918_v4, %v6624_v13  ;;  %v6803_v56 = vld [vmem:[%s9687_s4 + $0x20] sm:$0xf0]  ;;  %v5375_v30 = vunpack.c.h.bf16 %v9235_v14  ;;  %v5376_v4 = vunpack.c.l.bf16 %v5358_v31  ;;  %v6444_v31 = vld [vmem:[#allocation2 + $0x1bc] sm:$0xf0] }
 0x49f   : > { %5042 = vmatpush.bf16.msrb.mxu3 %v6623_v53  ;;  %v3671_v47 = vpop.permute.xlu0 %3670  ;;  %v3921_v45 = vpop.permute.xlu1 %3920  ;;  %5187 = vmatpush.bf16.msra.mxu0 %v6627_v61 }
 0x4a0   : > { %5112 = vmatmul.bf16.gmra.mxu1 %v9110_v63  ;;  %v3699_v28 = vrot.slane %v3671_v47, 4  ;;  %3747 = vst.msk [vmem:[#allocation2 + $0x254] sm:$0xf] %vm397_vm0, %v3671_v47  ;;  %v3952_v42 = vrot.slane %v3921_v45, 4 }
 0x4a2   : > { %v3714_v0 = vsel %vm362_vm1, %v3698_v38, %v3699_v28  ;;  %v3968_v17 = vsel %vm362_vm1, %v3952_v42, %v3953_v22  ;;  %v6483_v38 = vor.u32 %v6882_v33, %v6480_v37  ;;  %v6603_v22 = vor.u32 %v6912_v21, %v6600_v2  ;;  %v6914_v28 = vld [vmem:[#allocation2 + $0x2f8] sm:$0xf0]  ;;  %v6582_v21 = vld [vmem:[#allocation2 + $0x2c0] sm:$0xf] }
 0x4a3   : > { %v3715_v7 = vsel %vm364_vm3, %v9191_v24, %v3714_v0  ;;  %v3969_v12 = vsel %vm623_vm7, %v3921_v45, %v3968_v17  ;;  %v6800_v24 = vld [vmem:[%s9687_s4 + $0xc] sm:$0xf]  ;;  %v6514_v41 = vld [vmem:[#allocation2 + $0x240] sm:$0xf]  ;;  %v6980_v45 = vpack.i.bf16 %v5376_v4, %v5375_v30  ;;  %v9245_v42 = vor.u32 %v6803_v56, %v6162_v60  ;;  %v6906_v37 = vld [vmem:[#allocation2 + $0x2bc] sm:$0xf] }
 0x4a4   : > { %3746 = vst [vmem:[#allocation2 + $0x24c] sm:$0xff] %v3715_v7  ;;  %v9229_v25 = vor.u32 %v6800_v24, %v6156_v5  ;;  %v6607_v17 = vor.u32 %v6914_v28, %v6606_v57  ;;  %v6879_v7 = vld [vmem:[#allocation2 + $0x1e4] sm:$0xf]  ;;  %v6594_v5 = vld [vmem:[#allocation2 + $0x2d8] sm:$0xf]  ;;  %v6583_v57 = vor.u32 %v6908_v16, %v6582_v21 }
 0x4a5   : > { %4000 = vst [vmem:[#allocation2 + $0x300] sm:$0xff] %v3969_v12  ;;  %v6468_v12 = vld [vmem:[#allocation2 + $0x1ec] sm:$0xf0]  ;;  %6981 = vrot.lane.b32.xlu0 %v6980_v45, %s7047_s11  ;;  %v6570_v56 = vld [vmem:[#allocation2 + $0x2a8] sm:$0xf] }
 0x4a6   : > { %v6471_v10 = vor.u32 %v6879_v7, %v6468_v12  ;;  %v6564_v60 = vld [vmem:[#allocation2 + $0x2ac] sm:$0xf0]  ;;  %v6873_v4 = vld [vmem:[#allocation2 + $0x1b4] sm:$0xf]  ;;  %v5362_v45 = vld [vmem:[%s7116_s30 + $0x38] sm:$0xf] }
 0x4a7   : > { %v3925_v19 = vpop.permute.xlu0 %3924  ;;  %v3927_v27 = vpop.permute.xlu1 %3926  ;;  %v6182_v28 = vld [vmem:[%s9687_s4 + $0x38] sm:$0xf]  ;;  %v5382_v7 = vunpack.c.l.bf16 %v5362_v45  ;;  %v6810_v45 = vld [vmem:[%s9687_s4 + $0x5c] sm:$0xf] }
 0x4a8   : > { %v3954_v18 = vrot.slane %v3925_v19, 4  ;;  %v3955_v50 = vrot.slane %v3927_v27, 4  ;;  %4003 = vst.msk [vmem:[#allocation2 + $0x314] sm:$0xf] %vm397_vm0, %v3927_v27  ;;  %v6911_v27 = vld [vmem:[#allocation2 + $0x2e0] sm:$0xf0] }
 0x4a9   : > { %5088 = vmatmul.bf16.gmra.mxu0 %v9129_v58  ;;  %v6595_v59 = vor.u32 %v6911_v27, %v6594_v5  ;;  %v6902_v27 = vld [vmem:[#allocation2 + $0x298] sm:$0xf0]  ;;  %v6900_v5 = vld [vmem:[#allocation2 + $0x28c] sm:$0xf]  ;;  %vm5534_vm0 = vcmask 556032  }
 0x4aa   : > { %v3970_v54 = vsel %vm362_vm1, %v3954_v18, %v3955_v50  ;;  %v9247_v18 = vpop.permute.xlu2 %4194  ;;  %v6909_v50 = vld [vmem:[#allocation2 + $0x2d4] sm:$0xf] }
 0x4ab   : > { %v3971_v49 = vsel %vm623_vm7, %v3925_v19, %v3970_v54  ;;  %v6892_v15 = vld [vmem:[#allocation2 + $0x248] sm:$0xf0]  ;;  %v6588_v19 = vld [vmem:[#allocation2 + $0x2dc] sm:$0xf0] }
 0x4ac   : > { %4002 = vst [vmem:[#allocation2 + $0x30c] sm:$0xff] %v3971_v49  ;;  %v6515_v32 = vor.u32 %v6892_v15, %v6514_v41  ;;  %v6610_v35 = vld [vmem:[#allocation2 + $0x300] sm:$0xf]  ;;  %v6915_v13 = vld [vmem:[#allocation2 + $0x304] sm:$0xf]  ;;  %v6591_v24 = vor.u32 %v6909_v50, %v6588_v19 }
 0x4ad   : > { %v6456_v49 = vld [vmem:[#allocation2 + $0x1d4] sm:$0xf0]  ;;  %v6805_v41 = vld [vmem:[%s9687_s4 + $0x34] sm:$0xf]  ;;  %v6176_v15 = vld [vmem:[%s9687_s4 + $0x44] sm:$0xf0] }
 0x4ae   : > { %5014 = vmatpush.bf16.msrb.mxu2 %v6515_v32  ;;  %v5377_v32 = vunpack.c.l.bf16 %v5359_v40  ;;  %v6552_v19 = vld [vmem:[#allocation2 + $0x294] sm:$0xf0]  ;;  %v6558_v40 = vld [vmem:[#allocation2 + $0x290] sm:$0xf] }
 0x4af   : > { %v6917_v29 = vld [vmem:[#allocation2 + $0x310] sm:$0xf0]  ;;  %v9268_v30 = vpop.permute.xlu0 %4199  ;;  %v9288_v16 = vpop.permute.xlu1 %4204 }
 0x4b0   : > { %5117 = vmatmul.bf16.gmra.mxu1 %v9151_v8  ;;  %v6619_v23 = vor.u32 %v6917_v29, %v6618_v43  ;;  %v6876_v29 = vld [vmem:[#allocation2 + $0x1cc] sm:$0xf] }
 0x4b1   : > { %v4929_v55 = vpop.f32.mrf.mxu3  ;;  %5015 = vmatmul.bf16.vlgmr.msrb.gmra.mxu2 %v9229_v25  ;;  %v6459_v33 = vor.u32 %v6876_v29, %v6456_v49  ;;  %v6899_v29 = vld [vmem:[#allocation2 + $0x280] sm:$0xf0] }
 0x4b2   : > { %5123 = vmatpush.bf16.msra.mxu2 %v6507_v11  ;;  %5333 = vmatpush.bf16.msrb.mxu1 %v6619_v23  ;;  %v4930_v6 = vadd.f32 %v4929_v55, %v9247_v18  ;;  %v6576_v11 = vld [vmem:[#allocation2 + $0x2c4] sm:$0xf0]  ;;  %v6985_v23 = vpack.i.bf16 %v5378_v39, %v5377_v32  ;;  %v9264_v55 = vor.u32 %v6805_v41, %v6176_v15  ;;  %v6420_v32 = vld [vmem:[#allocation2 + $0x18c] sm:$0xf0]  ;;  %v6546_v39 = vld [vmem:[#allocation2 + $0x278] sm:$0xf] }
 0x4b3   : > { %v6916_v20 = vld [vmem:[#allocation2 + $0x308] sm:$0xf0]  ;;  %v6612_v53 = vld [vmem:[#allocation2 + $0x30c] sm:$0xf0]  ;;  %v6579_v2 = vor.u32 %v6906_v37, %v6576_v11  ;;  %v6555_v41 = vor.u32 %v6900_v5, %v6552_v19  ;;  %v6559_v15 = vor.u32 %v6902_v27, %v6558_v40  ;;  %v6540_v11 = vld [vmem:[#allocation2 + $0x27c] sm:$0xf0] }
 0x4b4   : > { %v6611_v61 = vor.u32 %v6916_v20, %v6610_v35  ;;  %v6615_v47 = vor.u32 %v6915_v13, %v6612_v53  ;;  %6986 = vrot.lane.b32.xlu1 %v6985_v23, %s7047_s11  ;;  %v6903_v35 = vld [vmem:[#allocation2 + $0x2a4] sm:$0xf]  ;;  %v6447_v53 = vor.u32 %v6873_v4, %v6444_v31  ;;  %v6414_v23 = vld [vmem:[#allocation2 + $0x170] sm:$0xf]  ;;  %v5374_v4 = vunpack.c.l.bf16 %v9235_v14  ;;  %v6893_v40 = vld [vmem:[#allocation2 + $0x250] sm:$0xf0] }
 0x4b5   : > { %v6516_v5 = vld [vmem:[#allocation2 + $0x24c] sm:$0xf0] }
 0x4b6   : > { %5124 = vmatpush.bf16.msra.mxu2 %v6495_v3  ;;  %v4958_v0 = vpop.f32.mrf.mxu0  ;;  %5043 = vmatpush.bf16.msrb.mxu3 %v6611_v61  ;;  %v6905_v61 = vld [vmem:[#allocation2 + $0x2b0] sm:$0xf0] }
 0x4b7   : > { %5188 = vmatpush.bf16.msra.mxu0 %v6615_v47  ;;  %v4959_v1 = vadd.f32 %v4958_v0, %v4930_v6  ;;  %v9273_v47 = vld [vmem:[%s7116_s30 + $0x30] sm:$0xff]  ;;  %v6808_v0 = vld [vmem:[%s9687_s4 + $0x48] sm:$0xf0]  ;;  %v6870_v6 = vld [vmem:[#allocation2 + $0x19c] sm:$0xf] }
 0x4b9   : > { %v4931_v54 = vpop.f32.mrf.mxu3  ;;  %6656 = vmatmul.msk.bf16.vlgmr.msrb.gmra.mxu3 %vm2337_vm11, %v9245_v42 }
 0x4ba   : > { %5125 = vmatpush.bf16.msra.mxu2 %v6483_v38  ;;  %5152 = vmatpush.bf16.msra.mxu3 %v6603_v22  ;;  %v4932_v20 = vadd.f32 %v4931_v54, %v9268_v30  ;;  %v6571_v38 = vor.u32 %v6905_v61, %v6570_v56  ;;  %v6432_v22 = vld [vmem:[#allocation2 + $0x1a4] sm:$0xf0] }
 0x4bb   : > { %5297 = vmatpush.bf16.msrb.mxu0 %v6607_v17  ;;  %v5381_v17 = vunpack.c.h.bf16 %v9273_v47  ;;  %v6528_v61 = vld [vmem:[#allocation2 + $0x264] sm:$0xf0] }
 0x4bc   : > { %6660 = vmatmul.msk.bf16.vlgmr.msra.gmra.mxu0 %vm2337_vm11, %v9245_v42 }
 0x4bd   : > { %v4987_v43 = vpop.f32.mrf.mxu1  ;;  %v6995_v54 = vpack.i.bf16 %v5382_v7, %v5381_v17  ;;  %v6894_v17 = vld [vmem:[#allocation2 + $0x25c] sm:$0xf]  ;;  %v6534_v7 = vld [vmem:[#allocation2 + $0x260] sm:$0xf] }
 0x4be   : > { %5126 = vmatpush.bf16.msra.mxu2 %v6471_v10  ;;  %5153 = vmatpush.bf16.msra.mxu3 %v6591_v24  ;;  %v9262_v36 = vadd.f32 %v4987_v43, %v4959_v1  ;;  %v4960_v3 = vpop.f32.mrf.mxu0  ;;  %v6435_v24 = vor.u32 %v6870_v6, %v6432_v22  ;;  %v6897_v1 = vld [vmem:[#allocation2 + $0x274] sm:$0xf]  ;;  %v6867_v43 = vld [vmem:[#allocation2 + $0x184] sm:$0xf]  ;;  %v6531_v27 = vor.u32 %v6894_v17, %v6528_v61  ;;  %v5380_v17 = vunpack.c.l.bf16 %v9273_v47 }
 0x4bf   : > { %5298 = vmatpush.bf16.msrb.mxu0 %v6595_v59  ;;  %v4961_v12 = vadd.f32 %v4960_v3, %v4932_v20  ;;  %v9285_v59 = vor.u32 %v6808_v0, %v6182_v28  ;;  %6996 = vrot.lane.b32.xlu0 %v6995_v54, %s7047_s11  ;;  %v6423_v21 = vor.u32 %v6867_v43, %v6420_v32  ;;  %v6402_v28 = vld [vmem:[#allocation2 + $0x158] sm:$0xf]  ;;  %v6863_v6 = vld [vmem:[#allocation2 + $0x160] sm:$0xf0]  ;;  %v6890_v32 = vld [vmem:[#allocation2 + $0x238] sm:$0xf0] }
 0x4c0   : > { %5218 = vmatmul.bf16.vlgmr.msra.gmra.mxu1 %v8968_v46  ;;  %v6567_v46 = vor.u32 %v6903_v35, %v6564_v60  ;;  %v6547_v3 = vor.u32 %v6899_v29, %v6546_v39  ;;  %v6543_v31 = vor.u32 %v6897_v1, %v6540_v11  ;;  %v6866_v35 = vld [vmem:[#allocation2 + $0x178] sm:$0xf0]  ;;  %v6896_v60 = vld [vmem:[#allocation2 + $0x268] sm:$0xf0]  ;;  %v6891_v11 = vld [vmem:[#allocation2 + $0x244] sm:$0xf] }
 0x4c1   : > { %5020 = vmatmul.bf16.gmra.mxu2 %v9264_v55  ;;  %v9315_v43 = vld [vmem:[%s7116_s30 + $0x50] sm:$0xff]  ;;  %v6519_v29 = vor.u32 %v6891_v11, %v6516_v5 }
 0x4c2   : > { %5127 = vmatpush.bf16.msra.mxu2 %v6459_v33  ;;  %5154 = vmatpush.bf16.msra.mxu3 %v6579_v2  ;;  %v4934_v13 = vpop.f32.mrf.mxu3  ;;  %v5356_v2 = vld [vmem:[%s7116_s30 + $0x8] sm:$0xf] }
 0x4c3   : > { %5299 = vmatpush.bf16.msrb.mxu0 %v6583_v57  ;;  %v4935_v33 = vadd.f32 %v4934_v13, %v9288_v16  ;;  %v5363_v57 = vld [vmem:[%s7116_s30 + $0x40] sm:$0xff]  ;;  %v5373_v56 = vunpack.c.l.bf16 %v5356_v2  ;;  %v6415_v13 = vor.u32 %v6866_v35, %v6414_v23 }
 0x4c4   : > { %v5383_v20 = vunpack.c.l.bf16 %v5363_v57 }
 0x4c5   : > { %v4989_v50 = vpop.f32.mrf.mxu1  ;;  %v6975_v0 = vpack.i.bf16 %v5374_v4, %v5373_v56  ;;  %v6857_v4 = vld [vmem:[#allocation2 + $0x130] sm:$0xf0] }
 0x4c6   : > { %5128 = vmatpush.bf16.msra.mxu2 %v6447_v53  ;;  %5155 = vmatpush.bf16.msra.mxu3 %v6567_v46  ;;  %v9283_v10 = vadd.f32 %v4989_v50, %v4961_v12  ;;  %v4963_v49 = vpop.f32.mrf.mxu0  ;;  %v6196_v46 = vld [vmem:[%s9687_s4 + $0x6c] sm:$0xf0]  ;;  %v6535_v50 = vor.u32 %v6896_v60, %v6534_v7  ;;  %v6813_v60 = vld [vmem:[%s9687_s4 + $0x70] sm:$0xf0]  ;;  %v5367_v7 = vld [vmem:[%s7116_s30 + $0x60] sm:$0xff] }
 0x4c7   : > { %5300 = vmatpush.bf16.msrb.mxu0 %v6571_v38  ;;  %v4964_v53 = vadd.f32 %v4963_v49, %v4935_v33  ;;  %v5384_v38 = vunpack.c.h.bf16 %v5363_v57  ;;  %v9306_v54 = vor.u32 %v6810_v45, %v6196_v46  ;;  %6976 = vrot.lane.b32.xlu2 %v6975_v0, %s7047_s11  ;;  %v9311_v49 = vpop.permute.xlu2 %4209  ;;  %v6390_v33 = vld [vmem:[#allocation2 + $0x140] sm:$0xf]  ;;  %v6378_v45 = vld [vmem:[#allocation2 + $0x128] sm:$0xf]  ;;  %v6498_v46 = vld [vmem:[#allocation2 + $0x218] sm:$0xf]  ;;  %v5390_v5 = vunpack.c.h.bf16 %v5367_v7 }
 0x4c8   : > { %v5360_v0 = vld [vmem:[%s7116_s30 + $0x28] sm:$0xf] }
 0x4c9   : > { %6657 = vmatmul.msk.bf16.gmra.mxu3 %vm2337_vm11, %v9285_v59  ;;  %v7000_v12 = vpack.i.bf16 %v5384_v38, %v5383_v20  ;;  %v6887_v20 = vld [vmem:[#allocation2 + $0x220] sm:$0xf0] }
 0x4ca   : > { %5129 = vmatpush.bf16.msra.mxu2 %v6435_v24  ;;  %5156 = vmatpush.bf16.msra.mxu3 %v6555_v41  ;;  %v4936_v37 = vpop.f32.mrf.mxu3  ;;  %v6403_v24 = vor.u32 %v6863_v6, %v6402_v28  ;;  %v6522_v41 = vld [vmem:[#allocation2 + $0x248] sm:$0xf]  ;;  %v6499_v28 = vor.u32 %v6887_v20, %v6498_v46  ;;  %v5379_v6 = vunpack.c.l.bf16 %v5360_v0  ;;  %v9358_v20 = vpop.permute.xlu1 %4219 }
 0x4cb   : > { %5301 = vmatpush.bf16.msrb.mxu0 %v6559_v15  ;;  %7001 = vrot.lane.b32.xlu1 %v7000_v12, %s7047_s11  ;;  %v6860_v15 = vld [vmem:[#allocation2 + $0x148] sm:$0xf0]  ;;  %v4937_v39 = vadd.f32 %v4936_v37, %v9311_v49  ;;  %v6523_v23 = vor.u32 %v6893_v40, %v6522_v41  ;;  %v6202_v37 = vld [vmem:[%s9687_s4 + $0x60] sm:$0xf]  ;;  %v9334_v12 = vpop.permute.xlu0 %4214 }
 0x4cc   : > { %6661 = vmatmul.msk.bf16.gmra.mxu0 %vm2337_vm11, %v9285_v59  ;;  %v9328_v38 = vor.u32 %v6813_v60, %v6202_v37 }
 0x4cd   : > { %v4992_v22 = vpop.f32.mrf.mxu1 }
 0x4ce   : > { %5130 = vmatpush.bf16.msra.mxu2 %v6423_v21  ;;  %5157 = vmatpush.bf16.msra.mxu3 %v6543_v31  ;;  %v9304_v14 = vadd.f32 %v4992_v22, %v4964_v53  ;;  %v4965_v19 = vpop.f32.mrf.mxu0  ;;  %v6510_v21 = vld [vmem:[#allocation2 + $0x230] sm:$0xf]  ;;  %v6391_v31 = vor.u32 %v6860_v15, %v6390_v33  ;;  %v6379_v22 = vor.u32 %v6857_v4, %v6378_v45  ;;  %v6354_v33 = vld [vmem:[#allocation2 + $0xf8] sm:$0xf] }
 0x4cf   : > { %5302 = vmatpush.bf16.msrb.mxu0 %v6547_v3  ;;  %v5387_v3 = vunpack.c.h.bf16 %v9315_v43  ;;  %v4966_v57 = vadd.f32 %v4965_v19, %v4937_v39  ;;  %v6511_v35 = vor.u32 %v6890_v32, %v6510_v21  ;;  %v6854_v19 = vld [vmem:[#allocation2 + $0x118] sm:$0xf0]  ;;  %v6366_v15 = vld [vmem:[#allocation2 + $0x110] sm:$0xf]  ;;  %v6990_v32 = vpack.i.bf16 %v5380_v17, %v5379_v6  ;;  %v6474_v21 = vld [vmem:[#allocation2 + $0x1e8] sm:$0xf] }
 0x4d0   : > { %5223 = vmatmul.bf16.gmra.mxu1 %v9023_v26  ;;  %v5366_v26 = vld [vmem:[%s7116_s30 + $0x58] sm:$0xf]  ;;  %v6367_v11 = vor.u32 %v6854_v19, %v6366_v15 }
 0x4d1   : > { %5025 = vmatmul.bf16.gmra.mxu2 %v9306_v54  ;;  %v5388_v2 = vunpack.c.l.bf16 %v5366_v26  ;;  %6991 = vrot.lane.b32.xlu2 %v6990_v32, %s7047_s11  ;;  %v5370_v4 = vld [vmem:[%s7116_s30 + $0x78] sm:$0xf]  ;;  %v6330_v32 = vld [vmem:[#allocation2 + $0xc8] sm:$0xf] }
 0x4d2   : > { %5239 = vmatpush.bf16.msrb.mxu2 %v6415_v13  ;;  %5158 = vmatpush.bf16.msra.mxu3 %v6531_v27  ;;  %v4939_v1 = vpop.f32.mrf.mxu3  ;;  %v6486_v27 = vld [vmem:[#allocation2 + $0x200] sm:$0xf]  ;;  %v5394_v46 = vunpack.c.l.bf16 %v5370_v4 }
 0x4d3   : > { %5303 = vmatpush.bf16.msrb.mxu0 %v6535_v50  ;;  %v7010_v53 = vpack.i.bf16 %v5388_v2, %v5387_v3  ;;  %v6884_v50 = vld [vmem:[#allocation2 + $0x208] sm:$0xf0]  ;;  %v4940_v40 = vadd.f32 %v4939_v1, %v9334_v12  ;;  %v6216_v1 = vld [vmem:[%s9687_s4 + $0x94] sm:$0xf0]  ;;  %v6881_v3 = vld [vmem:[#allocation2 + $0x1f0] sm:$0xf0] }
 0x4d4   : > { %v6487_v26 = vor.u32 %v6884_v50, %v6486_v27  ;;  %v6475_v60 = vor.u32 %v6881_v3, %v6474_v21  ;;  %v6222_v27 = vld [vmem:[%s9687_s4 + $0x88] sm:$0xf]  ;;  %v6818_v50 = vld [vmem:[%s9687_s4 + $0x98] sm:$0xf0] }
 0x4d5   : > { %v4994_v56 = vpop.f32.mrf.mxu1  ;;  %7011 = vrot.lane.b32.xlu0 %v7010_v53, %s7047_s11  ;;  %v6848_v53 = vld [vmem:[#allocation2 + $0xe8] sm:$0xf0] }
 0x4d6   : > { %5240 = vmatpush.bf16.msrb.mxu2 %v6403_v24  ;;  %5159 = vmatpush.bf16.msra.mxu3 %v6519_v29  ;;  %v9326_v13 = vadd.f32 %v4994_v56, %v4966_v57  ;;  %v4968_v61 = vpop.f32.mrf.mxu0  ;;  %v5389_v24 = vunpack.c.l.bf16 %v5367_v7  ;;  %v6815_v29 = vld [vmem:[%s9687_s4 + $0x84] sm:$0xf]  ;;  %v9355_v56 = vld [vmem:[%s7116_s30 + $0x70] sm:$0xff] }
 0x4d7   : > { %5304 = vmatpush.bf16.msrb.mxu0 %v6523_v23  ;;  %v4969_v39 = vadd.f32 %v4968_v61, %v4940_v40  ;;  %v6878_v61 = vld [vmem:[#allocation2 + $0x1d8] sm:$0xf0]  ;;  %v5393_v45 = vunpack.c.h.bf16 %v9355_v56  ;;  %v6875_v40 = vld [vmem:[#allocation2 + $0x1c0] sm:$0xf0] }
 0x4d8   : > { %v7015_v47 = vpack.i.bf16 %v5390_v5, %v5389_v24  ;;  %v6845_v5 = vld [vmem:[#allocation2 + $0xd0] sm:$0xf0] }
 0x4d9   : > { %6658 = vmatmul.msk.bf16.gmra.mxu3 %vm2337_vm11, %v9328_v38  ;;  %v7025_v0 = vpack.i.bf16 %v5394_v46, %v5393_v45  ;;  %v6426_v45 = vld [vmem:[#allocation2 + $0x188] sm:$0xf] }
 0x4da   : > { %5241 = vmatpush.bf16.msrb.mxu2 %v6391_v31  ;;  %5268 = vmatpush.bf16.msrb.mxu3 %v6511_v35  ;;  %v4941_v41 = vpop.f32.mrf.mxu3  ;;  %v6851_v31 = vld [vmem:[#allocation2 + $0x100] sm:$0xf0]  ;;  %v9351_v35 = vor.u32 %v6815_v29, %v6216_v1  ;;  %v5364_v29 = vld [vmem:[%s7116_s30 + $0x48] sm:$0xf]  ;;  %v5386_v1 = vunpack.c.l.bf16 %v9315_v43 }
 0x4db   : > { %7016 = vrot.lane.b32.xlu1 %v7015_v47, %s7047_s11  ;;  %v6355_v37 = vor.u32 %v6851_v31, %v6354_v33  ;;  %v6450_v47 = vld [vmem:[#allocation2 + $0x1b8] sm:$0xf]  ;;  %v6872_v33 = vld [vmem:[#allocation2 + $0x1a8] sm:$0xf0]  ;;  %v5385_v21 = vunpack.c.l.bf16 %v5364_v29 }
 0x4dc   : > { %6662 = vmatmul.msk.bf16.gmra.mxu0 %vm2337_vm11, %v9328_v38 }
 0x4dd   : > { %v4997_v23 = vpop.f32.mrf.mxu1  ;;  %7026 = vrot.lane.b32.xlu0 %v7025_v0, %s7047_s11  ;;  %v7005_v31 = vpack.i.bf16 %v5386_v1, %v5385_v21 }
 0x4de   : > { %5242 = vmatpush.bf16.msrb.mxu2 %v6379_v22  ;;  %5269 = vmatpush.bf16.msrb.mxu3 %v6499_v28  ;;  %v9349_v2 = vadd.f32 %v4997_v23, %v4969_v39  ;;  %v4970_v57 = vpop.f32.mrf.mxu0  ;;  %v4942_v22 = vadd.f32 %v4941_v41, %v9358_v20  ;;  %v6342_v28 = vld [vmem:[#allocation2 + $0xe0] sm:$0xf]  ;;  %v6223_v39 = vor.u32 %v6818_v50, %v6222_v27  ;;  %v9374_v23 = vpop.permute.xlu2 %4224  ;;  %v5392_v27 = vunpack.c.l.bf16 %v9355_v56 }
 0x4df   : > { %v6343_v7 = vor.u32 %v6848_v53, %v6342_v28  ;;  %v6869_v53 = vld [vmem:[#allocation2 + $0x190] sm:$0xf0]  ;;  %7006 = vrot.lane.b32.xlu2 %v7005_v31, %s7047_s11 }
 0x4e0   : > { %5228 = vmatmul.bf16.gmra.mxu1 %v9082_v62  ;;  %v6462_v62 = vld [vmem:[#allocation2 + $0x1d0] sm:$0xf]  ;;  %v4971_v17 = vadd.f32 %v4970_v57, %v4942_v22  ;;  %v6438_v57 = vld [vmem:[#allocation2 + $0x1a0] sm:$0xf]  ;;  %v6427_v46 = vor.u32 %v6869_v53, %v6426_v45  ;;  %v9383_v22 = vpop.permute.xlu0 %4229 }
 0x4e1   : > { %5030 = vmatmul.bf16.gmra.mxu2 %v9351_v35  ;;  %v6463_v19 = vor.u32 %v6878_v61, %v6462_v62 }
 0x4e2   : > { %5243 = vmatpush.bf16.msrb.mxu2 %v6367_v11  ;;  %5270 = vmatpush.bf16.msrb.mxu3 %v6487_v26  ;;  %v4944_v6 = vpop.f32.mrf.mxu3  ;;  %v6331_v11 = vor.u32 %v6845_v5, %v6330_v32  ;;  %v6451_v26 = vor.u32 %v6875_v40, %v6450_v47 }
 0x4e3   : > { %v4945_v3 = vadd.f32 %v4944_v6, %v9374_v23 }
 0x4e5   : > { %v4999_v24 = vpop.f32.mrf.mxu1 }
 0x4e6   : > { %5244 = vmatpush.bf16.msrb.mxu2 %v6355_v37  ;;  %5271 = vmatpush.bf16.msrb.mxu3 %v6475_v60  ;;  %v9370_v41 = vadd.f32 %v4999_v24, %v4971_v17  ;;  %v4973_v15 = vpop.f32.mrf.mxu0  ;;  %v6439_v60 = vor.u32 %v6872_v33, %v6438_v57 }
 0x4e7   : > { %v4974_v37 = vadd.f32 %v4973_v15, %v4945_v3 }
 0x4e9   : > { %6659 = vmatmul.msk.bf16.gmra.mxu3 %vm2337_vm11, %v6223_v39 }
 0x4ea   : > { %5245 = vmatpush.bf16.msrb.mxu2 %v6343_v7  ;;  %5272 = vmatpush.bf16.msrb.mxu3 %v6463_v19  ;;  %v4946_v61 = vpop.f32.mrf.mxu3  ;;  %v5368_v19 = vld [vmem:[%s7116_s30 + $0x68] sm:$0xf]  ;;  %s6943_s30 = smul.u32 192, %s9700_s27 }
 0x4eb   : > { %v4947_v62 = vadd.f32 %v4946_v61, %v9383_v22  ;;  %v5391_v50 = vunpack.c.l.bf16 %v5368_v19 }
 0x4ec   : > { %6663 = vmatmul.msk.bf16.gmra.mxu0 %vm2337_vm11, %v6223_v39  ;;  %s9448_s16 = scalar_lea.vmem %s9690_s7, %s6943_s30 }
 0x4ed   : > { %v5002_v4 = vpop.f32.mrf.mxu1 }
 0x4ee   : > { %5246 = vmatpush.bf16.msrb.mxu2 %v6331_v11  ;;  %5273 = vmatpush.bf16.msrb.mxu3 %v6451_v26  ;;  %v9380_v43 = vadd.f32 %v5002_v4, %v4974_v37  ;;  %v4975_v28 = vpop.f32.mrf.mxu0 }
 0x4ef   : > { %v4976_v0 = vadd.f32 %v4975_v28, %v4947_v62 }
 0x4f0   : > { %5233 = vmatmul.bf16.gmra.mxu1 %v9129_v58  ;;  %v7020_v58 = vpack.i.bf16 %v5392_v27, %v5391_v50 }
 0x4f1   : > { %5131 = vmatmul.bf16.vlgmr.msra.gmra.mxu2 %v9029_v48 }
 0x4f2   : > { %5274 = vmatpush.bf16.msrb.mxu3 %v6439_v60  ;;  %7021 = vrot.lane.b32.xlu2 %v7020_v58, %s7047_s11 }
 0x4f5   : > { %v5004_v17 = vpop.f32.mrf.mxu1 }
 0x4f6   : > { %5275 = vmatpush.bf16.msrb.mxu3 %v6427_v46  ;;  %v9387_v7 = vadd.f32 %v5004_v17, %v4976_v0  ;;  %v9401_v56 = vpop.f32.mrf.mxu0 }
 0x4f9   : > { %5160 = vmatmul.bf16.vlgmr.msra.gmra.mxu3 %v9229_v25 }
 0x4fc   : > { %5305 = vmatmul.bf16.vlgmr.msrb.gmra.mxu0 %v9229_v25 }
 0x4fd   : > { %v9403_v6 = vpop.f32.mrf.mxu1 }
 0x4fe   : > { %v9406_v25 = vpop.f32.mrf.mxu0 }
 0x500   : > { %6664 = vmatmul.msk.bf16.vlgmr.msrb.gmra.mxu1 %vm2337_vm11, %v9245_v42 }
 0x501   : > { %5136 = vmatmul.bf16.gmra.mxu2 %v9088_v52 }
 0x505   : > { %v9410_v42 = vpop.f32.mrf.mxu1 }
 0x509   : > { %5165 = vmatmul.bf16.gmra.mxu3 %v9264_v55 }
 0x50c   : > { %5310 = vmatmul.bf16.gmra.mxu0 %v9264_v55  ;;  %v9415_v55 = vpop.f32.mrf.mxu0 }
 0x510   : > { %6665 = vmatmul.msk.bf16.gmra.mxu1 %vm2337_vm11, %v9285_v59  ;;  %v9417_v59 = vpop.f32.mrf.mxu1 }
 0x511   : > { %5141 = vmatmul.bf16.gmra.mxu2 %v9132_v9 }
 0x514   : > { %v9421_v24 = vpop.f32.mrf.mxu0 }
 0x517   : > { %v9441_v29 = vpop.permute.xlu0 %6981 }
 0x518   : > { %v9423_v5 = vpop.f32.mrf.mxu1 }
 0x519   : > { %5170 = vmatmul.bf16.gmra.mxu3 %v9306_v54 }
 0x51c   : > { %5315 = vmatmul.bf16.gmra.mxu0 %v9306_v54  ;;  %v9429_v40 = vpop.f32.mrf.mxu0 }
 0x520   : > { %6666 = vmatmul.msk.bf16.gmra.mxu1 %vm2337_vm11, %v9328_v38  ;;  %v9427_v38 = vpop.permute.xlu1 %6971  ;;  %v9431_v15 = vpop.f32.mrf.mxu1 }
 0x521   : > { %5146 = vmatmul.bf16.gmra.mxu2 %v9165_v34  ;;  %v6974_v32 = vunpack.i.h.bf16 %v9427_v38  ;;  %v6973_v47 = vunpack.i.l.bf16 %v9427_v38  ;;  %v9443_v1 = vpop.permute.xlu2 %6976 }
 0x522   : > { %v6979_v33 = vunpack.i.h.bf16 %v9443_v1 }
 0x524   : > { %v9452_v21 = vpop.f32.mrf.mxu0 }
 0x528   : > { %v9456_v3 = vpop.f32.mrf.mxu1  ;;  %v9462_v53 = vpop.permute.xlu1 %6986 }
 0x529   : > { %5175 = vmatmul.bf16.gmra.mxu3 %v9351_v35  ;;  %v6989_v45 = vunpack.i.h.bf16 %v9462_v53  ;;  %v6988_v46 = vunpack.i.l.bf16 %v9462_v53 }
 0x52b   : > { %v5472_v17 = vsel %vm881_vm5, %v6988_v46, %v6989_v45  ;;  %v9478_v50 = vpop.permute.xlu2 %6991 }
 0x52c   : > { %5320 = vmatmul.bf16.gmra.mxu0 %v9351_v35 }
 0x530   : > { %6667 = vmatmul.msk.bf16.gmra.mxu1 %vm2337_vm11, %v6223_v39  ;;  %v9471_v62 = vpop.f32.mrf.mxu1 }
 0x531   : > { %5247 = vmatmul.bf16.vlgmr.msrb.gmra.mxu2 %v8997_v44  ;;  %v5468_v44 = vsel %vm881_vm5, %v6973_v47, %v6974_v32  ;;  %v9476_v27 = vpop.permute.xlu0 %6996 }
 0x534   : > { %v5016_v54 = vpop.f32.mrf.mxu2 }
 0x535   : > { %v5017_v35 = vadd.f32 %v5016_v54, %v9262_v36  ;;  %v6983_v36 = vunpack.i.l.bf16 %v9441_v29  ;;  %v6994_v54 = vunpack.i.h.bf16 %v9478_v50 }
 0x537   : > { %v5470_v60 = vsel %vm881_vm5, %v6979_v33, %v6983_v36 }
 0x539   : > { %5276 = vmatmul.bf16.vlgmr.msrb.gmra.mxu3 %v9029_v48  ;;  %v9504_v46 = vpop.permute.xlu2 %7006 }
 0x53c   : > { %v5018_v11 = vpop.f32.mrf.mxu2  ;;  %v5045_v39 = vpop.f32.mrf.mxu3 }
 0x53d   : > { %v5046_v26 = vadd.f32 %v5045_v39, %v5017_v35  ;;  %v5019_v57 = vadd.f32 %v5018_v11, %v9283_v10 }
 0x53f   : > { %v5508_v48 = vadd.f32 %v5468_v44, %v5046_v26  ;;  %v9488_v44 = vpop.permute.xlu1 %7001 }
 0x541   : > { %5532 = vst [vmem:[%s9448_s16] sm:$0xff] %v5508_v48  ;;  %5252 = vmatmul.bf16.gmra.mxu2 %v9060_v51  ;;  %v9468_v51 = vpop.f32.mrf.mxu0  ;;  %v9492_v48 = vpop.f32.mrf.mxu1 }
 0x544   : > { %v5021_v31 = vpop.f32.mrf.mxu2  ;;  %v5047_v37 = vpop.f32.mrf.mxu3 }
 0x545   : > { %v5048_v4 = vadd.f32 %v5047_v37, %v5019_v57  ;;  %v5022_v10 = vadd.f32 %v5021_v31, %v9304_v14  ;;  %v7004_v57 = vunpack.i.h.bf16 %v9488_v44 }
 0x547   : > { %v5511_v61 = vadd.f32 %v5470_v60, %v5048_v4 }
 0x549   : > { %5536 = vst [vmem:[%s9448_s16 + $0x18] sm:$0xff] %v5511_v61  ;;  %5281 = vmatmul.bf16.gmra.mxu3 %v9088_v52  ;;  %v6998_v52 = vunpack.i.l.bf16 %v9476_v27  ;;  %v9490_v26 = vpop.f32.mrf.mxu0  ;;  %v9502_v61 = vpop.permute.xlu0 %7011 }
 0x54b   : > { %v5474_v11 = vsel %vm881_vm5, %v6994_v54, %v6998_v52 }
 0x54c   : > { %v5023_v28 = vpop.f32.mrf.mxu2  ;;  %v5050_v0 = vpop.f32.mrf.mxu3 }
 0x54d   : > { %v5051_v19 = vadd.f32 %v5050_v0, %v5022_v10  ;;  %v5024_v14 = vadd.f32 %v5023_v28, %v9326_v13  ;;  %v7013_v0 = vunpack.i.l.bf16 %v9502_v61 }
 0x54f   : > { %v5514_v58 = vadd.f32 %v5472_v17, %v5051_v19  ;;  %v9508_v17 = vpop.f32.mrf.mxu1 }
 0x551   : > { %5539 = vst [vmem:[%s9448_s16 + $0x30] sm:$0xff] %v5514_v58  ;;  %5257 = vmatmul.bf16.gmra.mxu2 %v9110_v63  ;;  %v7003_v63 = vunpack.i.l.bf16 %v9488_v44  ;;  %v5190_v28 = vpop.f32.mrf.mxu0 }
 0x553   : > { %v5476_v60 = vsel %vm881_vm5, %v7003_v63, %v7004_v57 }
 0x554   : > { %v5026_v47 = vpop.f32.mrf.mxu2  ;;  %v5052_v35 = vpop.f32.mrf.mxu3 }
 0x555   : > { %v5053_v39 = vadd.f32 %v5052_v35, %v5024_v14  ;;  %v5027_v13 = vadd.f32 %v5026_v47, %v9349_v2  ;;  %v9516_v47 = vpop.permute.xlu1 %7016 }
 0x557   : > { %v5517_v33 = vadd.f32 %v5474_v11, %v5053_v39  ;;  %v9691_v11 = vunpack.i.h.bf16 %v9516_v47  ;;  %v7018_v39 = vunpack.i.l.bf16 %v9516_v47 }
 0x559   : > { %5542 = vst [vmem:[%s9448_s16 + $0x48] sm:$0xff] %v5517_v33  ;;  %5286 = vmatmul.bf16.gmra.mxu3 %v9132_v9  ;;  %v7009_v9 = vunpack.i.h.bf16 %v9504_v46 }
 0x55b   : > { %v5478_v54 = vsel %vm881_vm5, %v7009_v9, %v7013_v0 }
 0x55c   : > { %v5028_v31 = vpop.f32.mrf.mxu2  ;;  %v5055_v37 = vpop.f32.mrf.mxu3 }
 0x55d   : > { %v5056_v4 = vadd.f32 %v5055_v37, %v5027_v13  ;;  %v5029_v2 = vadd.f32 %v5028_v31, %v9370_v41  ;;  %v9522_v41 = vpop.f32.mrf.mxu1  ;;  %v5480_v31 = vsel %vm881_vm5, %v7018_v39, %v9691_v11 }
 0x55f   : > { %v5520_v10 = vadd.f32 %v5476_v60, %v5056_v4  ;;  %v9528_v60 = vpop.permute.xlu0 %7026  ;;  %v9530_v4 = vpop.permute.xlu2 %7021 }
 0x560   : > { %v7024_v9 = vunpack.i.h.bf16 %v9530_v4 }
 0x561   : > { %5545 = vst [vmem:[%s9448_s16 + $0x60] sm:$0xff] %v5520_v10  ;;  %5262 = vmatmul.bf16.gmra.mxu2 %v9151_v8  ;;  %v5192_v8 = vpop.f32.mrf.mxu0 }
 0x564   : > { %v5031_v19 = vpop.f32.mrf.mxu2  ;;  %v5057_v58 = vpop.f32.mrf.mxu3 }
 0x565   : > { %v5058_v14 = vadd.f32 %v5057_v58, %v5029_v2  ;;  %v5032_v33 = vadd.f32 %v5031_v19, %v9380_v43  ;;  %v9541_v39 = vpop.f32.mrf.mxu1 }
 0x567   : > { %v5523_v35 = vadd.f32 %v5478_v54, %v5058_v14 }
 0x569   : > { %5548 = vst [vmem:[%s9448_s16 + $0x78] sm:$0xff] %v5523_v35  ;;  %5291 = vmatmul.bf16.gmra.mxu3 %v9165_v34  ;;  %v7028_v34 = vunpack.i.l.bf16 %v9528_v60  ;;  %v5195_v2 = vpop.f32.mrf.mxu0  ;;  %v5075_v35 = vadd.f32 %v9401_v56, %v9247_v18 }
 0x56b   : > { %v5482_v58 = vsel %vm881_vm5, %v7024_v9, %v7028_v34  ;;  %v5077_v9 = vadd.f32 %v9406_v25, %v9268_v30 }
 0x56c   : > { %v5033_v63 = vpop.f32.mrf.mxu2  ;;  %v5060_v13 = vpop.f32.mrf.mxu3 }
 0x56d   : > { %v5061_v37 = vadd.f32 %v5060_v13, %v5032_v33  ;;  %v5034_v43 = vadd.f32 %v5033_v63, %v9387_v7  ;;  %v5104_v13 = vadd.f32 %v9403_v6, %v5075_v35  ;;  %v6978_v7 = vunpack.i.l.bf16 %v9443_v1 }
 0x56e   : > { %v5106_v6 = vadd.f32 %v9410_v42, %v5077_v9  ;;  %v5080_v42 = vadd.f32 %v9415_v55, %v9288_v16 }
 0x56f   : > { %v5526_v10 = vadd.f32 %v5480_v31, %v5061_v37  ;;  %v5469_v56 = vsel %vm881_vm5, %v6974_v32, %v6978_v7 }
 0x571   : > { %5551 = vst [vmem:[%s9448_s16 + $0x90] sm:$0xff] %v5526_v10  ;;  %v5197_v11 = vpop.f32.mrf.mxu0 }
 0x574   : > { %v5062_v19 = vpop.f32.mrf.mxu3  ;;  %v5132_v54 = vpop.f32.mrf.mxu2 }
 0x575   : > { %v5063_v14 = vadd.f32 %v5062_v19, %v5034_v43  ;;  %v5133_v63 = vadd.f32 %v5132_v54, %v5104_v13  ;;  %v9554_v19 = vpop.f32.mrf.mxu1  ;;  %v6984_v54 = vunpack.i.h.bf16 %v9441_v29 }
 0x577   : > { %v5529_v33 = vadd.f32 %v5482_v58, %v5063_v14  ;;  %v5471_v25 = vsel %vm881_vm5, %v6983_v36, %v6984_v54 }
 0x579   : > { %5554 = vst [vmem:[%s9448_s16 + $0xa8] sm:$0xff] %v5529_v33  ;;  %v5200_v32 = vpop.f32.mrf.mxu0 }
 0x57c   : > { %v5134_v31 = vpop.f32.mrf.mxu2  ;;  %v5161_v37 = vpop.f32.mrf.mxu3 }
 0x57d   : > { %v5162_v10 = vadd.f32 %v5161_v37, %v5133_v63  ;;  %v5135_v14 = vadd.f32 %v5134_v31, %v5106_v6  ;;  %v6993_v31 = vunpack.i.l.bf16 %v9478_v50  ;;  %v9567_v37 = vpop.f32.mrf.mxu1 }
 0x57f   : > { %v5191_v43 = vadd.f32 %v5190_v28, %v5162_v10  ;;  %v5109_v28 = vadd.f32 %v9417_v59, %v5080_v42  ;;  %v5473_v55 = vsel %vm881_vm5, %v6989_v45, %v6993_v31  ;;  %v5082_v59 = vadd.f32 %v9421_v24, %v9311_v49 }
 0x581   : > { %v5509_v58 = vadd.f32 %v5469_v56, %v5191_v43 }
 0x583   : > { %5533 = vst [vmem:[%s9448_s16 + $0x8] sm:$0xff] %v5509_v58  ;;  %v5202_v58 = vpop.f32.mrf.mxu0 }
 0x584   : > { %v5137_v35 = vpop.f32.mrf.mxu2  ;;  %v5163_v33 = vpop.f32.mrf.mxu3 }
 0x585   : > { %v5164_v13 = vadd.f32 %v5163_v33, %v5135_v14  ;;  %v5138_v10 = vadd.f32 %v5137_v35, %v5109_v28  ;;  %v6999_v14 = vunpack.i.h.bf16 %v9476_v27 }
 0x587   : > { %v5193_v38 = vadd.f32 %v5192_v8, %v5164_v13  ;;  %v5111_v8 = vadd.f32 %v9423_v5, %v5082_v59  ;;  %v5475_v24 = vsel %vm881_vm5, %v6998_v52, %v6999_v14  ;;  %v5085_v5 = vadd.f32 %v9429_v40, %v9334_v12 }
 0x588   : > { %v5087_v40 = vadd.f32 %v9452_v21, %v9358_v20  ;;  %v7014_v59 = vunpack.i.h.bf16 %v9502_v61 }
 0x589   : > { %v5512_v63 = vadd.f32 %v5471_v25, %v5193_v38  ;;  %v9580_v25 = vpop.f32.mrf.mxu1  ;;  %v7008_v38 = vunpack.i.l.bf16 %v9504_v46 }
 0x58a   : > { %v5479_v21 = vsel %vm881_vm5, %v7013_v0, %v7014_v59  ;;  %v9698_v0 = vunpack.i.h.bf16 %v9516_v47 }
 0x58b   : > { %5537 = vst [vmem:[%s9448_s16 + $0x20] sm:$0xff] %v5512_v63  ;;  %v5205_v63 = vpop.f32.mrf.mxu0  ;;  %v5477_v52 = vsel %vm881_vm5, %v7004_v57, %v7008_v38  ;;  %v5090_v57 = vadd.f32 %v9468_v51, %v9374_v23 }
 0x58c   : > { %v5139_v56 = vpop.f32.mrf.mxu2  ;;  %v5166_v9 = vpop.f32.mrf.mxu3 }
 0x58d   : > { %v5167_v43 = vadd.f32 %v5166_v9, %v5138_v10  ;;  %v5140_v35 = vadd.f32 %v5139_v56, %v5111_v8 }
 0x58f   : > { %v5196_v36 = vadd.f32 %v5195_v2, %v5167_v43  ;;  %v5114_v2 = vadd.f32 %v9431_v15, %v5085_v5  ;;  %v5116_v43 = vadd.f32 %v9456_v3, %v5087_v40 }
 0x591   : > { %v5515_v6 = vadd.f32 %v5473_v55, %v5196_v36  ;;  %v9599_v15 = vpop.f32.mrf.mxu1 }
 0x593   : > { %5540 = vst [vmem:[%s9448_s16 + $0x38] sm:$0xff] %v5515_v6  ;;  %v5207_v44 = vpop.f32.mrf.mxu0 }
 0x594   : > { %v5142_v33 = vpop.f32.mrf.mxu2  ;;  %v5168_v13 = vpop.f32.mrf.mxu3 }
 0x595   : > { %v5169_v53 = vadd.f32 %v5168_v13, %v5140_v35  ;;  %v5143_v28 = vadd.f32 %v5142_v33, %v5114_v2 }
 0x597   : > { %v5198_v45 = vadd.f32 %v5197_v11, %v5169_v53  ;;  %v7023_v53 = vunpack.i.l.bf16 %v9530_v4 }
 0x599   : > { %v5518_v42 = vadd.f32 %v5475_v24, %v5198_v45  ;;  %v9612_v33 = vpop.f32.mrf.mxu1  ;;  %v5481_v51 = vsel %vm881_vm5, %v9698_v0, %v7023_v53 }
 0x59b   : > { %5543 = vst [vmem:[%s9448_s16 + $0x50] sm:$0xff] %v5518_v42  ;;  %v5306_v42 = vpop.f32.mrf.mxu0 }
 0x59c   : > { %v5144_v10 = vpop.f32.mrf.mxu2  ;;  %v5171_v56 = vpop.f32.mrf.mxu3 }
 0x59d   : > { %v5172_v9 = vadd.f32 %v5171_v56, %v5143_v28  ;;  %v5145_v36 = vadd.f32 %v5144_v10, %v5116_v43 }
 0x59f   : > { %v5201_v11 = vadd.f32 %v5200_v32, %v5172_v9  ;;  %v5119_v32 = vadd.f32 %v9471_v62, %v5090_v57  ;;  %v5092_v62 = vadd.f32 %v9490_v26, %v9383_v22  ;;  %v7029_v9 = vunpack.i.h.bf16 %v9528_v60 }
 0x5a1   : > { %v5521_v55 = vadd.f32 %v5477_v52, %v5201_v11  ;;  %v5121_v28 = vadd.f32 %v9492_v48, %v5092_v62  ;;  %v5335_v56 = vpop.f32.mrf.mxu1  ;;  %v5483_v26 = vsel %vm881_vm5, %v7028_v34, %v7029_v9 }
 0x5a3   : > { %5546 = vst [vmem:[%s9448_s16 + $0x68] sm:$0xff] %v5521_v55  ;;  %v5308_v55 = vpop.f32.mrf.mxu0 }
 0x5a4   : > { %v5147_v8 = vpop.f32.mrf.mxu2  ;;  %v5173_v6 = vpop.f32.mrf.mxu3 }
 0x5a5   : > { %v5174_v35 = vadd.f32 %v5173_v6, %v5145_v36  ;;  %v5148_v24 = vadd.f32 %v5147_v8, %v5119_v32 }
 0x5a7   : > { %v5203_v3 = vadd.f32 %v5202_v58, %v5174_v35 }
 0x5a9   : > { %v5524_v13 = vadd.f32 %v5479_v21, %v5203_v3  ;;  %v5337_v8 = vpop.f32.mrf.mxu1  ;;  %v5222_v3 = vadd.f32 %v9522_v41, %v9268_v30 }
 0x5ab   : > { %5549 = vst [vmem:[%s9448_s16 + $0x80] sm:$0xff] %v5524_v13 }
 0x5ac   : > { %v5149_v5 = vpop.f32.mrf.mxu2  ;;  %v5176_v45 = vpop.f32.mrf.mxu3 }
 0x5ad   : > { %v5177_v2 = vadd.f32 %v5176_v45, %v5148_v24  ;;  %v5150_v52 = vadd.f32 %v5149_v5, %v5121_v28  ;;  %v5227_v28 = vadd.f32 %v9554_v19, %v9311_v49 }
 0x5af   : > { %v5206_v58 = vadd.f32 %v5205_v63, %v5177_v2  ;;  %v5220_v63 = vadd.f32 %v9508_v17, %v9247_v18  ;;  %v5311_v17 = vpop.f32.mrf.mxu0  ;;  %v5225_v2 = vadd.f32 %v9541_v39, %v9288_v16 }
 0x5b1   : > { %v5527_v10 = vadd.f32 %v5481_v51, %v5206_v58  ;;  %v5340_v5 = vpop.f32.mrf.mxu1 }
 0x5b3   : > { %5552 = vst [vmem:[%s9448_s16 + $0x98] sm:$0xff] %v5527_v10 }
 0x5b4   : > { %v5178_v40 = vpop.f32.mrf.mxu3  ;;  %v5248_v11 = vpop.f32.mrf.mxu2 }
 0x5b5   : > { %v5179_v43 = vadd.f32 %v5178_v40, %v5150_v52  ;;  %v5249_v36 = vadd.f32 %v5248_v11, %v5220_v63  ;;  %v5230_v11 = vadd.f32 %v9567_v37, %v9334_v12 }
 0x5b7   : > { %v5208_v47 = vadd.f32 %v5207_v44, %v5179_v43  ;;  %v5313_v62 = vpop.f32.mrf.mxu0 }
 0x5b9   : > { %v5530_v48 = vadd.f32 %v5483_v26, %v5208_v47 }
 0x5bb   : > { %5555 = vst [vmem:[%s9448_s16 + $0xb0] sm:$0xff] %v5530_v48  ;;  %v5232_v48 = vadd.f32 %v9580_v25, %v9358_v20 }
 0x5bc   : > { %v5250_v6 = vpop.f32.mrf.mxu2  ;;  %v5277_v35 = vpop.f32.mrf.mxu3 }
 0x5bd   : > { %v5278_v21 = vadd.f32 %v5277_v35, %v5249_v36  ;;  %v5251_v34 = vadd.f32 %v5250_v6, %v5222_v3 }
 0x5bf   : > { %v5307_v57 = vadd.f32 %v5306_v42, %v5278_v21  ;;  %v5342_v42 = vpop.f32.mrf.mxu1  ;;  %v5316_v40 = vpop.f32.mrf.mxu0  ;;  %v5235_v21 = vadd.f32 %v9599_v15, %v9374_v23 }
 0x5c1   : > { %v5336_v32 = vadd.f32 %v5335_v56, %v5307_v57 }
 0x5c3   : > { %v5510_v18 = vadd.f32 %v6978_v7, %v5336_v32 }
 0x5c4   : > { %v5253_v44 = vpop.f32.mrf.mxu2  ;;  %v5279_v13 = vpop.f32.mrf.mxu3 }
 0x5c5   : > { %5535 = vst.msk [vmem:[%s9448_s16 + $0x10] sm:$0xff] %vm5534_vm0, %v5510_v18  ;;  %v5280_v24 = vadd.f32 %v5279_v13, %v5251_v34  ;;  %v5254_v30 = vadd.f32 %v5253_v44, %v5225_v2 }
 0x5c7   : > { %v5309_v45 = vadd.f32 %v5308_v55, %v5280_v24  ;;  %v5345_v26 = vpop.f32.mrf.mxu1  ;;  %v5318_v36 = vpop.f32.mrf.mxu0 }
 0x5c9   : > { %v5338_v0 = vadd.f32 %v5337_v8, %v5309_v45 }
 0x5cb   : > { %v5513_v41 = vadd.f32 %v6984_v54, %v5338_v0 }
 0x5cc   : > { %v5255_v51 = vpop.f32.mrf.mxu2  ;;  %v5282_v1 = vpop.f32.mrf.mxu3 }
 0x5cd   : > { %5538 = vst.msk [vmem:[%s9448_s16 + $0x28] sm:$0xff] %vm5534_vm0, %v5513_v41  ;;  %v5283_v7 = vadd.f32 %v5282_v1, %v5254_v30  ;;  %v5256_v16 = vadd.f32 %v5255_v51, %v5227_v28 }
 0x5cf   : > { %v5312_v58 = vadd.f32 %v5311_v17, %v5283_v7  ;;  %v5347_v6 = vpop.f32.mrf.mxu1  ;;  %v5321_v32 = vpop.f32.mrf.mxu0  ;;  %v5237_v17 = vadd.f32 %v9612_v33, %v9383_v22 }
 0x5d1   : > { %v5341_v10 = vadd.f32 %v5340_v5, %v5312_v58 }
 0x5d3   : > { %v5516_v39 = vadd.f32 %v6993_v31, %v5341_v10 }
 0x5d4   : > { %v5258_v56 = vpop.f32.mrf.mxu2  ;;  %v5284_v29 = vpop.f32.mrf.mxu3 }
 0x5d5   : > { %5541 = vst.msk [vmem:[%s9448_s16 + $0x40] sm:$0xff] %vm5534_vm0, %v5516_v39  ;;  %v5285_v54 = vadd.f32 %v5284_v29, %v5256_v16  ;;  %v5259_v49 = vadd.f32 %v5258_v56, %v5230_v11 }
 0x5d7   : > { %v5314_v52 = vadd.f32 %v5313_v62, %v5285_v54 }
 0x5d9   : > { %v5343_v43 = vadd.f32 %v5342_v42, %v5314_v52 }
 0x5db   : > { %v5519_v19 = vadd.f32 %v6999_v14, %v5343_v43 }
 0x5dc   : > { %v5260_v47 = vpop.f32.mrf.mxu2  ;;  %v5287_v50 = vpop.f32.mrf.mxu3 }
 0x5dd   : > { %5544 = vst.msk [vmem:[%s9448_s16 + $0x58] sm:$0xff] %vm5534_vm0, %v5519_v19  ;;  %v5288_v31 = vadd.f32 %v5287_v50, %v5259_v49  ;;  %v5261_v12 = vadd.f32 %v5260_v47, %v5232_v48 }
 0x5df   : > { %v5317_v63 = vadd.f32 %v5316_v40, %v5288_v31 }
 0x5e1   : > { %v5346_v55 = vadd.f32 %v5345_v26, %v5317_v63 }
 0x5e3   : > { %v5522_v37 = vadd.f32 %v7008_v38, %v5346_v55  ;;  %v5350_v38 = vpop.f32.mrf.mxu1 }
 0x5e4   : > { %v5289_v8 = vpop.f32.mrf.mxu3  ;;  %v5263_v14 = vpop.f32.mrf.mxu2 }
 0x5e5   : > { %5547 = vst.msk [vmem:[%s9448_s16 + $0x70] sm:$0xff] %vm5534_vm0, %v5522_v37  ;;  %v5290_v27 = vadd.f32 %v5289_v8, %v5261_v12  ;;  %v5264_v20 = vadd.f32 %v5263_v14, %v5235_v21 }
 0x5e7   : > { %v5319_v35 = vadd.f32 %v5318_v36, %v5290_v27 }
 0x5e9   : > { %v5348_v57 = vadd.f32 %v5347_v6, %v5319_v35 }
 0x5eb   : > { %v5525_v25 = vadd.f32 %v7014_v59, %v5348_v57  ;;  %v5323_v59 = vpop.f32.mrf.mxu0  ;;  %v5352_v5 = vpop.f32.mrf.mxu1 }
 0x5ec   : > { %v5292_v3 = vpop.f32.mrf.mxu3  ;;  %v5265_v18 = vpop.f32.mrf.mxu2 }
 0x5ed   : > { %5550 = vst.msk [vmem:[%s9448_s16 + $0x88] sm:$0xff] %vm5534_vm0, %v5525_v25  ;;  %v5293_v46 = vadd.f32 %v5292_v3, %v5264_v20  ;;  %v5266_v23 = vadd.f32 %v5265_v18, %v5237_v17 }
 0x5ef   : > { %v5322_v34 = vadd.f32 %v5321_v32, %v5293_v46 }
 0x5f1   : > { %v5351_v44 = vadd.f32 %v5350_v38, %v5322_v34 }
 0x5f3   : > { %v5528_v15 = vadd.f32 %v7023_v53, %v5351_v44 }
 0x5f4   : > { %v5294_v13 = vpop.f32.mrf.mxu3 }
 0x5f5   : > { %5553 = vst.msk [vmem:[%s9448_s16 + $0xa0] sm:$0xff] %vm5534_vm0, %v5528_v15  ;;  %v5295_v61 = vadd.f32 %v5294_v13, %v5266_v23 }
 0x5f7   : > { %v5324_v24 = vadd.f32 %v5323_v59, %v5295_v61 }
 0x5f9   : > { %v5353_v45 = vadd.f32 %v5352_v5, %v5324_v24 }
 0x5fb   : > { %v5531_v2 = vadd.f32 %v7029_v9, %v5353_v45 }
 0x5fd   : > { %5556 = vst.msk [vmem:[%s9448_s16 + $0xb8] sm:$0xff] %vm5534_vm0, %v5531_v2 }
 0x5fe PF: > { %s18_s26 = sadd.s32 1, %s7042_s26  }
 0x5ff   : > { %p15_p4 = scmp.ge.s32.totalorder %s18_s26, 4  }
 0x601   :  { %17 = sbr.rel (!%p15_p4) target bundleno = 2 (0x2), region = 78 }

</bundles_post_ra>
